<compile_context>
chip_gen: v7x
topology: tpu7x:2x2x1
jax: 0.10.0
libtpu: 0.0.40
codegen_flags: <defaults>
</compile_context>

<pallas_src>
import functools

import jax
import jax.numpy as jnp
import numpy as np
from jax.experimental import pallas as pl
from jax.experimental.pallas import tpu as pltpu


# ----------------------------- static geometry ------------------------------
_H, _W, _CIN, _K = 32, 32, 3, 5
_C1, _C2 = 6, 16
_PH1, _PW1 = 14, 14            # pool1 output grid
_PH2, _PW2 = 5, 5              # pool2 output grid

_XW = _H * _W + _W             # 1056 padded wide-input lanes per sample
_S1 = 28 * _W                  # 896  conv1 wide lanes per sample (t = oh*32 + ow)
_K1 = _K * _K * _CIN           # 75   conv1 patch rows
_PM1 = 860                     # pool1 pairwise-max lanes (needs >= 64*13 + 2*13 + 1)
_Z1 = 256                      # pool1 wide lanes per sample (196 valid + zero tail)
_S2 = 10 * _PW1                # 140  conv2 wide lanes per sample (t2 = oh2*14 + ow2)
_K2 = _K * _K * _C1            # 150  conv2 patch rows
_PM2 = 124                     # pool2 pairwise-max lanes (needs >= 28*4 + 2*4 + 1)
_NFC = _C2 * _PH2 * _PW2       # 400  fc1 input features


# --------------------------- constant 0/1 matrices ---------------------------
def _pool1_selector():
    """(860, 256): column 14*ph+pw picks lane 64*ph+2*pw of the 2x2 window max."""
    s = np.zeros((_PM1, _Z1), np.float32)
    for ph in range(_PH1):
        for pw in range(_PW1):
            s[64 * ph + 2 * pw, 14 * ph + pw] = 1.0
    return jnp.asarray(s)


def _pool2_flatten():
    """(124, 400): column c*25+s picks lane 28*(s//5)+2*(s%5) of the pool2 window max."""
    k = np.zeros((_PM2, _NFC), np.float32)
    for j in range(_NFC):
        s = j % 25
        k[28 * (s // 5) + 2 * (s % 5), j] = 1.0
    return jnp.asarray(k)


def _channel_mask():
    """(16, 400): row c is 1 on the 25 columns [c*25, (c+1)*25)."""
    m = np.zeros((_C2, _NFC), np.float32)
    for j in range(_NFC):
        m[j // 25, j] = 1.0
    return jnp.asarray(m)


# ------------------------------- fused kernel --------------------------------
def _lenet_kernel(x_ref, w1_ref, b1_ref, s1_ref, w2_ref, b2_ref, k2_ref, m_ref,
                  wf1_ref, bf1_ref, wf2_ref, bf2_ref, wf3_ref, bf3_ref,
                  out_ref,
                  p1_ref, y1_ref, z1_ref, p2_ref, y2_ref, *, btile):
    f32 = jnp.float32

    # ---- conv1 im2col (lane-dense copies, channels on sublanes):
    #      p1[3*j + ci, b*896 + t] = x[b, ci, t + 32*kh + kw],  j = kh*5 + kw
    for b in range(btile):
        for kh in range(_K):
            for kw in range(_K):
                j = kh * _K + kw
                src = 32 * kh + kw
                p1_ref[3 * j:3 * j + 3, b * _S1:(b + 1) * _S1] = x_ref[b, :, src:src + _S1]

    # ---- conv1 + bias + relu: single MXU matmul with btile*896 output lanes
    y1_ref[...] = jnp.maximum(
        jnp.dot(w1_ref[...], p1_ref[...], preferred_element_type=f32) + b1_ref[...], 0.0)

    # ---- pool1 (2x2/2): VPU max over 4 shifted lane slices, then one selection matmul
    #      that compacts lane 64*ph+2*pw -> 14*ph+pw (selector is a constant input).
    for b in range(btile):
        base = b * _S1
        pm = jnp.maximum(
            jnp.maximum(y1_ref[:, base:base + _PM1],
                        y1_ref[:, base + 1:base + 1 + _PM1]),
            jnp.maximum(y1_ref[:, base + 32:base + 32 + _PM1],
                        y1_ref[:, base + 33:base + 33 + _PM1]))
        z1_ref[:, b * _Z1:(b + 1) * _Z1] = jnp.dot(pm, s1_ref[...],
                                                   preferred_element_type=f32)

    # ---- conv2 im2col: p2[6*j + ci, b*140 + t2] = z1[ci, b*256 + t2 + 14*kh + kw]
    for b in range(btile):
        for kh in range(_K):
            for kw in range(_K):
                j = kh * _K + kw
                src = b * _Z1 + 14 * kh + kw
                p2_ref[6 * j:6 * j + 6, b * _S2:(b + 1) * _S2] = z1_ref[:, src:src + _S2]

    # ---- conv2 + bias + relu
    y2_ref[...] = jnp.maximum(
        jnp.dot(w2_ref[...], p2_ref[...], preferred_element_type=f32) + b2_ref[...], 0.0)

    # ---- pool2 + (c, h, w) flatten + fused MLP epilogue.
    #      pm[c, t2] is the 2x2 window max; pm @ K2 replicates each channel's 25 pooled
    #      values into every 25-wide column block, the channel mask + sublane sum keeps
    #      block c from channel c, giving the (1, 400) fc row in PyTorch flatten order.
    rows = []
    for b in range(btile):
        base = b * _S2
        pm = jnp.maximum(
            jnp.maximum(y2_ref[:, base:base + _PM2],
                        y2_ref[:, base + 1:base + 1 + _PM2]),
            jnp.maximum(y2_ref[:, base + 14:base + 14 + _PM2],
                        y2_ref[:, base + 15:base + 15 + _PM2]))
        g = jnp.dot(pm, k2_ref[...], preferred_element_type=f32)          # (16, 400)
        rows.append(jnp.sum(g * m_ref[...], axis=0, keepdims=True))       # (1, 400)
    fcin = jnp.concatenate(rows, axis=0)                                   # (btile, 400)

    h = jnp.maximum(jnp.dot(fcin, wf1_ref[...], preferred_element_type=f32) + bf1_ref[...], 0.0)
    h = jnp.maximum(jnp.dot(h, wf2_ref[...], preferred_element_type=f32) + bf2_ref[...], 0.0)
    out = jnp.dot(h, wf3_ref[...], preferred_element_type=f32) + bf3_ref[...]
    out_ref[0, :, :] = out


# ------------------------------- full network --------------------------------
def net_forward(x_nchw, params):
    (w_c1, b_c1), (w_c2, b_c2), (w_f1, b_f1, w_f2, b_f2, w_f3, b_f3) = params
    n = x_nchw.shape[0]
    # Batch tile: 8 samples/step for real batches, >= 2 grid steps for tiny batches
    # so the v7x megacore 'parallel' axis has work for both TensorCores.
    btile = min(8, max(1, (n + 1) // 2))
    num_tiles = pl.cdiv(n, btile)
    n_pad = num_tiles * btile

    # NCHW -> per-sample (C, H*W) wide slab; pad lanes so the largest tap slice
    # (start 4*32 + 4 = 132, length 896) stays in bounds, pad batch to the tile grid.
    x2d = x_nchw.reshape(n, _CIN, _H * _W)
    x2d = jnp.pad(x2d, ((0, n_pad - n), (0, 0), (0, _XW - _H * _W)))

    # PyTorch OIHW conv weights -> (Cout, K*K*Cin), columns in (kh*5 + kw)*Cin + ci
    # order to match the in-kernel patch rows.
    w1t = jnp.transpose(w_c1, (0, 2, 3, 1)).reshape(_C1, _K1)
    w2t = jnp.transpose(w_c2, (0, 2, 3, 1)).reshape(_C2, _K2)

    kern = functools.partial(_lenet_kernel, btile=btile)
    out = pl.pallas_call(
        kern,
        out_shape=jax.ShapeDtypeStruct((num_tiles, btile, 10), jnp.float32),
        grid=(num_tiles,),
        in_specs=[
            pl.BlockSpec((btile, _CIN, _XW), lambda i: (i, 0, 0)),   # x (wide slabs)
            pl.BlockSpec((_C1, _K1), lambda i: (0, 0)),              # conv1 weight
            pl.BlockSpec((_C1, 1), lambda i: (0, 0)),                # conv1 bias
            pl.BlockSpec((_PM1, _Z1), lambda i: (0, 0)),             # pool1 selector
            pl.BlockSpec((_C2, _K2), lambda i: (0, 0)),              # conv2 weight
            pl.BlockSpec((_C2, 1), lambda i: (0, 0)),                # conv2 bias
            pl.BlockSpec((_PM2, _NFC), lambda i: (0, 0)),            # pool2+flatten selector
            pl.BlockSpec((_C2, _NFC), lambda i: (0, 0)),             # channel mask
            pl.BlockSpec((_NFC, 120), lambda i: (0, 0)),             # fc1 weight
            pl.BlockSpec((1, 120), lambda i: (0, 0)),                # fc1 bias
            pl.BlockSpec((120, 84), lambda i: (0, 0)),               # fc2 weight
            pl.BlockSpec((1, 84), lambda i: (0, 0)),                 # fc2 bias
            pl.BlockSpec((84, 10), lambda i: (0, 0)),                # fc3 weight
            pl.BlockSpec((1, 10), lambda i: (0, 0)),                 # fc3 bias
        ],
        out_specs=pl.BlockSpec((1, btile, 10), lambda i: (i, 0, 0)),
        scratch_shapes=[
            pltpu.VMEM((_K1, btile * _S1), jnp.float32),   # conv1 im2col patches
            pltpu.VMEM((_C1, btile * _S1), jnp.float32),   # conv1 relu output
            pltpu.VMEM((_C1, btile * _Z1), jnp.float32),   # pool1 output (+zero tail)
            pltpu.VMEM((_K2, btile * _S2), jnp.float32),   # conv2 im2col patches
            pltpu.VMEM((_C2, btile * _S2), jnp.float32),   # conv2 relu output
        ],
        compiler_params=pltpu.CompilerParams(dimension_semantics=("parallel",)),
    )(x2d, w1t, b_c1.reshape(_C1, 1), _pool1_selector(), w2t, b_c2.reshape(_C2, 1),
      _pool2_flatten(), _channel_mask(),
      w_f1, b_f1.reshape(1, -1), w_f2, b_f2.reshape(1, -1), w_f3, b_f3.reshape(1, -1))
    return out.reshape(n_pad, 10)[:n]


# --------------------------- deterministic params ----------------------------
def init_params(key):
    def uniform(k, shape, fan_in):
        bound = 1.0 / jnp.sqrt(jnp.float32(fan_in))
        return jax.random.uniform(k, shape, jnp.float32, -bound, bound)

    ks = jax.random.split(key, 10)
    w_c1 = uniform(ks[0], (6, 3, 5, 5), 3 * 25)
    b_c1 = uniform(ks[1], (6,), 3 * 25)
    w_c2 = uniform(ks[2], (16, 6, 5, 5), 6 * 25)
    b_c2 = uniform(ks[3], (16,), 6 * 25)
    w_f1 = uniform(ks[4], (400, 120), 400)     # rows in PyTorch (c*25 + h*5 + w) order
    b_f1 = uniform(ks[5], (120,), 400)
    w_f2 = uniform(ks[6], (120, 84), 120)
    b_f2 = uniform(ks[7], (84,), 120)
    w_f3 = uniform(ks[8], (84, 10), 84)
    b_f3 = uniform(ks[9], (10,), 84)
    return (w_c1, b_c1), (w_c2, b_c2), (w_f1, b_f1, w_f2, b_f2, w_f3, b_f3)


if __name__ == "__main__":
    key = jax.random.PRNGKey(0)
    pkey, xkey = jax.random.split(key)
    params = init_params(pkey)
    x = jax.random.normal(xkey, (2, 3, 32, 32), dtype=jnp.float32)  # NCHW like PyTorch
    out = jax.jit(net_forward)(x, params)
    out = jax.block_until_ready(out)
    assert out.shape == (2, 10), out.shape
    assert jnp.all(jnp.isfinite(out))
    print("KERNEL_OK")
</pallas_src>

<mosaic_0001>
module attributes {stable_mosaic.version = 11 : i64} {
  func.func @_lenet_kernel(%arg0: i32, %arg1: memref<1x3x1056xf32, #tpu.memory_space<vmem>>, %arg2: memref<6x75xf32, #tpu.memory_space<vmem>>, %arg3: memref<6x1xf32, #tpu.memory_space<vmem>>, %arg4: memref<860x256xf32, #tpu.memory_space<vmem>>, %arg5: memref<16x150xf32, #tpu.memory_space<vmem>>, %arg6: memref<16x1xf32, #tpu.memory_space<vmem>>, %arg7: memref<124x400xf32, #tpu.memory_space<vmem>>, %arg8: memref<16x400xf32, #tpu.memory_space<vmem>>, %arg9: memref<400x120xf32, #tpu.memory_space<vmem>>, %arg10: memref<1x120xf32, #tpu.memory_space<vmem>>, %arg11: memref<120x84xf32, #tpu.memory_space<vmem>>, %arg12: memref<1x84xf32, #tpu.memory_space<vmem>>, %arg13: memref<84x10xf32, #tpu.memory_space<vmem>>, %arg14: memref<1x10xf32, #tpu.memory_space<vmem>>, %arg15: memref<1x1x10xf32, #tpu.memory_space<vmem>>, %arg16: memref<75x896xf32, #tpu.memory_space<vmem>>, %arg17: memref<6x896xf32, #tpu.memory_space<vmem>>, %arg18: memref<6x256xf32, #tpu.memory_space<vmem>>, %arg19: memref<150x140xf32, #tpu.memory_space<vmem>>, %arg20: memref<16x140xf32, #tpu.memory_space<vmem>>) attributes {dimension_semantics = [#tpu.dimension_semantics<parallel>], iteration_bounds = array<i64: 2>, scalar_prefetch = 0 : i64, scratch_operands = 5 : i64, tpu.core_type = #tpu.core_type<tc>, window_params = [{transform_indices = @transform_0, window_bounds = array<i64: 1, 3, 1056>}, {pipeline_mode = #tpu.pipeline_mode<synchronous>, transform_indices = @transform_1, window_bounds = array<i64: 6, 75>}, {pipeline_mode = #tpu.pipeline_mode<synchronous>, transform_indices = @transform_2, window_bounds = array<i64: 6, 1>}, {pipeline_mode = #tpu.pipeline_mode<synchronous>, transform_indices = @transform_3, window_bounds = array<i64: 860, 256>}, {pipeline_mode = #tpu.pipeline_mode<synchronous>, transform_indices = @transform_4, window_bounds = array<i64: 16, 150>}, {pipeline_mode = #tpu.pipeline_mode<synchronous>, transform_indices = @transform_5, window_bounds = array<i64: 16, 1>}, {pipeline_mode = #tpu.pipeline_mode<synchronous>, transform_indices = @transform_6, window_bounds = array<i64: 124, 400>}, {pipeline_mode = #tpu.pipeline_mode<synchronous>, transform_indices = @transform_7, window_bounds = array<i64: 16, 400>}, {pipeline_mode = #tpu.pipeline_mode<synchronous>, transform_indices = @transform_8, window_bounds = array<i64: 400, 120>}, {pipeline_mode = #tpu.pipeline_mode<synchronous>, transform_indices = @transform_9, window_bounds = array<i64: 1, 120>}, {pipeline_mode = #tpu.pipeline_mode<synchronous>, transform_indices = @transform_10, window_bounds = array<i64: 120, 84>}, {pipeline_mode = #tpu.pipeline_mode<synchronous>, transform_indices = @transform_11, window_bounds = array<i64: 1, 84>}, {pipeline_mode = #tpu.pipeline_mode<synchronous>, transform_indices = @transform_12, window_bounds = array<i64: 84, 10>}, {pipeline_mode = #tpu.pipeline_mode<synchronous>, transform_indices = @transform_13, window_bounds = array<i64: 1, 10>}, {transform_indices = @transform_14, window_bounds = array<i64: 1, 1, 10>}]} {
    %c0 = arith.constant 0 : index
    %c0_0 = arith.constant 0 : index
    %c0_1 = arith.constant 0 : index
    %0 = vector.load %arg1[%c0, %c0_0, %c0_1] : memref<1x3x1056xf32, #tpu.memory_space<vmem>>, vector<1x3x896xf32>
    %1 = vector.shape_cast %0 : vector<1x3x896xf32> to vector<3x896xf32>
    %c0_2 = arith.constant 0 : index
    %c0_3 = arith.constant 0 : index
    %2 = vector.load %arg16[%c0_2, %c0_3] : memref<75x896xf32, #tpu.memory_space<vmem>>, vector<3x896xf32>
    tpu.vector_store %arg16[%c0_2, %c0_3], %1 {strides = array<i32>} : memref<75x896xf32, #tpu.memory_space<vmem>>, vector<3x896xf32>,
    %c0_4 = arith.constant 0 : index
    %c0_5 = arith.constant 0 : index
    %c1 = arith.constant 1 : index
    %3 = vector.load %arg1[%c0_4, %c0_5, %c1] : memref<1x3x1056xf32, #tpu.memory_space<vmem>>, vector<1x3x896xf32>
    %4 = vector.shape_cast %3 : vector<1x3x896xf32> to vector<3x896xf32>
    %c3 = arith.constant 3 : index
    %c0_6 = arith.constant 0 : index
    %5 = vector.load %arg16[%c3, %c0_6] : memref<75x896xf32, #tpu.memory_space<vmem>>, vector<3x896xf32>
    tpu.vector_store %arg16[%c3, %c0_6], %4 {strides = array<i32>} : memref<75x896xf32, #tpu.memory_space<vmem>>, vector<3x896xf32>,
    %c0_7 = arith.constant 0 : index
    %c0_8 = arith.constant 0 : index
    %c2 = arith.constant 2 : index
    %6 = vector.load %arg1[%c0_7, %c0_8, %c2] : memref<1x3x1056xf32, #tpu.memory_space<vmem>>, vector<1x3x896xf32>
    %7 = vector.shape_cast %6 : vector<1x3x896xf32> to vector<3x896xf32>
    %c6 = arith.constant 6 : index
    %c0_9 = arith.constant 0 : index
    %8 = vector.load %arg16[%c6, %c0_9] : memref<75x896xf32, #tpu.memory_space<vmem>>, vector<3x896xf32>
    tpu.vector_store %arg16[%c6, %c0_9], %7 {strides = array<i32>} : memref<75x896xf32, #tpu.memory_space<vmem>>, vector<3x896xf32>,
    %c0_10 = arith.constant 0 : index
    %c0_11 = arith.constant 0 : index
    %c3_12 = arith.constant 3 : index
    %9 = vector.load %arg1[%c0_10, %c0_11, %c3_12] : memref<1x3x1056xf32, #tpu.memory_space<vmem>>, vector<1x3x896xf32>
    %10 = vector.shape_cast %9 : vector<1x3x896xf32> to vector<3x896xf32>
    %c9 = arith.constant 9 : index
    %c0_13 = arith.constant 0 : index
    %11 = vector.load %arg16[%c9, %c0_13] : memref<75x896xf32, #tpu.memory_space<vmem>>, vector<3x896xf32>
    tpu.vector_store %arg16[%c9, %c0_13], %10 {strides = array<i32>} : memref<75x896xf32, #tpu.memory_space<vmem>>, vector<3x896xf32>,
    %c0_14 = arith.constant 0 : index
    %c0_15 = arith.constant 0 : index
    %c4 = arith.constant 4 : index
    %12 = vector.load %arg1[%c0_14, %c0_15, %c4] : memref<1x3x1056xf32, #tpu.memory_space<vmem>>, vector<1x3x896xf32>
    %13 = vector.shape_cast %12 : vector<1x3x896xf32> to vector<3x896xf32>
    %c12 = arith.constant 12 : index
    %c0_16 = arith.constant 0 : index
    %14 = vector.load %arg16[%c12, %c0_16] : memref<75x896xf32, #tpu.memory_space<vmem>>, vector<3x896xf32>
    tpu.vector_store %arg16[%c12, %c0_16], %13 {strides = array<i32>} : memref<75x896xf32, #tpu.memory_space<vmem>>, vector<3x896xf32>,
    %c0_17 = arith.constant 0 : index
    %c0_18 = arith.constant 0 : index
    %c32 = arith.constant 32 : index
    %15 = vector.load %arg1[%c0_17, %c0_18, %c32] : memref<1x3x1056xf32, #tpu.memory_space<vmem>>, vector<1x3x896xf32>
    %16 = vector.shape_cast %15 : vector<1x3x896xf32> to vector<3x896xf32>
    %c15 = arith.constant 15 : index
    %c0_19 = arith.constant 0 : index
    %17 = vector.load %arg16[%c15, %c0_19] : memref<75x896xf32, #tpu.memory_space<vmem>>, vector<3x896xf32>
    tpu.vector_store %arg16[%c15, %c0_19], %16 {strides = array<i32>} : memref<75x896xf32, #tpu.memory_space<vmem>>, vector<3x896xf32>,
    %c0_20 = arith.constant 0 : index
    %c0_21 = arith.constant 0 : index
    %c33 = arith.constant 33 : index
    %18 = vector.load %arg1[%c0_20, %c0_21, %c33] : memref<1x3x1056xf32, #tpu.memory_space<vmem>>, vector<1x3x896xf32>
    %19 = vector.shape_cast %18 : vector<1x3x896xf32> to vector<3x896xf32>
    %c18 = arith.constant 18 : index
    %c0_22 = arith.constant 0 : index
    %20 = vector.load %arg16[%c18, %c0_22] : memref<75x896xf32, #tpu.memory_space<vmem>>, vector<3x896xf32>
    tpu.vector_store %arg16[%c18, %c0_22], %19 {strides = array<i32>} : memref<75x896xf32, #tpu.memory_space<vmem>>, vector<3x896xf32>,
    %c0_23 = arith.constant 0 : index
    %c0_24 = arith.constant 0 : index
    %c34 = arith.constant 34 : index
    %21 = vector.load %arg1[%c0_23, %c0_24, %c34] : memref<1x3x1056xf32, #tpu.memory_space<vmem>>, vector<1x3x896xf32>
    %22 = vector.shape_cast %21 : vector<1x3x896xf32> to vector<3x896xf32>
    %c21 = arith.constant 21 : index
    %c0_25 = arith.constant 0 : index
    %23 = vector.load %arg16[%c21, %c0_25] : memref<75x896xf32, #tpu.memory_space<vmem>>, vector<3x896xf32>
    tpu.vector_store %arg16[%c21, %c0_25], %22 {strides = array<i32>} : memref<75x896xf32, #tpu.memory_space<vmem>>, vector<3x896xf32>,
    %c0_26 = arith.constant 0 : index
    %c0_27 = arith.constant 0 : index
    %c35 = arith.constant 35 : index
    %24 = vector.load %arg1[%c0_26, %c0_27, %c35] : memref<1x3x1056xf32, #tpu.memory_space<vmem>>, vector<1x3x896xf32>
    %25 = vector.shape_cast %24 : vector<1x3x896xf32> to vector<3x896xf32>
    %c24 = arith.constant 24 : index
    %c0_28 = arith.constant 0 : index
    %26 = vector.load %arg16[%c24, %c0_28] : memref<75x896xf32, #tpu.memory_space<vmem>>, vector<3x896xf32>
    tpu.vector_store %arg16[%c24, %c0_28], %25 {strides = array<i32>} : memref<75x896xf32, #tpu.memory_space<vmem>>, vector<3x896xf32>,
    %c0_29 = arith.constant 0 : index
    %c0_30 = arith.constant 0 : index
    %c36 = arith.constant 36 : index
    %27 = vector.load %arg1[%c0_29, %c0_30, %c36] : memref<1x3x1056xf32, #tpu.memory_space<vmem>>, vector<1x3x896xf32>
    %28 = vector.shape_cast %27 : vector<1x3x896xf32> to vector<3x896xf32>
    %c27 = arith.constant 27 : index
    %c0_31 = arith.constant 0 : index
    %29 = vector.load %arg16[%c27, %c0_31] : memref<75x896xf32, #tpu.memory_space<vmem>>, vector<3x896xf32>
    tpu.vector_store %arg16[%c27, %c0_31], %28 {strides = array<i32>} : memref<75x896xf32, #tpu.memory_space<vmem>>, vector<3x896xf32>,
    %c0_32 = arith.constant 0 : index
    %c0_33 = arith.constant 0 : index
    %c64 = arith.constant 64 : index
    %30 = vector.load %arg1[%c0_32, %c0_33, %c64] : memref<1x3x1056xf32, #tpu.memory_space<vmem>>, vector<1x3x896xf32>
    %31 = vector.shape_cast %30 : vector<1x3x896xf32> to vector<3x896xf32>
    %c30 = arith.constant 30 : index
    %c0_34 = arith.constant 0 : index
    %32 = vector.load %arg16[%c30, %c0_34] : memref<75x896xf32, #tpu.memory_space<vmem>>, vector<3x896xf32>
    tpu.vector_store %arg16[%c30, %c0_34], %31 {strides = array<i32>} : memref<75x896xf32, #tpu.memory_space<vmem>>, vector<3x896xf32>,
    %c0_35 = arith.constant 0 : index
    %c0_36 = arith.constant 0 : index
    %c65 = arith.constant 65 : index
    %33 = vector.load %arg1[%c0_35, %c0_36, %c65] : memref<1x3x1056xf32, #tpu.memory_space<vmem>>, vector<1x3x896xf32>
    %34 = vector.shape_cast %33 : vector<1x3x896xf32> to vector<3x896xf32>
    %c33_37 = arith.constant 33 : index
    %c0_38 = arith.constant 0 : index
    %35 = vector.load %arg16[%c33_37, %c0_38] : memref<75x896xf32, #tpu.memory_space<vmem>>, vector<3x896xf32>
    tpu.vector_store %arg16[%c33_37, %c0_38], %34 {strides = array<i32>} : memref<75x896xf32, #tpu.memory_space<vmem>>, vector<3x896xf32>,
    %c0_39 = arith.constant 0 : index
    %c0_40 = arith.constant 0 : index
    %c66 = arith.constant 66 : index
    %36 = vector.load %arg1[%c0_39, %c0_40, %c66] : memref<1x3x1056xf32, #tpu.memory_space<vmem>>, vector<1x3x896xf32>
    %37 = vector.shape_cast %36 : vector<1x3x896xf32> to vector<3x896xf32>
    %c36_41 = arith.constant 36 : index
    %c0_42 = arith.constant 0 : index
    %38 = vector.load %arg16[%c36_41, %c0_42] : memref<75x896xf32, #tpu.memory_space<vmem>>, vector<3x896xf32>
    tpu.vector_store %arg16[%c36_41, %c0_42], %37 {strides = array<i32>} : memref<75x896xf32, #tpu.memory_space<vmem>>, vector<3x896xf32>,
    %c0_43 = arith.constant 0 : index
    %c0_44 = arith.constant 0 : index
    %c67 = arith.constant 67 : index
    %39 = vector.load %arg1[%c0_43, %c0_44, %c67] : memref<1x3x1056xf32, #tpu.memory_space<vmem>>, vector<1x3x896xf32>
    %40 = vector.shape_cast %39 : vector<1x3x896xf32> to vector<3x896xf32>
    %c39 = arith.constant 39 : index
    %c0_45 = arith.constant 0 : index
    %41 = vector.load %arg16[%c39, %c0_45] : memref<75x896xf32, #tpu.memory_space<vmem>>, vector<3x896xf32>
    tpu.vector_store %arg16[%c39, %c0_45], %40 {strides = array<i32>} : memref<75x896xf32, #tpu.memory_space<vmem>>, vector<3x896xf32>,
    %c0_46 = arith.constant 0 : index
    %c0_47 = arith.constant 0 : index
    %c68 = arith.constant 68 : index
    %42 = vector.load %arg1[%c0_46, %c0_47, %c68] : memref<1x3x1056xf32, #tpu.memory_space<vmem>>, vector<1x3x896xf32>
    %43 = vector.shape_cast %42 : vector<1x3x896xf32> to vector<3x896xf32>
    %c42 = arith.constant 42 : index
    %c0_48 = arith.constant 0 : index
    %44 = vector.load %arg16[%c42, %c0_48] : memref<75x896xf32, #tpu.memory_space<vmem>>, vector<3x896xf32>
    tpu.vector_store %arg16[%c42, %c0_48], %43 {strides = array<i32>} : memref<75x896xf32, #tpu.memory_space<vmem>>, vector<3x896xf32>,
    %c0_49 = arith.constant 0 : index
    %c0_50 = arith.constant 0 : index
    %c96 = arith.constant 96 : index
    %45 = vector.load %arg1[%c0_49, %c0_50, %c96] : memref<1x3x1056xf32, #tpu.memory_space<vmem>>, vector<1x3x896xf32>
    %46 = vector.shape_cast %45 : vector<1x3x896xf32> to vector<3x896xf32>
    %c45 = arith.constant 45 : index
    %c0_51 = arith.constant 0 : index
    %47 = vector.load %arg16[%c45, %c0_51] : memref<75x896xf32, #tpu.memory_space<vmem>>, vector<3x896xf32>
    tpu.vector_store %arg16[%c45, %c0_51], %46 {strides = array<i32>} : memref<75x896xf32, #tpu.memory_space<vmem>>, vector<3x896xf32>,
    %c0_52 = arith.constant 0 : index
    %c0_53 = arith.constant 0 : index
    %c97 = arith.constant 97 : index
    %48 = vector.load %arg1[%c0_52, %c0_53, %c97] : memref<1x3x1056xf32, #tpu.memory_space<vmem>>, vector<1x3x896xf32>
    %49 = vector.shape_cast %48 : vector<1x3x896xf32> to vector<3x896xf32>
    %c48 = arith.constant 48 : index
    %c0_54 = arith.constant 0 : index
    %50 = vector.load %arg16[%c48, %c0_54] : memref<75x896xf32, #tpu.memory_space<vmem>>, vector<3x896xf32>
    tpu.vector_store %arg16[%c48, %c0_54], %49 {strides = array<i32>} : memref<75x896xf32, #tpu.memory_space<vmem>>, vector<3x896xf32>,
    %c0_55 = arith.constant 0 : index
    %c0_56 = arith.constant 0 : index
    %c98 = arith.constant 98 : index
    %51 = vector.load %arg1[%c0_55, %c0_56, %c98] : memref<1x3x1056xf32, #tpu.memory_space<vmem>>, vector<1x3x896xf32>
    %52 = vector.shape_cast %51 : vector<1x3x896xf32> to vector<3x896xf32>
    %c51 = arith.constant 51 : index
    %c0_57 = arith.constant 0 : index
    %53 = vector.load %arg16[%c51, %c0_57] : memref<75x896xf32, #tpu.memory_space<vmem>>, vector<3x896xf32>
    tpu.vector_store %arg16[%c51, %c0_57], %52 {strides = array<i32>} : memref<75x896xf32, #tpu.memory_space<vmem>>, vector<3x896xf32>,
    %c0_58 = arith.constant 0 : index
    %c0_59 = arith.constant 0 : index
    %c99 = arith.constant 99 : index
    %54 = vector.load %arg1[%c0_58, %c0_59, %c99] : memref<1x3x1056xf32, #tpu.memory_space<vmem>>, vector<1x3x896xf32>
    %55 = vector.shape_cast %54 : vector<1x3x896xf32> to vector<3x896xf32>
    %c54 = arith.constant 54 : index
    %c0_60 = arith.constant 0 : index
    %56 = vector.load %arg16[%c54, %c0_60] : memref<75x896xf32, #tpu.memory_space<vmem>>, vector<3x896xf32>
    tpu.vector_store %arg16[%c54, %c0_60], %55 {strides = array<i32>} : memref<75x896xf32, #tpu.memory_space<vmem>>, vector<3x896xf32>,
    %c0_61 = arith.constant 0 : index
    %c0_62 = arith.constant 0 : index
    %c100 = arith.constant 100 : index
    %57 = vector.load %arg1[%c0_61, %c0_62, %c100] : memref<1x3x1056xf32, #tpu.memory_space<vmem>>, vector<1x3x896xf32>
    %58 = vector.shape_cast %57 : vector<1x3x896xf32> to vector<3x896xf32>
    %c57 = arith.constant 57 : index
    %c0_63 = arith.constant 0 : index
    %59 = vector.load %arg16[%c57, %c0_63] : memref<75x896xf32, #tpu.memory_space<vmem>>, vector<3x896xf32>
    tpu.vector_store %arg16[%c57, %c0_63], %58 {strides = array<i32>} : memref<75x896xf32, #tpu.memory_space<vmem>>, vector<3x896xf32>,
    %c0_64 = arith.constant 0 : index
    %c0_65 = arith.constant 0 : index
    %c128 = arith.constant 128 : index
    %60 = vector.load %arg1[%c0_64, %c0_65, %c128] : memref<1x3x1056xf32, #tpu.memory_space<vmem>>, vector<1x3x896xf32>
    %61 = vector.shape_cast %60 : vector<1x3x896xf32> to vector<3x896xf32>
    %c60 = arith.constant 60 : index
    %c0_66 = arith.constant 0 : index
    %62 = vector.load %arg16[%c60, %c0_66] : memref<75x896xf32, #tpu.memory_space<vmem>>, vector<3x896xf32>
    tpu.vector_store %arg16[%c60, %c0_66], %61 {strides = array<i32>} : memref<75x896xf32, #tpu.memory_space<vmem>>, vector<3x896xf32>,
    %c0_67 = arith.constant 0 : index
    %c0_68 = arith.constant 0 : index
    %c129 = arith.constant 129 : index
    %63 = vector.load %arg1[%c0_67, %c0_68, %c129] : memref<1x3x1056xf32, #tpu.memory_space<vmem>>, vector<1x3x896xf32>
    %64 = vector.shape_cast %63 : vector<1x3x896xf32> to vector<3x896xf32>
    %c63 = arith.constant 63 : index
    %c0_69 = arith.constant 0 : index
    %65 = vector.load %arg16[%c63, %c0_69] : memref<75x896xf32, #tpu.memory_space<vmem>>, vector<3x896xf32>
    tpu.vector_store %arg16[%c63, %c0_69], %64 {strides = array<i32>} : memref<75x896xf32, #tpu.memory_space<vmem>>, vector<3x896xf32>,
    %c0_70 = arith.constant 0 : index
    %c0_71 = arith.constant 0 : index
    %c130 = arith.constant 130 : index
    %66 = vector.load %arg1[%c0_70, %c0_71, %c130] : memref<1x3x1056xf32, #tpu.memory_space<vmem>>, vector<1x3x896xf32>
    %67 = vector.shape_cast %66 : vector<1x3x896xf32> to vector<3x896xf32>
    %c66_72 = arith.constant 66 : index
    %c0_73 = arith.constant 0 : index
    %68 = vector.load %arg16[%c66_72, %c0_73] : memref<75x896xf32, #tpu.memory_space<vmem>>, vector<3x896xf32>
    tpu.vector_store %arg16[%c66_72, %c0_73], %67 {strides = array<i32>} : memref<75x896xf32, #tpu.memory_space<vmem>>, vector<3x896xf32>,
    %c0_74 = arith.constant 0 : index
    %c0_75 = arith.constant 0 : index
    %c131 = arith.constant 131 : index
    %69 = vector.load %arg1[%c0_74, %c0_75, %c131] : memref<1x3x1056xf32, #tpu.memory_space<vmem>>, vector<1x3x896xf32>
    %70 = vector.shape_cast %69 : vector<1x3x896xf32> to vector<3x896xf32>
    %c69 = arith.constant 69 : index
    %c0_76 = arith.constant 0 : index
    %71 = vector.load %arg16[%c69, %c0_76] : memref<75x896xf32, #tpu.memory_space<vmem>>, vector<3x896xf32>
    tpu.vector_store %arg16[%c69, %c0_76], %70 {strides = array<i32>} : memref<75x896xf32, #tpu.memory_space<vmem>>, vector<3x896xf32>,
    %c0_77 = arith.constant 0 : index
    %c0_78 = arith.constant 0 : index
    %c132 = arith.constant 132 : index
    %72 = vector.load %arg1[%c0_77, %c0_78, %c132] : memref<1x3x1056xf32, #tpu.memory_space<vmem>>, vector<1x3x896xf32>
    %73 = vector.shape_cast %72 : vector<1x3x896xf32> to vector<3x896xf32>
    %c72 = arith.constant 72 : index
    %c0_79 = arith.constant 0 : index
    %74 = vector.load %arg16[%c72, %c0_79] : memref<75x896xf32, #tpu.memory_space<vmem>>, vector<3x896xf32>
    tpu.vector_store %arg16[%c72, %c0_79], %73 {strides = array<i32>} : memref<75x896xf32, #tpu.memory_space<vmem>>, vector<3x896xf32>,
    %c0_80 = arith.constant 0 : index
    %c0_81 = arith.constant 0 : index
    %75 = vector.load %arg2[%c0_80, %c0_81] : memref<6x75xf32, #tpu.memory_space<vmem>>, vector<6x75xf32>
    %c0_82 = arith.constant 0 : index
    %c0_83 = arith.constant 0 : index
    %76 = vector.load %arg16[%c0_82, %c0_83] : memref<75x896xf32, #tpu.memory_space<vmem>>, vector<75x896xf32>
    %cst = arith.constant dense<0.000000e+00> : vector<6x896xf32>
    %77 = tpu.matmul %75, %76, %cst {dimension_numbers = #tpu.dot_dimension_numbers<[1], [0], [0], [1], [0, 0, 1, 1], [], []>} : vector<6x75xf32>, vector<75x896xf32>, vector<6x896xf32> -> vector<6x896xf32>
    %c0_84 = arith.constant 0 : index
    %c0_85 = arith.constant 0 : index
    %78 = vector.load %arg3[%c0_84, %c0_85] : memref<6x1xf32, #tpu.memory_space<vmem>>, vector<6x1xf32>
    %79 = vector.broadcast %78 : vector<6x1xf32> to vector<6x896xf32>
    %80 = arith.addf %77, %79 : vector<6x896xf32>
    %cst_86 = arith.constant 0.000000e+00 : f32
    %81 = vector.broadcast %cst_86 : f32 to vector<6x896xf32>
    %82 = arith.maximumf %80, %81 : vector<6x896xf32>
    %c0_87 = arith.constant 0 : index
    %c0_88 = arith.constant 0 : index
    %83 = vector.load %arg17[%c0_87, %c0_88] : memref<6x896xf32, #tpu.memory_space<vmem>>, vector<6x896xf32>
    tpu.vector_store %arg17[%c0_87, %c0_88], %82 {strides = array<i32>} : memref<6x896xf32, #tpu.memory_space<vmem>>, vector<6x896xf32>,
    %c0_89 = arith.constant 0 : index
    %c0_90 = arith.constant 0 : index
    %84 = vector.load %arg17[%c0_89, %c0_90] : memref<6x896xf32, #tpu.memory_space<vmem>>, vector<6x860xf32>
    %c0_91 = arith.constant 0 : index
    %c1_92 = arith.constant 1 : index
    %85 = vector.load %arg17[%c0_91, %c1_92] : memref<6x896xf32, #tpu.memory_space<vmem>>, vector<6x860xf32>
    %86 = arith.maximumf %84, %85 : vector<6x860xf32>
    %c0_93 = arith.constant 0 : index
    %c32_94 = arith.constant 32 : index
    %87 = vector.load %arg17[%c0_93, %c32_94] : memref<6x896xf32, #tpu.memory_space<vmem>>, vector<6x860xf32>
    %c0_95 = arith.constant 0 : index
    %c33_96 = arith.constant 33 : index
    %88 = vector.load %arg17[%c0_95, %c33_96] : memref<6x896xf32, #tpu.memory_space<vmem>>, vector<6x860xf32>
    %89 = arith.maximumf %87, %88 : vector<6x860xf32>
    %90 = arith.maximumf %86, %89 : vector<6x860xf32>
    %c0_97 = arith.constant 0 : index
    %c0_98 = arith.constant 0 : index
    %91 = vector.load %arg4[%c0_97, %c0_98] : memref<860x256xf32, #tpu.memory_space<vmem>>, vector<860x256xf32>
    %cst_99 = arith.constant dense<0.000000e+00> : vector<6x256xf32>
    %92 = tpu.matmul %90, %91, %cst_99 {dimension_numbers = #tpu.dot_dimension_numbers<[1], [0], [0], [1], [0, 0, 1, 1], [], []>} : vector<6x860xf32>, vector<860x256xf32>, vector<6x256xf32> -> vector<6x256xf32>
    %c0_100 = arith.constant 0 : index
    %c0_101 = arith.constant 0 : index
    %93 = vector.load %arg18[%c0_100, %c0_101] : memref<6x256xf32, #tpu.memory_space<vmem>>, vector<6x256xf32>
    tpu.vector_store %arg18[%c0_100, %c0_101], %92 {strides = array<i32>} : memref<6x256xf32, #tpu.memory_space<vmem>>, vector<6x256xf32>,
    %c0_102 = arith.constant 0 : index
    %c0_103 = arith.constant 0 : index
    %94 = vector.load %arg18[%c0_102, %c0_103] : memref<6x256xf32, #tpu.memory_space<vmem>>, vector<6x140xf32>
    %c0_104 = arith.constant 0 : index
    %c0_105 = arith.constant 0 : index
    %95 = vector.load %arg19[%c0_104, %c0_105] : memref<150x140xf32, #tpu.memory_space<vmem>>, vector<6x140xf32>
    tpu.vector_store %arg19[%c0_104, %c0_105], %94 {strides = array<i32>} : memref<150x140xf32, #tpu.memory_space<vmem>>, vector<6x140xf32>,
    %c0_106 = arith.constant 0 : index
    %c1_107 = arith.constant 1 : index
    %96 = vector.load %arg18[%c0_106, %c1_107] : memref<6x256xf32, #tpu.memory_space<vmem>>, vector<6x140xf32>
    %c6_108 = arith.constant 6 : index
    %c0_109 = arith.constant 0 : index
    %97 = vector.load %arg19[%c6_108, %c0_109] : memref<150x140xf32, #tpu.memory_space<vmem>>, vector<6x140xf32>
    tpu.vector_store %arg19[%c6_108, %c0_109], %96 {strides = array<i32>} : memref<150x140xf32, #tpu.memory_space<vmem>>, vector<6x140xf32>,
    %c0_110 = arith.constant 0 : index
    %c2_111 = arith.constant 2 : index
    %98 = vector.load %arg18[%c0_110, %c2_111] : memref<6x256xf32, #tpu.memory_space<vmem>>, vector<6x140xf32>
    %c12_112 = arith.constant 12 : index
    %c0_113 = arith.constant 0 : index
    %99 = vector.load %arg19[%c12_112, %c0_113] : memref<150x140xf32, #tpu.memory_space<vmem>>, vector<6x140xf32>
    tpu.vector_store %arg19[%c12_112, %c0_113], %98 {strides = array<i32>} : memref<150x140xf32, #tpu.memory_space<vmem>>, vector<6x140xf32>,
    %c0_114 = arith.constant 0 : index
    %c3_115 = arith.constant 3 : index
    %100 = vector.load %arg18[%c0_114, %c3_115] : memref<6x256xf32, #tpu.memory_space<vmem>>, vector<6x140xf32>
    %c18_116 = arith.constant 18 : index
    %c0_117 = arith.constant 0 : index
    %101 = vector.load %arg19[%c18_116, %c0_117] : memref<150x140xf32, #tpu.memory_space<vmem>>, vector<6x140xf32>
    tpu.vector_store %arg19[%c18_116, %c0_117], %100 {strides = array<i32>} : memref<150x140xf32, #tpu.memory_space<vmem>>, vector<6x140xf32>,
    %c0_118 = arith.constant 0 : index
    %c4_119 = arith.constant 4 : index
    %102 = vector.load %arg18[%c0_118, %c4_119] : memref<6x256xf32, #tpu.memory_space<vmem>>, vector<6x140xf32>
    %c24_120 = arith.constant 24 : index
    %c0_121 = arith.constant 0 : index
    %103 = vector.load %arg19[%c24_120, %c0_121] : memref<150x140xf32, #tpu.memory_space<vmem>>, vector<6x140xf32>
    tpu.vector_store %arg19[%c24_120, %c0_121], %102 {strides = array<i32>} : memref<150x140xf32, #tpu.memory_space<vmem>>, vector<6x140xf32>,
    %c0_122 = arith.constant 0 : index
    %c14 = arith.constant 14 : index
    %104 = vector.load %arg18[%c0_122, %c14] : memref<6x256xf32, #tpu.memory_space<vmem>>, vector<6x140xf32>
    %c30_123 = arith.constant 30 : index
    %c0_124 = arith.constant 0 : index
    %105 = vector.load %arg19[%c30_123, %c0_124] : memref<150x140xf32, #tpu.memory_space<vmem>>, vector<6x140xf32>
    tpu.vector_store %arg19[%c30_123, %c0_124], %104 {strides = array<i32>} : memref<150x140xf32, #tpu.memory_space<vmem>>, vector<6x140xf32>,
    %c0_125 = arith.constant 0 : index
    %c15_126 = arith.constant 15 : index
    %106 = vector.load %arg18[%c0_125, %c15_126] : memref<6x256xf32, #tpu.memory_space<vmem>>, vector<6x140xf32>
    %c36_127 = arith.constant 36 : index
    %c0_128 = arith.constant 0 : index
    %107 = vector.load %arg19[%c36_127, %c0_128] : memref<150x140xf32, #tpu.memory_space<vmem>>, vector<6x140xf32>
    tpu.vector_store %arg19[%c36_127, %c0_128], %106 {strides = array<i32>} : memref<150x140xf32, #tpu.memory_space<vmem>>, vector<6x140xf32>,
    %c0_129 = arith.constant 0 : index
    %c16 = arith.constant 16 : index
    %108 = vector.load %arg18[%c0_129, %c16] : memref<6x256xf32, #tpu.memory_space<vmem>>, vector<6x140xf32>
    %c42_130 = arith.constant 42 : index
    %c0_131 = arith.constant 0 : index
    %109 = vector.load %arg19[%c42_130, %c0_131] : memref<150x140xf32, #tpu.memory_space<vmem>>, vector<6x140xf32>
    tpu.vector_store %arg19[%c42_130, %c0_131], %108 {strides = array<i32>} : memref<150x140xf32, #tpu.memory_space<vmem>>, vector<6x140xf32>,
    %c0_132 = arith.constant 0 : index
    %c17 = arith.constant 17 : index
    %110 = vector.load %arg18[%c0_132, %c17] : memref<6x256xf32, #tpu.memory_space<vmem>>, vector<6x140xf32>
    %c48_133 = arith.constant 48 : index
    %c0_134 = arith.constant 0 : index
    %111 = vector.load %arg19[%c48_133, %c0_134] : memref<150x140xf32, #tpu.memory_space<vmem>>, vector<6x140xf32>
    tpu.vector_store %arg19[%c48_133, %c0_134], %110 {strides = array<i32>} : memref<150x140xf32, #tpu.memory_space<vmem>>, vector<6x140xf32>,
    %c0_135 = arith.constant 0 : index
    %c18_136 = arith.constant 18 : index
    %112 = vector.load %arg18[%c0_135, %c18_136] : memref<6x256xf32, #tpu.memory_space<vmem>>, vector<6x140xf32>
    %c54_137 = arith.constant 54 : index
    %c0_138 = arith.constant 0 : index
    %113 = vector.load %arg19[%c54_137, %c0_138] : memref<150x140xf32, #tpu.memory_space<vmem>>, vector<6x140xf32>
    tpu.vector_store %arg19[%c54_137, %c0_138], %112 {strides = array<i32>} : memref<150x140xf32, #tpu.memory_space<vmem>>, vector<6x140xf32>,
    %c0_139 = arith.constant 0 : index
    %c28 = arith.constant 28 : index
    %114 = vector.load %arg18[%c0_139, %c28] : memref<6x256xf32, #tpu.memory_space<vmem>>, vector<6x140xf32>
    %c60_140 = arith.constant 60 : index
    %c0_141 = arith.constant 0 : index
    %115 = vector.load %arg19[%c60_140, %c0_141] : memref<150x140xf32, #tpu.memory_space<vmem>>, vector<6x140xf32>
    tpu.vector_store %arg19[%c60_140, %c0_141], %114 {strides = array<i32>} : memref<150x140xf32, #tpu.memory_space<vmem>>, vector<6x140xf32>,
    %c0_142 = arith.constant 0 : index
    %c29 = arith.constant 29 : index
    %116 = vector.load %arg18[%c0_142, %c29] : memref<6x256xf32, #tpu.memory_space<vmem>>, vector<6x140xf32>
    %c66_143 = arith.constant 66 : index
    %c0_144 = arith.constant 0 : index
    %117 = vector.load %arg19[%c66_143, %c0_144] : memref<150x140xf32, #tpu.memory_space<vmem>>, vector<6x140xf32>
    tpu.vector_store %arg19[%c66_143, %c0_144], %116 {strides = array<i32>} : memref<150x140xf32, #tpu.memory_space<vmem>>, vector<6x140xf32>,
    %c0_145 = arith.constant 0 : index
    %c30_146 = arith.constant 30 : index
    %118 = vector.load %arg18[%c0_145, %c30_146] : memref<6x256xf32, #tpu.memory_space<vmem>>, vector<6x140xf32>
    %c72_147 = arith.constant 72 : index
    %c0_148 = arith.constant 0 : index
    %119 = vector.load %arg19[%c72_147, %c0_148] : memref<150x140xf32, #tpu.memory_space<vmem>>, vector<6x140xf32>
    tpu.vector_store %arg19[%c72_147, %c0_148], %118 {strides = array<i32>} : memref<150x140xf32, #tpu.memory_space<vmem>>, vector<6x140xf32>,
    %c0_149 = arith.constant 0 : index
    %c31 = arith.constant 31 : index
    %120 = vector.load %arg18[%c0_149, %c31] : memref<6x256xf32, #tpu.memory_space<vmem>>, vector<6x140xf32>
    %c78 = arith.constant 78 : index
    %c0_150 = arith.constant 0 : index
    %121 = vector.load %arg19[%c78, %c0_150] : memref<150x140xf32, #tpu.memory_space<vmem>>, vector<6x140xf32>
    tpu.vector_store %arg19[%c78, %c0_150], %120 {strides = array<i32>} : memref<150x140xf32, #tpu.memory_space<vmem>>, vector<6x140xf32>,
    %c0_151 = arith.constant 0 : index
    %c32_152 = arith.constant 32 : index
    %122 = vector.load %arg18[%c0_151, %c32_152] : memref<6x256xf32, #tpu.memory_space<vmem>>, vector<6x140xf32>
    %c84 = arith.constant 84 : index
    %c0_153 = arith.constant 0 : index
    %123 = vector.load %arg19[%c84, %c0_153] : memref<150x140xf32, #tpu.memory_space<vmem>>, vector<6x140xf32>
    tpu.vector_store %arg19[%c84, %c0_153], %122 {strides = array<i32>} : memref<150x140xf32, #tpu.memory_space<vmem>>, vector<6x140xf32>,
    %c0_154 = arith.constant 0 : index
    %c42_155 = arith.constant 42 : index
    %124 = vector.load %arg18[%c0_154, %c42_155] : memref<6x256xf32, #tpu.memory_space<vmem>>, vector<6x140xf32>
    %c90 = arith.constant 90 : index
    %c0_156 = arith.constant 0 : index
    %125 = vector.load %arg19[%c90, %c0_156] : memref<150x140xf32, #tpu.memory_space<vmem>>, vector<6x140xf32>
    tpu.vector_store %arg19[%c90, %c0_156], %124 {strides = array<i32>} : memref<150x140xf32, #tpu.memory_space<vmem>>, vector<6x140xf32>,
    %c0_157 = arith.constant 0 : index
    %c43 = arith.constant 43 : index
    %126 = vector.load %arg18[%c0_157, %c43] : memref<6x256xf32, #tpu.memory_space<vmem>>, vector<6x140xf32>
    %c96_158 = arith.constant 96 : index
    %c0_159 = arith.constant 0 : index
    %127 = vector.load %arg19[%c96_158, %c0_159] : memref<150x140xf32, #tpu.memory_space<vmem>>, vector<6x140xf32>
    tpu.vector_store %arg19[%c96_158, %c0_159], %126 {strides = array<i32>} : memref<150x140xf32, #tpu.memory_space<vmem>>, vector<6x140xf32>,
    %c0_160 = arith.constant 0 : index
    %c44 = arith.constant 44 : index
    %128 = vector.load %arg18[%c0_160, %c44] : memref<6x256xf32, #tpu.memory_space<vmem>>, vector<6x140xf32>
    %c102 = arith.constant 102 : index
    %c0_161 = arith.constant 0 : index
    %129 = vector.load %arg19[%c102, %c0_161] : memref<150x140xf32, #tpu.memory_space<vmem>>, vector<6x140xf32>
    tpu.vector_store %arg19[%c102, %c0_161], %128 {strides = array<i32>} : memref<150x140xf32, #tpu.memory_space<vmem>>, vector<6x140xf32>,
    %c0_162 = arith.constant 0 : index
    %c45_163 = arith.constant 45 : index
    %130 = vector.load %arg18[%c0_162, %c45_163] : memref<6x256xf32, #tpu.memory_space<vmem>>, vector<6x140xf32>
    %c108 = arith.constant 108 : index
    %c0_164 = arith.constant 0 : index
    %131 = vector.load %arg19[%c108, %c0_164] : memref<150x140xf32, #tpu.memory_space<vmem>>, vector<6x140xf32>
    tpu.vector_store %arg19[%c108, %c0_164], %130 {strides = array<i32>} : memref<150x140xf32, #tpu.memory_space<vmem>>, vector<6x140xf32>,
    %c0_165 = arith.constant 0 : index
    %c46 = arith.constant 46 : index
    %132 = vector.load %arg18[%c0_165, %c46] : memref<6x256xf32, #tpu.memory_space<vmem>>, vector<6x140xf32>
    %c114 = arith.constant 114 : index
    %c0_166 = arith.constant 0 : index
    %133 = vector.load %arg19[%c114, %c0_166] : memref<150x140xf32, #tpu.memory_space<vmem>>, vector<6x140xf32>
    tpu.vector_store %arg19[%c114, %c0_166], %132 {strides = array<i32>} : memref<150x140xf32, #tpu.memory_space<vmem>>, vector<6x140xf32>,
    %c0_167 = arith.constant 0 : index
    %c56 = arith.constant 56 : index
    %134 = vector.load %arg18[%c0_167, %c56] : memref<6x256xf32, #tpu.memory_space<vmem>>, vector<6x140xf32>
    %c120 = arith.constant 120 : index
    %c0_168 = arith.constant 0 : index
    %135 = vector.load %arg19[%c120, %c0_168] : memref<150x140xf32, #tpu.memory_space<vmem>>, vector<6x140xf32>
    tpu.vector_store %arg19[%c120, %c0_168], %134 {strides = array<i32>} : memref<150x140xf32, #tpu.memory_space<vmem>>, vector<6x140xf32>,
    %c0_169 = arith.constant 0 : index
    %c57_170 = arith.constant 57 : index
    %136 = vector.load %arg18[%c0_169, %c57_170] : memref<6x256xf32, #tpu.memory_space<vmem>>, vector<6x140xf32>
    %c126 = arith.constant 126 : index
    %c0_171 = arith.constant 0 : index
    %137 = vector.load %arg19[%c126, %c0_171] : memref<150x140xf32, #tpu.memory_space<vmem>>, vector<6x140xf32>
    tpu.vector_store %arg19[%c126, %c0_171], %136 {strides = array<i32>} : memref<150x140xf32, #tpu.memory_space<vmem>>, vector<6x140xf32>,
    %c0_172 = arith.constant 0 : index
    %c58 = arith.constant 58 : index
    %138 = vector.load %arg18[%c0_172, %c58] : memref<6x256xf32, #tpu.memory_space<vmem>>, vector<6x140xf32>
    %c132_173 = arith.constant 132 : index
    %c0_174 = arith.constant 0 : index
    %139 = vector.load %arg19[%c132_173, %c0_174] : memref<150x140xf32, #tpu.memory_space<vmem>>, vector<6x140xf32>
    tpu.vector_store %arg19[%c132_173, %c0_174], %138 {strides = array<i32>} : memref<150x140xf32, #tpu.memory_space<vmem>>, vector<6x140xf32>,
    %c0_175 = arith.constant 0 : index
    %c59 = arith.constant 59 : index
    %140 = vector.load %arg18[%c0_175, %c59] : memref<6x256xf32, #tpu.memory_space<vmem>>, vector<6x140xf32>
    %c138 = arith.constant 138 : index
    %c0_176 = arith.constant 0 : index
    %141 = vector.load %arg19[%c138, %c0_176] : memref<150x140xf32, #tpu.memory_space<vmem>>, vector<6x140xf32>
    tpu.vector_store %arg19[%c138, %c0_176], %140 {strides = array<i32>} : memref<150x140xf32, #tpu.memory_space<vmem>>, vector<6x140xf32>,
    %c0_177 = arith.constant 0 : index
    %c60_178 = arith.constant 60 : index
    %142 = vector.load %arg18[%c0_177, %c60_178] : memref<6x256xf32, #tpu.memory_space<vmem>>, vector<6x140xf32>
    %c144 = arith.constant 144 : index
    %c0_179 = arith.constant 0 : index
    %143 = vector.load %arg19[%c144, %c0_179] : memref<150x140xf32, #tpu.memory_space<vmem>>, vector<6x140xf32>
    tpu.vector_store %arg19[%c144, %c0_179], %142 {strides = array<i32>} : memref<150x140xf32, #tpu.memory_space<vmem>>, vector<6x140xf32>,
    %c0_180 = arith.constant 0 : index
    %c0_181 = arith.constant 0 : index
    %144 = vector.load %arg5[%c0_180, %c0_181] : memref<16x150xf32, #tpu.memory_space<vmem>>, vector<16x150xf32>
    %c0_182 = arith.constant 0 : index
    %c0_183 = arith.constant 0 : index
    %145 = vector.load %arg19[%c0_182, %c0_183] : memref<150x140xf32, #tpu.memory_space<vmem>>, vector<150x140xf32>
    %cst_184 = arith.constant dense<0.000000e+00> : vector<16x140xf32>
    %146 = tpu.matmul %144, %145, %cst_184 {dimension_numbers = #tpu.dot_dimension_numbers<[1], [0], [0], [1], [0, 0, 1, 1], [], []>} : vector<16x150xf32>, vector<150x140xf32>, vector<16x140xf32> -> vector<16x140xf32>
    %c0_185 = arith.constant 0 : index
    %c0_186 = arith.constant 0 : index
    %147 = vector.load %arg6[%c0_185, %c0_186] : memref<16x1xf32, #tpu.memory_space<vmem>>, vector<16x1xf32>
    %148 = vector.broadcast %147 : vector<16x1xf32> to vector<16x140xf32>
    %149 = arith.addf %146, %148 : vector<16x140xf32>
    %cst_187 = arith.constant 0.000000e+00 : f32
    %150 = vector.broadcast %cst_187 : f32 to vector<16x140xf32>
    %151 = arith.maximumf %149, %150 : vector<16x140xf32>
    %c0_188 = arith.constant 0 : index
    %c0_189 = arith.constant 0 : index
    %152 = vector.load %arg20[%c0_188, %c0_189] : memref<16x140xf32, #tpu.memory_space<vmem>>, vector<16x140xf32>
    tpu.vector_store %arg20[%c0_188, %c0_189], %151 {strides = array<i32>} : memref<16x140xf32, #tpu.memory_space<vmem>>, vector<16x140xf32>,
    %c0_190 = arith.constant 0 : index
    %c0_191 = arith.constant 0 : index
    %153 = vector.load %arg20[%c0_190, %c0_191] : memref<16x140xf32, #tpu.memory_space<vmem>>, vector<16x124xf32>
    %c0_192 = arith.constant 0 : index
    %c1_193 = arith.constant 1 : index
    %154 = vector.load %arg20[%c0_192, %c1_193] : memref<16x140xf32, #tpu.memory_space<vmem>>, vector<16x124xf32>
    %155 = arith.maximumf %153, %154 : vector<16x124xf32>
    %c0_194 = arith.constant 0 : index
    %c14_195 = arith.constant 14 : index
    %156 = vector.load %arg20[%c0_194, %c14_195] : memref<16x140xf32, #tpu.memory_space<vmem>>, vector<16x124xf32>
    %c0_196 = arith.constant 0 : index
    %c15_197 = arith.constant 15 : index
    %157 = vector.load %arg20[%c0_196, %c15_197] : memref<16x140xf32, #tpu.memory_space<vmem>>, vector<16x124xf32>
    %158 = arith.maximumf %156, %157 : vector<16x124xf32>
    %159 = arith.maximumf %155, %158 : vector<16x124xf32>
    %c0_198 = arith.constant 0 : index
    %c0_199 = arith.constant 0 : index
    %160 = vector.load %arg7[%c0_198, %c0_199] : memref<124x400xf32, #tpu.memory_space<vmem>>, vector<124x400xf32>
    %cst_200 = arith.constant dense<0.000000e+00> : vector<16x400xf32>
    %161 = tpu.matmul %159, %160, %cst_200 {dimension_numbers = #tpu.dot_dimension_numbers<[1], [0], [0], [1], [0, 0, 1, 1], [], []>} : vector<16x124xf32>, vector<124x400xf32>, vector<16x400xf32> -> vector<16x400xf32>
    %c0_201 = arith.constant 0 : index
    %c0_202 = arith.constant 0 : index
    %162 = vector.load %arg8[%c0_201, %c0_202] : memref<16x400xf32, #tpu.memory_space<vmem>>, vector<16x400xf32>
    %163 = arith.mulf %161, %162 : vector<16x400xf32>
    %cst_203 = arith.constant dense<0.000000e+00> : vector<400xf32>
    %164 = vector.multi_reduction <add>, %163, %cst_203 [0] : vector<16x400xf32> to vector<400xf32>
    %165 = vector.shape_cast %164 : vector<400xf32> to vector<1x400xf32>
    %c0_204 = arith.constant 0 : index
    %c0_205 = arith.constant 0 : index
    %166 = vector.load %arg9[%c0_204, %c0_205] : memref<400x120xf32, #tpu.memory_space<vmem>>, vector<400x120xf32>
    %cst_206 = arith.constant dense<0.000000e+00> : vector<1x120xf32>
    %167 = tpu.matmul %165, %166, %cst_206 {dimension_numbers = #tpu.dot_dimension_numbers<[1], [0], [0], [1], [0, 0, 1, 1], [], []>} : vector<1x400xf32>, vector<400x120xf32>, vector<1x120xf32> -> vector<1x120xf32>
    %c0_207 = arith.constant 0 : index
    %c0_208 = arith.constant 0 : index
    %168 = vector.load %arg10[%c0_207, %c0_208] : memref<1x120xf32, #tpu.memory_space<vmem>>, vector<1x120xf32>
    %169 = arith.addf %167, %168 : vector<1x120xf32>
    %cst_209 = arith.constant 0.000000e+00 : f32
    %170 = vector.broadcast %cst_209 : f32 to vector<1x120xf32>
    %171 = arith.maximumf %169, %170 : vector<1x120xf32>
    %c0_210 = arith.constant 0 : index
    %c0_211 = arith.constant 0 : index
    %172 = vector.load %arg11[%c0_210, %c0_211] : memref<120x84xf32, #tpu.memory_space<vmem>>, vector<120x84xf32>
    %cst_212 = arith.constant dense<0.000000e+00> : vector<1x84xf32>
    %173 = tpu.matmul %171, %172, %cst_212 {dimension_numbers = #tpu.dot_dimension_numbers<[1], [0], [0], [1], [0, 0, 1, 1], [], []>} : vector<1x120xf32>, vector<120x84xf32>, vector<1x84xf32> -> vector<1x84xf32>
    %c0_213 = arith.constant 0 : index
    %c0_214 = arith.constant 0 : index
    %174 = vector.load %arg12[%c0_213, %c0_214] : memref<1x84xf32, #tpu.memory_space<vmem>>, vector<1x84xf32>
    %175 = arith.addf %173, %174 : vector<1x84xf32>
    %cst_215 = arith.constant 0.000000e+00 : f32
    %176 = vector.broadcast %cst_215 : f32 to vector<1x84xf32>
    %177 = arith.maximumf %175, %176 : vector<1x84xf32>
    %c0_216 = arith.constant 0 : index
    %c0_217 = arith.constant 0 : index
    %178 = vector.load %arg13[%c0_216, %c0_217] : memref<84x10xf32, #tpu.memory_space<vmem>>, vector<84x10xf32>
    %cst_218 = arith.constant dense<0.000000e+00> : vector<1x10xf32>
    %179 = tpu.matmul %177, %178, %cst_218 {dimension_numbers = #tpu.dot_dimension_numbers<[1], [0], [0], [1], [0, 0, 1, 1], [], []>} : vector<1x84xf32>, vector<84x10xf32>, vector<1x10xf32> -> vector<1x10xf32>
    %c0_219 = arith.constant 0 : index
    %c0_220 = arith.constant 0 : index
    %180 = vector.load %arg14[%c0_219, %c0_220] : memref<1x10xf32, #tpu.memory_space<vmem>>, vector<1x10xf32>
    %181 = arith.addf %179, %180 : vector<1x10xf32>
    %c0_221 = arith.constant 0 : index
    %c0_222 = arith.constant 0 : index
    %c0_223 = arith.constant 0 : index
    %182 = vector.load %arg15[%c0_221, %c0_222, %c0_223] : memref<1x1x10xf32, #tpu.memory_space<vmem>>, vector<1x1x10xf32>
    %183 = vector.shape_cast %182 : vector<1x1x10xf32> to vector<1x10xf32>
    %184 = vector.shape_cast %181 : vector<1x10xf32> to vector<1x1x10xf32>
    tpu.vector_store %arg15[%c0_221, %c0_222, %c0_223], %184 {strides = array<i32>} : memref<1x1x10xf32, #tpu.memory_space<vmem>>, vector<1x1x10xf32>,
    return
  }
  func.func @transform_0(%arg0: i32) -> (i32, i32, i32) {
    %c0_i32 = arith.constant 0 : i32
    %c0_i32_0 = arith.constant 0 : i32
    %c0_i32_1 = arith.constant 0 : i32
    return %arg0, %c0_i32, %c0_i32_0 : i32, i32, i32
  }
  func.func @transform_1(%arg0: i32) -> (i32, i32) {
    %c0_i32 = arith.constant 0 : i32
    %c0_i32_0 = arith.constant 0 : i32
    %c0_i32_1 = arith.constant 0 : i32
    return %c0_i32, %c0_i32_0 : i32, i32
  }
  func.func @transform_2(%arg0: i32) -> (i32, i32) {
    %c0_i32 = arith.constant 0 : i32
    %c0_i32_0 = arith.constant 0 : i32
    %c0_i32_1 = arith.constant 0 : i32
    return %c0_i32, %c0_i32_0 : i32, i32
  }
  func.func @transform_3(%arg0: i32) -> (i32, i32) {
    %c0_i32 = arith.constant 0 : i32
    %c0_i32_0 = arith.constant 0 : i32
    %c0_i32_1 = arith.constant 0 : i32
    return %c0_i32, %c0_i32_0 : i32, i32
  }
  func.func @transform_4(%arg0: i32) -> (i32, i32) {
    %c0_i32 = arith.constant 0 : i32
    %c0_i32_0 = arith.constant 0 : i32
    %c0_i32_1 = arith.constant 0 : i32
    return %c0_i32, %c0_i32_0 : i32, i32
  }
  func.func @transform_5(%arg0: i32) -> (i32, i32) {
    %c0_i32 = arith.constant 0 : i32
    %c0_i32_0 = arith.constant 0 : i32
    %c0_i32_1 = arith.constant 0 : i32
    return %c0_i32, %c0_i32_0 : i32, i32
  }
  func.func @transform_6(%arg0: i32) -> (i32, i32) {
    %c0_i32 = arith.constant 0 : i32
    %c0_i32_0 = arith.constant 0 : i32
    %c0_i32_1 = arith.constant 0 : i32
    return %c0_i32, %c0_i32_0 : i32, i32
  }
  func.func @transform_7(%arg0: i32) -> (i32, i32) {
    %c0_i32 = arith.constant 0 : i32
    %c0_i32_0 = arith.constant 0 : i32
    %c0_i32_1 = arith.constant 0 : i32
    return %c0_i32, %c0_i32_0 : i32, i32
  }
  func.func @transform_8(%arg0: i32) -> (i32, i32) {
    %c0_i32 = arith.constant 0 : i32
    %c0_i32_0 = arith.constant 0 : i32
    %c0_i32_1 = arith.constant 0 : i32
    return %c0_i32, %c0_i32_0 : i32, i32
  }
  func.func @transform_9(%arg0: i32) -> (i32, i32) {
    %c0_i32 = arith.constant 0 : i32
    %c0_i32_0 = arith.constant 0 : i32
    %c0_i32_1 = arith.constant 0 : i32
    return %c0_i32, %c0_i32_0 : i32, i32
  }
  func.func @transform_10(%arg0: i32) -> (i32, i32) {
    %c0_i32 = arith.constant 0 : i32
    %c0_i32_0 = arith.constant 0 : i32
    %c0_i32_1 = arith.constant 0 : i32
    return %c0_i32, %c0_i32_0 : i32, i32
  }
  func.func @transform_11(%arg0: i32) -> (i32, i32) {
    %c0_i32 = arith.constant 0 : i32
    %c0_i32_0 = arith.constant 0 : i32
    %c0_i32_1 = arith.constant 0 : i32
    return %c0_i32, %c0_i32_0 : i32, i32
  }
  func.func @transform_12(%arg0: i32) -> (i32, i32) {
    %c0_i32 = arith.constant 0 : i32
    %c0_i32_0 = arith.constant 0 : i32
    %c0_i32_1 = arith.constant 0 : i32
    return %c0_i32, %c0_i32_0 : i32, i32
  }
  func.func @transform_13(%arg0: i32) -> (i32, i32) {
    %c0_i32 = arith.constant 0 : i32
    %c0_i32_0 = arith.constant 0 : i32
    %c0_i32_1 = arith.constant 0 : i32
    return %c0_i32, %c0_i32_0 : i32, i32
  }
  func.func @transform_14(%arg0: i32) -> (i32, i32, i32) {
    %c0_i32 = arith.constant 0 : i32
    %c0_i32_0 = arith.constant 0 : i32
    %c0_i32_1 = arith.constant 0 : i32
    return %arg0, %c0_i32, %c0_i32_0 : i32, i32, i32
  }
}

</mosaic_0001>

<bundles_post_ra>
// kernel: net_forward.1
= control target key start
LH: loop header
LB: loop body
LE: loop exit
PB: predicated region body
PF: predicated region fallthrough
CT: control target
= control target key end

     0   :  { %s7225_s0 = inlined_call_operand.vmem [shape: f32[2,3,1056], index: 0, kind: input, shape index: {}]   ;;  %s7226_s1 = inlined_call_operand.vmem [shape: f32[6,75], index: 1, kind: input, shape index: {}]   ;;  %s7227_s2 = inlined_call_operand.vmem [shape: f32[6,1], index: 2, kind: input, shape index: {}]   ;;  %s7228_s3 = inlined_call_operand.hbm [shape: f32[860,256], index: 3, kind: input, shape index: {}]   ;;  %s7229_s4 = inlined_call_operand.vmem [shape: f32[16,150], index: 4, kind: input, shape index: {}]   ;;  %s7230_s5 = inlined_call_operand.vmem [shape: f32[16,1], index: 5, kind: input, shape index: {}]   ;;  %s7231_s6 = inlined_call_operand.vmem [shape: f32[124,400], index: 6, kind: input, shape index: {}]   ;;  %s7232_s7 = inlined_call_operand.vmem [shape: f32[16,400], index: 7, kind: input, shape index: {}]   ;;  %s7233_s8 = inlined_call_operand.vmem [shape: f32[400,120], index: 8, kind: input, shape index: {}]   ;;  %s7234_s9 = inlined_call_operand.vmem [shape: f32[1,120], index: 9, kind: input, shape index: {}]   ;;  %s7235_s10 = inlined_call_operand.vmem [shape: f32[120,84], index: 10, kind: input, shape index: {}]   ;;  %s7236_s11 = inlined_call_operand.vmem [shape: f32[1,84], index: 11, kind: input, shape index: {}]   ;;  %s7237_s12 = inlined_call_operand.vmem [shape: f32[84,10], index: 12, kind: input, shape index: {}]   ;;  %s7238_s13 = inlined_call_operand.vmem [shape: f32[1,10], index: 13, kind: input, shape index: {}]   ;;  %s7239_s14 = inlined_call_operand.hbm [shape: f32[2,1,10], index: 14, kind: output, shape index: {}]  }
   0x1   :  { %7301 = sst [smem:[#allocation20_spill]] %s7225_s0 }
   0x2   :  { %7302 = sst [smem:[#allocation21_spill]] %s7228_s3 }
   0x3   :  { %7303 = sst [smem:[#allocation22_spill]] %s7236_s11 }
   0x4   :  { %7304 = sst [smem:[#allocation23_spill]] %s7238_s13 }
   0x5   :  { %7305 = sst [smem:[#allocation24_spill]] %s7239_s14 }
   0x6   :  { %19 = vsyncpa [#allocation8], 0 }
   0x7   :  { %20 = vsyncpa [#allocation9], 0 }
   0x8   :  { %22 = vsyncpa [#allocation9 + $0x1], 0  ;;  %s5344_s29 = smov 0   ;;  %s5346_s30 = smov 0  }
   0x9   :  { %s5348_s15 = smov 0   ;;  %s5350_s16 = smov 0  }
   0xa LB: > { %7306 = sst [smem:[#allocation13_spill]] %s5208_s29  ;;  %s5365_s17 = sadd.s32 4294967295, %s5220_s16   ;;  %s5220_s16 = sphi %s5350_s16, %s7377_s16   ;;  %s5216_s15 = sphi %s5348_s15, %s7379_s15   ;;  %s5212_s30 = sphi %s5346_s30, %s7381_s30   ;;  %s5208_s29 = sphi %s5344_s29, %s7380_s29  }
   0xb   : > { %7307 = sst [smem:[#allocation14_spill]] %s5216_s15  ;;  %s4198_s18 = sadd.s32 4294967294, %s5220_s16  }
   0xc   : > { %7308 = sst [smem:[#allocation15_spill]] %s5220_s16  ;;  %s5369_s19 = sadd.s32 1, %s5220_s16  }
   0xd   : > { %7309 = sst [smem:[#allocation16_spill]] %s5369_s19  ;;  %s334_s20 = sadd.s32 1, %s5216_s15 }
   0xe   : > { %s331_s21 = ssub.s32 %s5220_s16, %s5369_s19  ;;  %p344_p0 = scmp.ne.s32.totalorder %s5216_s15, %s5212_s30 }
   0xf   : > { %p332_p1 = scmp.eq.s32.totalorder %s331_s21, 0  ;;  %p345_p2 = scmp.eq.s32.totalorder %s5365_s17, 1 }
  0x10   : > { %p350_p3 = scmp.ne.s32.totalorder %s5212_s30, %s5208_s29  ;;  %p351_p4 = scmp.eq.s32.totalorder %s4198_s18, 1 }
  0x11   : > { %s5380_s22 = scalar_select %p332_p1, %s5216_s15, %s334_s20  }
  0x12   : > { %p5382_p5 = por %p345_p2, %p344_p0  ;;  %p5386_p6 = por %p351_p4, %p350_p3 }
  0x13   : > { %7310 = sst [smem:[#allocation17_spill]] %s5380_s22  ;;  %p4199_p7 = scmp.ge.s32.totalorder %s5220_s16, 1 }
  0x14   : > { %s7311_s23 = scalar_select %p5382_p5, 1, 0 }
  0x15   : > { %s7313_s24 = scalar_select %p5386_p6, 1, 0 }
  0x16   : > { %7312 = sst [smem:[#allocation18_spill]] %s7311_s23  ;;  %p358_p8 = scmp.lt.s32.totalorder %s5220_s16, 3 }
  0x17   : > { %7314 = sst [smem:[#allocation19_spill]] %s7313_s24  ;;  %p7244_p9 = scmp.eq.s32.totalorder %s5365_s17, 0 }
  0x18   : > { %p5393_p10 = pnand %p4199_p7, %p358_p8  ;;  %s5222_s26 = smov [#allocation7]  }
  0x19   : > { %s376_s27 = sshll.u32 %s5222_s26, 4  ;;  %s7317_s3 = sld [smem:[#allocation21_spill]]  ;;  %s377_s27 = int_to_ptr.vmem [resolvable:$true] %s376_s27 }
  0x1a   : > { %s7315_s25 = scalar_select %p5393_p10, 1, 0 }
  0x1b   : > { %p4905_p11 = pneg %p5393_p10 }
  0x1d   : > { %p5401_p12 = pnand %p7244_p9, %p4905_p11 }
  0x1f   : > { %s5126_s21 = scalar_lea.hbm %s7317_s3, 27648  ;;  %p5128_p0 = pneg %p5401_p12 }
  0x20   : > { %p5127_p13 = scmp.ne.s32.totalorder %s7317_s3, %s5126_s21  ;;  %p5133_p3 = scmp.lt.u32.totalorder %s5126_s21, %s7317_s3 }
  0x22   : > { %p5129_p1 = pnand %p5128_p0, %p5127_p13 }
  0x24   : > { %p5130_p2 = pneg %p5129_p1 }
  0x26   : > { %p5135_p4 = pnand %p5133_p3, %p5130_p2 }
  0x28   : > { %5138 = shalt.err (!%p5135_p4)
}
  0x29   : > { %s5139_s24 = scalar_lea.vmem %s377_s27, 27648  ;;  %p5147_p9 = scmp.lt.s32.totalorder %s377_s27, %s377_s27 }
  0x2a   : > { %p5140_p7 = scmp.ne.s32.totalorder %s377_s27, %s5139_s24  ;;  %p5148_p6 = scmp.lt.s32.totalorder %s5139_s24, %s5139_s24 }
  0x2c   : > { %p5142_p8 = pnand %p5140_p7, %p5128_p0  ;;  %p5149_p5 = por %p5148_p6, %p5147_p9 }
  0x2e   : > { %p5143_p11 = pneg %p5142_p8 }
  0x30   : > { %p5150_p10 = pnand %p5149_p5, %p5143_p11 }
  0x32   : > { %5153 = shalt.err (!%p5150_p10)
}
  0x33   : > { %s5223_s15 = smov 256   ;;  %s5224_s22 = smov 16  }
  0x34   : > { %4908 = dma.hbm_to_vmem [thread:$0]  (!%p5401_p12), %s7317_s3, 27648, %s377_s27, [#allocation8], %s5223_s15, %s5223_s15, %s5224_s22  }
  0x35   : > { %p7318_p13 = scmp.ne.s32.totalorder %s7315_s25, 0 }
  0x36   : > { %p7319_p1 = scmp.eq.s32.totalorder (!%p7318_p13), %s5365_s17, 0 }
  0x37   : > { %430 = sbr.rel (%p7318_p13) target bundleno = 2949 (0xb85), region = 76 }
  0x3e   : > { %5199 = dma.done.wait (%p7319_p1), [#allocation8], 27648   ;;  %p7320_p0 = pmov %p7319_p1 }
  0x3f   : > { %p475_p5 = scmp.lt.s32.totalorder %s5365_s17, 1  ;;  %s7321_s0 = sld [smem:[#allocation20_spill]]  ;;  %vm536_vm0 = vcmask 1039360   ;;  %vm594_vm1 = vcmask 1031168   ;;  %vm659_vm2 = vcmask 1022976   ;;  %vm709_vm3 = vcmask 1014784  }
  0x40   : > { %5201 = vsyncadd (%p7320_p0), [#allocation8], 4294939648  ;;  %s7273_s25 = smov 127   ;;  %s7271_s27 = smov 126   ;;  %vm767_vm4 = vcmask 785408   ;;  %vm832_vm5 = vcmask 777216  }
  0x41   : > { %s476_s19 = scalar_select %p475_p5, %s5365_s17, 1  ;;  %vm890_vm6 = vcmask 769024   ;;  %vm940_vm7 = vcmask 760832   ;;  %vm998_vm8 = vcmask 752640   ;;  %vm7298_vm9 = vcmask 523264  }
  0x42   : > { %s7265_s15 = smov 125   ;;  %s7269_s22 = smov 124   ;;  %vm7299_vm10 = vcmask 515072   ;;  %vm7300_vm11 = vcmask 506880   ;;  %vm7284_vm12 = vcmask 498688   ;;  %vm7281_vm13 = vcmask 490496  }
  0x43   : > { %s4898_s24 = smul.u32 36, %s476_s19  ;;  %s7267_s18 = smov 96   ;;  %vm7277_vm14 = vcmask 261120   ;;  %vm1402_vm15 = vcmask 252928  }
  0x44   : > { %s7255_s20 = smov 95   ;;  %s7253_s19 = smov 94  }
  0x45   : > { %s5432_s26 = scalar_lea.vmem %s7321_s0, %s4898_s24  ;;  %s7247_s24 = smov 93  }
  0x46   : > { %v502_v0 = vld [vmem:[%s5432_s26 + $0x10] sm:$0x77]  ;;  %v501_v1 = vld [vmem:[%s5432_s26 + $0x8] sm:$0x77]  ;;  %v5438_v5 = vld [vmem:[%s5432_s26] sm:$0x77] }
  0x47   : > { %v559_v2 = vld [vmem:[%s5432_s26 + $0x8] sm:$0x77]  ;;  %v516_v3 = vrot.slane %v502_v0, 5  ;;  %v514_v4 = vrot.slane %v501_v1, 5  ;;  %v508_v6 = vcombine.high %v5438_v5, %v5438_v5  ;;  %v5443_v7 = vld [vmem:[%s5432_s26] sm:$0x77]  ;;  %v509_v12 = vcombine.high %v501_v1, %v501_v1 }
  0x48   : > { %v572_v8 = vrot.slane %v559_v2, 2  ;;  %v566_v9 = vcombine.high %v5443_v7, %v5443_v7  ;;  %v560_v11 = vld [vmem:[%s5432_s26 + $0x10] sm:$0x77]  ;;  %v567_v15 = vcombine.high %v559_v2, %v559_v2  ;;  %v623_v16 = vld [vmem:[%s5432_s26] sm:$0x77]  ;;  %v570_v45 = vrot.slane %v5443_v7, 2 }
  0x49   : > { %528 = vrot.lane.b32.xlu1 %v516_v3, %s7273_s25  ;;  %524 = vrot.lane.b32.xlu0 %v514_v4, %s7273_s25  ;;  %v513_v10 = vrot.slane %v508_v6, 5  ;;  %v574_v13 = vrot.slane %v560_v11, 2  ;;  %v515_v17 = vrot.slane %v509_v12, 5  ;;  %v631_v19 = vcombine.high %v623_v16, %v623_v16  ;;  %v624_v20 = vld [vmem:[%s5432_s26 + $0x8] sm:$0x77]  ;;  %s7251_s21 = smov 92  }
  0x4a   : > { %v571_v14 = vrot.slane %v566_v9, 2  ;;  %v573_v18 = vrot.slane %v567_v15, 2  ;;  %v637_v21 = vrot.slane %v624_v20, 7  ;;  %v632_v23 = vcombine.high %v624_v20, %v624_v20  ;;  %v625_v24 = vld [vmem:[%s5432_s26 + $0x10] sm:$0x77]  ;;  %s7249_s28 = smov 64  }
  0x4b   : > { %v636_v22 = vrot.slane %v631_v19, 7  ;;  %v639_v25 = vrot.slane %v625_v24, 7  ;;  %v682_v27 = vld [vmem:[%s5432_s26 + $0x8] sm:$0x77]  ;;  %v681_v29 = vld [vmem:[%s5432_s26] sm:$0x77] }
  0x4c   : > { %v638_v26 = vrot.slane %v632_v23, 7  ;;  %v690_v28 = vcombine.low %v682_v27, %v682_v27  ;;  %v683_v30 = vld [vmem:[%s5432_s26 + $0x10] sm:$0x77]  ;;  %v731_v31 = vld [vmem:[%s5432_s26] sm:$0x77]  ;;  %v512_v46 = vrot.slane %v5438_v5, 5  ;;  %v689_v48 = vcombine.low %v681_v29, %v681_v29 }
  0x4d   : > { %582 = vrot.lane.b32.xlu1 %v572_v8, %s7271_s27  ;;  %522 = vrot.lane.b32.xlu0 %v513_v10, %s7273_s25  ;;  %v691_v32 = vcombine.low %v683_v30, %v683_v30  ;;  %v739_v33 = vcombine.high %v731_v31, %v731_v31  ;;  %v732_v34 = vld [vmem:[%s5432_s26 + $0x8] sm:$0x77]  ;;  %v480_v38 = vld [vmem:[%s5432_s26] sm:$0x77]  ;;  %v635_v49 = vrot.slane %v623_v16, 7  ;;  %v743_v53 = vrot.slane %v731_v31, 1 }
  0x4e   : > { %v745_v35 = vrot.slane %v732_v34, 1  ;;  %v740_v37 = vcombine.high %v732_v34, %v732_v34  ;;  %v733_v39 = vld [vmem:[%s5432_s26 + $0x10] sm:$0x77]  ;;  %v487_v40 = vcombine.high %v480_v38, %v480_v38  ;;  %493 = vst [vmem:[#allocation2] sm:$0x7] %v480_v38  ;;  %s7332_s0 = smov 31  }
  0x4f   : > { %v744_v36 = vrot.slane %v739_v33, 1  ;;  %v481_v41 = vld [vmem:[%s5432_s26 + $0x8] sm:$0x77]  ;;  %v747_v43 = vrot.slane %v733_v39, 1  ;;  %v5482_v47 = vld [vmem:[%s5432_s26] sm:$0x77] }
  0x50   : > { %v488_v42 = vcombine.high %v481_v41, %v481_v41  ;;  %495 = vst [vmem:[#allocation2 + $0x10] sm:$0x7] %v481_v41  ;;  %494 = vst [vmem:[#allocation2 + $0x8] sm:$0x7] %v487_v40  ;;  %v746_v44 = vrot.slane %v740_v37, 1  ;;  %v804_v50 = vcombine.high %v5482_v47, %v5482_v47  ;;  %s7333_s3 = smov 29  }
  0x51   : > { %586 = vrot.lane.b32.xlu1 %v574_v13, %s7271_s27  ;;  %580 = vrot.lane.b32.xlu0 %v571_v14, %s7271_s27  ;;  %v797_v51 = vld [vmem:[%s5432_s26 + $0x8] sm:$0x77]  ;;  %v5492_v55 = vld [vmem:[%s5432_s26] sm:$0x77]  ;;  %s7334_s29 = smov 28   ;;  %s7335_s16 = smov 127  }
  0x52   : > { %496 = vst [vmem:[#allocation2 + $0x18] sm:$0x7] %v488_v42  ;;  %v809_v52 = vrot.slane %v804_v50, 6  ;;  %v805_v54 = vcombine.high %v797_v51, %v797_v51  ;;  %v810_v57 = vrot.slane %v797_v51, 6  ;;  %v862_v58 = vcombine.high %v5492_v55, %v5492_v55  ;;  %v5499_v59 = vld [vmem:[%s5432_s26 + $0x10] sm:$0x77] }
  0x53   : > { %v855_v60 = vld [vmem:[%s5432_s26 + $0x8] sm:$0x77]  ;;  %v812_v62 = vrot.slane %v5499_v59, 6  ;;  %v912_v2 = vld [vmem:[%s5432_s26] sm:$0x77]  ;;  %s7336_s14 = smov 126  }
  0x54   : > { %v811_v56 = vrot.slane %v805_v54, 6  ;;  %v867_v61 = vrot.slane %v862_v58, 3  ;;  %v863_v63 = vcombine.high %v855_v60, %v855_v60  ;;  %v868_v1 = vrot.slane %v855_v60, 3  ;;  %v5509_v3 = vld [vmem:[%s5432_s26 + $0x10] sm:$0x77]  ;;  %s7337_s13 = smov 125  }
  0x55   : > { %526 = vrot.lane.b32.xlu1 %v515_v17, %s7273_s25  ;;  %584 = vrot.lane.b32.xlu0 %v573_v18, %s7271_s27  ;;  %v920_v4 = vcombine.high %v912_v2, %v912_v2  ;;  %v870_v5 = vrot.slane %v5509_v3, 3  ;;  %v913_v6 = vld [vmem:[%s5432_s26 + $0x8] sm:$0x77]  ;;  %v962_v7 = vld [vmem:[%s5432_s26] sm:$0x77]  ;;  %s7338_s23 = smov 124  }
  0x56   : > { %v869_v0 = vrot.slane %v863_v63, 3  ;;  %v921_v8 = vcombine.high %v913_v6, %v913_v6  ;;  %v970_v9 = vcombine.high %v962_v7, %v962_v7  ;;  %v963_v10 = vld [vmem:[%s5432_s26 + $0x8] sm:$0x77]  ;;  %v5522_v13 = vld [vmem:[%s5432_s26 + $0x10] sm:$0x77]  ;;  %v974_v31 = vrot.slane %v962_v7, 5 }
  0x57   : > { %v971_v12 = vcombine.high %v963_v10, %v963_v10  ;;  %v1020_v14 = vld [vmem:[%s5432_s26] sm:$0x77]  ;;  %v976_v16 = vrot.slane %v963_v10, 5  ;;  %v5529_v18 = vld [vmem:[%s5432_s26 + $0x10] sm:$0x77]  ;;  %s7339_s11 = smov 96  }
  0x58   : > { %v975_v11 = vrot.slane %v970_v9, 5  ;;  %v1028_v17 = vcombine.high %v1020_v14, %v1020_v14  ;;  %v1021_v19 = vld [vmem:[%s5432_s26 + $0x8] sm:$0x77]  ;;  %v1032_v30 = vrot.slane %v1020_v14, 2  ;;  %v5558_v37 = vld [vmem:[%s5432_s26 + $0x10] sm:$0x77] }
  0x59   : > { %647 = vrot.lane.b32.xlu1 %v637_v21, %s7265_s15  ;;  %645 = vrot.lane.b32.xlu0 %v636_v22, %s7265_s15  ;;  %v977_v15 = vrot.slane %v971_v12, 5  ;;  %v978_v21 = vrot.slane %v5529_v18, 5  ;;  %v1029_v22 = vcombine.high %v1021_v19, %v1021_v19  ;;  %v1034_v24 = vrot.slane %v1021_v19, 2  ;;  %v1086_v33 = vld [vmem:[%s5432_s26 + $0x8] sm:$0x77] }
  0x5a   : > { %v1033_v20 = vrot.slane %v1028_v17, 2  ;;  %v1099_v34 = vrot.slane %v1086_v33, 7  ;;  %v1101_v38 = vrot.slane %v5558_v37, 7  ;;  %v1144_v40 = vld [vmem:[%s5432_s26 + $0x8] sm:$0x77] }
  0x5b   : > { %v1035_v23 = vrot.slane %v1029_v22, 2  ;;  %v1152_v41 = vcombine.low %v1144_v40, %v1144_v40  ;;  %v5567_v42 = vld [vmem:[%s5432_s26] sm:$0x77]  ;;  %v5582_v51 = vld [vmem:[%s5432_s26 + $0x10] sm:$0x77] }
  0x5c   : > { %v1259_v58 = vld [vmem:[%s5432_s26 + $0x8] sm:$0x77] }
  0x5d   : > { %651 = vrot.lane.b32.xlu1 %v639_v25, %s7265_s15  ;;  %649 = vrot.lane.b32.xlu0 %v638_v26, %s7265_s15  ;;  %v5538_v25 = vld [vmem:[%s5432_s26 + $0x10] sm:$0x77]  ;;  %v808_v26 = vrot.slane %v5482_v47, 6  ;;  %v1194_v47 = vld [vmem:[%s5432_s26 + $0x8] sm:$0x77]  ;;  %v1272_v63 = vrot.slane %v1259_v58, 6 }
  0x5e   : > { %v1202_v50 = vcombine.high %v1194_v47, %v1194_v47 }
  0x61   : > { %697 = vrot.lane.b32.xlu1 %v690_v28, %s7269_s22  ;;  %695 = vrot.lane.b32.xlu0 %v681_v29, %s7269_s22  ;;  %v866_v28 = vrot.slane %v5492_v55, 3  ;;  %v5548_v29 = vld [vmem:[%s5432_s26] sm:$0x77]  ;;  %v1209_v55 = vrot.slane %v5582_v51, 1 }
  0x65   : > { %701 = vrot.lane.b32.xlu1 %v691_v32, %s7269_s22  ;;  %699 = vrot.lane.b32.xlu0 %v682_v27, %s7269_s22  ;;  %v1036_v27 = vrot.slane %v5538_v25, 2  ;;  %v1093_v32 = vcombine.high %v5548_v29, %v5548_v29 }
  0x69   : > { %755 = vrot.lane.b32.xlu1 %v745_v35, %s7267_s18  ;;  %753 = vrot.lane.b32.xlu0 %v744_v36, %s7267_s18  ;;  %v1098_v35 = vrot.slane %v1093_v32, 7  ;;  %v1094_v36 = vcombine.high %v1086_v33, %v1086_v33 }
  0x6b   : > { %v1100_v39 = vrot.slane %v1094_v36, 7  ;;  %v1097_v36 = vrot.slane %v5548_v29, 7 }
  0x6d   : > { %759 = vrot.lane.b32.xlu1 %v747_v43, %s7267_s18  ;;  %757 = vrot.lane.b32.xlu0 %v746_v44, %s7267_s18  ;;  %v1145_v43 = vld [vmem:[%s5432_s26 + $0x10] sm:$0x77]  ;;  %v5571_v44 = vld [vmem:[%s5432_s26] sm:$0x77] }
  0x71   : > { %578 = vrot.lane.b32.xlu1 %v570_v45, %s7271_s27  ;;  %520 = vrot.lane.b32.xlu0 %v512_v46, %s7273_s25  ;;  %v1153_v45 = vcombine.low %v1145_v43, %v1145_v43  ;;  %v1201_v46 = vcombine.high %v5571_v44, %v5571_v44  ;;  %v5656_v43 = vld [vmem:[%s5432_s26] sm:$0x77] }
  0x75   : > { %693 = vrot.lane.b32.xlu1 %v689_v48, %s7269_s22  ;;  %643 = vrot.lane.b32.xlu0 %v635_v49, %s7265_s15  ;;  %v1207_v48 = vrot.slane %v1194_v47, 1  ;;  %v1206_v49 = vrot.slane %v1201_v46, 1 }
  0x79   : > { %818 = vrot.lane.b32.xlu1 %v809_v52, %s7255_s20  ;;  %751 = vrot.lane.b32.xlu0 %v743_v53, %s7267_s18  ;;  %v5585_v52 = vld [vmem:[%s5432_s26] sm:$0x77] }
  0x7d   : > { %822 = vrot.lane.b32.xlu1 %v811_v56, %s7255_s20  ;;  %820 = vrot.lane.b32.xlu0 %v810_v57, %s7255_s20  ;;  %v1208_v56 = vrot.slane %v1202_v50, 1  ;;  %v1266_v57 = vcombine.high %v5585_v52, %v5585_v52  ;;  %v5670_v50 = vld [vmem:[%s5432_s26] sm:$0x77] }
  0x81   : > { %876 = vrot.lane.b32.xlu1 %v867_v61, %s7253_s19  ;;  %824 = vrot.lane.b32.xlu0 %v812_v62, %s7255_s20 }
  0x85   : > { %880 = vrot.lane.b32.xlu1 %v869_v0, %s7253_s19  ;;  %878 = vrot.lane.b32.xlu0 %v868_v1, %s7253_s19  ;;  %v1271_v0 = vrot.slane %v1266_v57, 6  ;;  %v1267_v1 = vcombine.high %v1259_v58, %v1259_v58  ;;  %v1432_v57 = vcombine.high %v5670_v50, %v5670_v50  ;;  %v1425_v58 = vld [vmem:[%s5432_s26 + $0x8] sm:$0x77] }
  0x87   : > { %v1273_v9 = vrot.slane %v1267_v1, 6  ;;  %v1437_v1 = vrot.slane %v1432_v57, 5 }
  0x89   : > { %926 = vrot.lane.b32.xlu1 %v920_v4, %s7247_s24  ;;  %882 = vrot.lane.b32.xlu0 %v870_v5, %s7253_s19  ;;  %v5605_v4 = vld [vmem:[%s5432_s26] sm:$0x77] }
  0x8a   : > { %v1324_v10 = vcombine.high %v5605_v4, %v5605_v4 }
  0x8d   : > { %930 = vrot.lane.b32.xlu1 %v921_v8, %s7247_s24  ;;  %928 = vrot.lane.b32.xlu0 %v913_v6, %s7247_s24 }
  0x91   : > { %984 = vrot.lane.b32.xlu1 %v975_v11, %s7251_s21  ;;  %932 = vrot.lane.b32.xlu0 %v5522_v13, %s7247_s24  ;;  %v1317_v11 = vld [vmem:[%s5432_s26 + $0x8] sm:$0x77] }
  0x92   : > { %v1325_v22 = vcombine.high %v1317_v11, %v1317_v11 }
  0x95   : > { %988 = vrot.lane.b32.xlu1 %v977_v15, %s7251_s21  ;;  %986 = vrot.lane.b32.xlu0 %v976_v16, %s7251_s21 }
  0x99   : > { %1042 = vrot.lane.b32.xlu1 %v1033_v20, %s7249_s28  ;;  %990 = vrot.lane.b32.xlu0 %v978_v21, %s7251_s21  ;;  %v1330_v20 = vrot.slane %v1317_v11, 3  ;;  %v1329_v21 = vrot.slane %v1324_v10, 3 }
  0x9d   : > { %1046 = vrot.lane.b32.xlu1 %v1035_v23, %s7249_s28  ;;  %1044 = vrot.lane.b32.xlu0 %v1034_v24, %s7249_s28  ;;  %v5628_v23 = vld [vmem:[%s5432_s26 + $0x10] sm:$0x77] }
  0xa1   : > { %816 = vrot.lane.b32.xlu1 %v808_v26, %s7255_s20  ;;  %1048 = vrot.lane.b32.xlu0 %v1036_v27, %s7249_s28  ;;  %s7259_s20 = smov 32  }
  0xa5   : > { %924 = vrot.lane.b32.xlu1 %v912_v2, %s7247_s24  ;;  %874 = vrot.lane.b32.xlu0 %v866_v28, %s7253_s19  ;;  %s7278_s24 = smov 63   ;;  %v5602_v2 = vld [vmem:[%s5432_s26 + $0x10] sm:$0x77]  ;;  %s7261_s19 = smov 60   ;;  %v1332_v28 = vrot.slane %v5628_v23, 3 }
  0xa6   : > { %v1274_v8 = vrot.slane %v5602_v2, 6 }
  0xa9   : > { %1040 = vrot.lane.b32.xlu1 %v1032_v30, %s7249_s28  ;;  %982 = vrot.lane.b32.xlu0 %v974_v31, %s7251_s21  ;;  %s7257_s28 = smov 62   ;;  %s7263_s21 = smov 61   ;;  %v1331_v30 = vrot.slane %v1325_v22, 3 }
  0xad   : > { %1109 = vrot.lane.b32.xlu1 %v1099_v34, %s7278_s24  ;;  %1107 = vrot.lane.b32.xlu0 %v1098_v35, %s7278_s24  ;;  %v1151_v35 = vcombine.low %v5567_v42, %v5567_v42 }
  0xb1   : > { %1113 = vrot.lane.b32.xlu1 %v1101_v38, %s7278_s24  ;;  %1111 = vrot.lane.b32.xlu0 %v1100_v39, %s7278_s24 }
  0xb5   : > { %1159 = vrot.lane.b32.xlu1 %v1152_v41, %s7257_s28  ;;  %1157 = vrot.lane.b32.xlu0 %v5567_v42, %s7257_s28  ;;  %v1270_v41 = vrot.slane %v5585_v52, 6  ;;  %v1205_v42 = vrot.slane %v5571_v44, 1  ;;  %v1382_v44 = vcombine.high %v5656_v43, %v5656_v43 }
  0xb9   : > { %1163 = vrot.lane.b32.xlu1 %v1153_v45, %s7257_s28  ;;  %1161 = vrot.lane.b32.xlu0 %v1144_v40, %s7257_s28 }
  0xbb   : > { %v5587_v53 = vpop.permute.xlu1 %528  ;;  %v525_v54 = vpop.permute.xlu0 %524 }
  0xbd   : > { %1217 = vrot.lane.b32.xlu1 %v1207_v48, %s7263_s21  ;;  %1215 = vrot.lane.b32.xlu0 %v1206_v49, %s7263_s21  ;;  %v1328_v48 = vrot.slane %v5605_v4, 3  ;;  %v1375_v49 = vld [vmem:[%s5432_s26 + $0x8] sm:$0x77]  ;;  %v1433_v4 = vcombine.high %v1425_v58, %v1425_v58 }
  0xbf   : > { %v583_v60 = vpop.permute.xlu1 %582  ;;  %v5595_v61 = vpop.permute.xlu0 %522 }
  0xc0   : > { %v538_v62 = vsel %vm536_vm0, %v5595_v61, %v525_v54 }
  0xc1   : > { %552 = vst [vmem:[#allocation2 + $0x8] sm:$0x38] %v538_v62  ;;  %1221 = vrot.lane.b32.xlu1 %v1209_v55, %s7263_s21  ;;  %1219 = vrot.lane.b32.xlu0 %v1208_v56, %s7263_s21  ;;  %v1383_v56 = vcombine.high %v1375_v49, %v1375_v49 }
  0xc3   : > { %v5607_v5 = vpop.permute.xlu1 %586  ;;  %v5609_v6 = vpop.permute.xlu0 %580 }
  0xc4   : > { %v596_v7 = vsel %vm594_vm1, %v5609_v6, %v583_v60 }
  0xc5   : > { %610 = vst [vmem:[#allocation2 + $0x40] ss:$-52 sps:$4 sm:$0xc1] %v596_v7   ;;  %1282 = vrot.lane.b32.xlu1 %v1272_v63, %s7261_s19  ;;  %1280 = vrot.lane.b32.xlu0 %v1271_v0, %s7261_s19  ;;  %v5686_v7 = vld [vmem:[%s5432_s26] sm:$0x77] }
  0xc7   : > { %v527_v12 = vpop.permute.xlu1 %526  ;;  %v585_v14 = vpop.permute.xlu0 %584 }
  0xc8   : > { %v539_v15 = vsel %vm536_vm0, %v525_v54, %v527_v12  ;;  %v540_v16 = vsel %vm536_vm0, %v527_v12, %v5587_v53  ;;  %v597_v17 = vsel %vm594_vm1, %v583_v60, %v585_v14  ;;  %v598_v19 = vsel %vm594_vm1, %v585_v14, %v5607_v5 }
  0xc9   : > { %553 = vst [vmem:[#allocation2 + $0x10] sm:$0x38] %v539_v15  ;;  %554 = vst [vmem:[#allocation2 + $0x18] sm:$0x38] %v540_v16  ;;  %1286 = vrot.lane.b32.xlu1 %v1274_v8, %s7261_s19  ;;  %1284 = vrot.lane.b32.xlu0 %v1273_v9, %s7261_s19  ;;  %v5689_v8 = vld [vmem:[%s5432_s26 + $0x10] sm:$0x77]  ;;  %v1490_v16 = vcombine.high %v5686_v7, %v5686_v7 }
  0xca   : > { %611 = vst [vmem:[#allocation2 + $0x48] ss:$-52 sps:$4 sm:$0xc1] %v597_v17   ;;  %612 = vst [vmem:[#allocation2 + $0x50] ss:$-52 sps:$4 sm:$0xc1] %v598_v19  }
  0xcb   : > { %v648_v24 = vpop.permute.xlu1 %647  ;;  %v5630_v26 = vpop.permute.xlu0 %645  ;;  %v1439_v19 = vrot.slane %v1433_v4, 5 }
  0xcc   : > { %v661_v27 = vsel %vm659_vm2, %v5630_v26, %v648_v24  ;;  %v1857_v14 = vld [vmem:[#allocation2 + $0x8] sm:$0xff] }
  0xcd   : > { %675 = vst [vmem:[#allocation2 + $0x40] sm:$0xe] %v661_v27  ;;  %1340 = vrot.lane.b32.xlu1 %v1330_v20, %s7259_s20  ;;  %1338 = vrot.lane.b32.xlu0 %v1329_v21, %s7259_s20  ;;  %v1438_v20 = vrot.slane %v1425_v58, 5  ;;  %v1483_v21 = vld [vmem:[%s5432_s26 + $0x8] sm:$0x77] }
  0xcf   : > { %v5637_v31 = vpop.permute.xlu1 %651  ;;  %v650_v32 = vpop.permute.xlu0 %649 }
  0xd0   : > { %v662_v33 = vsel %vm659_vm2, %v648_v24, %v650_v32  ;;  %v663_v34 = vsel %vm659_vm2, %v650_v32, %v5637_v31 }
  0xd1   : > { %676 = vst [vmem:[#allocation2 + $0x48] sm:$0xe] %v662_v33  ;;  %677 = vst [vmem:[#allocation2 + $0x50] sm:$0xe] %v663_v34  ;;  %1344 = vrot.lane.b32.xlu1 %v1332_v28, %s7259_s20  ;;  %1342 = vrot.lane.b32.xlu0 %v1331_v30, %s7259_s20  ;;  %v1859_v24 = vld [vmem:[#allocation2 + $0x18] sm:$0xff]  ;;  %v1858_v32 = vld [vmem:[#allocation2 + $0x10] sm:$0xff] }
  0xd2   : > { %v1495_v34 = vrot.slane %v1490_v16, 2 }
  0xd3   : > { %v698_v38 = vpop.permute.xlu1 %697  ;;  %v5647_v39 = vpop.permute.xlu0 %695 }
  0xd4   : > { %v711_v40 = vsel %vm709_vm3, %v5647_v39, %v698_v38 }
  0xd5   : > { %725 = vst [vmem:[#allocation2 + $0x40] sm:$0x70] %v711_v40  ;;  %1155 = vrot.lane.b32.xlu1 %v1151_v35, %s7257_s28  ;;  %1105 = vrot.lane.b32.xlu0 %v1097_v36, %s7278_s24  ;;  %s7285_s28 = smov 31   ;;  %v1491_v40 = vcombine.high %v1483_v21, %v1483_v21 }
  0xd7   : > { %v5658_v29 = vpop.permute.xlu1 %701  ;;  %v700_v45 = vpop.permute.xlu0 %699 }
  0xd8   : > { %v712_v46 = vsel %vm709_vm3, %v698_v38, %v700_v45  ;;  %v713_v47 = vsel %vm709_vm3, %v700_v45, %v5658_v29  ;;  %v1497_v45 = vrot.slane %v1491_v40, 2 }
  0xd9   : > { %726 = vst [vmem:[#allocation2 + $0x48] sm:$0x70] %v712_v46  ;;  %727 = vst [vmem:[#allocation2 + $0x50] sm:$0x70] %v713_v47  ;;  %1278 = vrot.lane.b32.xlu1 %v1270_v41, %s7261_s19  ;;  %1213 = vrot.lane.b32.xlu0 %v1205_v42, %s7263_s21  ;;  %s7279_s19 = smov 29   ;;  %v1496_v46 = vrot.slane %v1483_v21, 2 }
  0xda   : > { %s7275_s21 = smov 28  }
  0xdb   : > { %v756_v52 = vpop.permute.xlu1 %755  ;;  %v754_v54 = vpop.permute.xlu0 %753 }
  0xdc   : > { %v769_v55 = vsel %vm767_vm4, %v754_v54, %v756_v52 }
  0xdd   : > { %783 = vst [vmem:[#allocation2 + $0x78] ss:$-52 sps:$4 sm:$0x83] %v769_v55   ;;  %1388 = vrot.lane.b32.xlu1 %v1382_v44, %s7285_s28  ;;  %1336 = vrot.lane.b32.xlu0 %v1328_v48, %s7259_s20  ;;  %s7282_s20 = smov 30   ;;  %v5722_v44 = vld [vmem:[%s5432_s26 + $0x10] sm:$0x77] }
  0xde   : > { %v1548_v48 = vld [vmem:[%s5432_s26 + $0x8] sm:$0x77]  ;;  %v1498_v57 = vrot.slane %v5722_v44, 2 }
  0xdf   : > { %v5678_v60 = vpop.permute.xlu1 %759  ;;  %v758_v62 = vpop.permute.xlu0 %757  ;;  %v1556_v58 = vcombine.high %v1548_v48, %v1548_v48  ;;  %v1561_v16 = vrot.slane %v1548_v48, 7 }
  0xe0   : > { %v770_v63 = vsel %vm767_vm4, %v756_v52, %v758_v62  ;;  %v771_v0 = vsel %vm767_vm4, %v758_v62, %v5678_v60  ;;  %v5732_v62 = vld [vmem:[%s5432_s26 + $0x4] sm:$0x77] }
  0xe1   : > { %784 = vst [vmem:[#allocation2 + $0x80] ss:$-52 sps:$4 sm:$0x83] %v770_v63   ;;  %785 = vst [vmem:[#allocation2 + $0x88] ss:$-52 sps:$4 sm:$0x83] %v771_v0   ;;  %1392 = vrot.lane.b32.xlu1 %v1383_v56, %s7285_s28  ;;  %1390 = vrot.lane.b32.xlu0 %v1375_v49, %s7285_s28 }
  0xe2   : > { %v1606_v63 = vld [vmem:[%s5432_s26 + $0xc] sm:$0x77] }
  0xe3   : > { %v579_v9 = vpop.permute.xlu1 %578  ;;  %v521_v10 = vpop.permute.xlu0 %520  ;;  %1624 = vst [vmem:[#allocation2 + $0x1a0] sm:$0x70] %v1606_v63  ;;  %v1614_v4 = vcombine.low %v1606_v63, %v1606_v63 }
  0xe4   : > { %v595_v11 = vsel %vm594_vm1, %v579_v9, %v5609_v6  ;;  %v537_v12 = vsel %vm536_vm0, %v521_v10, %v5595_v61  ;;  %v1864_v15 = vld [vmem:[#allocation2 + $0x40] sm:$0xff]  ;;  %v5701_v6 = vld [vmem:[%s5432_s26 + $0x10] sm:$0x77] }
  0xe5   : > { %609 = vst [vmem:[#allocation2 + $0x38] ss:$-52 sps:$4 sm:$0xc1] %v595_v11   ;;  %551 = vst [vmem:[#allocation2] sm:$0x38] %v537_v12  ;;  %1446 = vrot.lane.b32.xlu1 %v1437_v1, %s7282_s20  ;;  %1394 = vrot.lane.b32.xlu0 %v5689_v8, %s7285_s28  ;;  %v4393_v17 = vpack.c.bf16 %v1864_v15, %v1857_v14  ;;  %v1440_v38 = vrot.slane %v5701_v6, 5 }
  0xe6   : > { %v1605_v12 = vld [vmem:[%s5432_s26 + $0x4] sm:$0x77]  ;;  %v1562_v15 = vrot.slane %v1556_v58, 7  ;;  %1623 = vst [vmem:[#allocation2 + $0x198] sm:$0x70] %v1614_v4 }
  0xe7   : > { %v694_v61 = vpop.permute.xlu1 %693  ;;  %v644_v22 = vpop.permute.xlu0 %643  ;;  %4394 = vmatprep.subr.bf16.mxu0 %v4393_v17  ;;  %v1636_v17 = vcombine.high %v5732_v62, %v5732_v62  ;;  %1622 = vst [vmem:[#allocation2 + $0x190] sm:$0x70] %v1605_v12 }
  0xe8   : > { %v710_v27 = vsel %vm709_vm3, %v694_v61, %v5647_v39  ;;  %v660_v28 = vsel %vm659_vm2, %v644_v22, %v5630_v26  ;;  %v1866_v30 = vld [vmem:[#allocation2 + $0x50] sm:$0xff]  ;;  %v1865_v33 = vld [vmem:[#allocation2 + $0x48] sm:$0xff]  ;;  %v5712_v39 = vld [vmem:[%s5432_s26] sm:$0x77] }
  0xe9   : > { %724 = vst [vmem:[#allocation2 + $0x38] sm:$0x70] %v710_v27  ;;  %674 = vst [vmem:[#allocation2 + $0x38] sm:$0xe] %v660_v28  ;;  %1450 = vrot.lane.b32.xlu1 %v1439_v19, %s7282_s20  ;;  %1448 = vrot.lane.b32.xlu0 %v1438_v20, %s7282_s20  ;;  %v4415_v35 = vpack.c.bf16 %v1866_v30, %v1859_v24  ;;  %v4417_v36 = vpack.c.bf16 %v1865_v33, %v1858_v32  ;;  %v5747_v19 = vld [vmem:[%s5432_s26 + $0x10] sm:$0x77] }
  0xea   : > { %v1555_v47 = vcombine.high %v5712_v39, %v5712_v39  ;;  %v1629_v20 = vld [vmem:[%s5432_s26 + $0xc] sm:$0x77]  ;;  %v1641_v27 = vrot.slane %v1636_v17, 1  ;;  %v1563_v28 = vrot.slane %v5747_v19, 7 }
  0xeb   : > { %v5714_v26 = vpop.permute.xlu1 %818  ;;  %v752_v41 = vpop.permute.xlu0 %751  ;;  %4416 = vmatprep.subr.bf16.mxu1 %v4415_v35  ;;  %v1637_v30 = vcombine.high %v1629_v20, %v1629_v20 }
  0xec   : > { %v768_v42 = vsel %vm767_vm4, %v752_v41, %v754_v54  ;;  %4418 = vmatpush1.bf16.msra.mxu1 %v4417_v36  ;;  %v1560_v56 = vrot.slane %v1555_v47, 7  ;;  %v1856_v10 = vld [vmem:[#allocation2] sm:$0xff]  ;;  %v1642_v36 = vrot.slane %v1629_v20, 1 }
  0xed   : > { %782 = vst [vmem:[#allocation2 + $0x70] ss:$-52 sps:$4 sm:$0x83] %v768_v42   ;;  %1504 = vrot.lane.b32.xlu1 %v1495_v34, %s7279_s19  ;;  %1452 = vrot.lane.b32.xlu0 %v1440_v38, %s7282_s20  ;;  %v1643_v35 = vrot.slane %v1637_v30, 1  ;;  %v5765_v38 = vld [vmem:[%s5432_s26 + $0x14] sm:$0x77]  ;;  %v1613_v42 = vcombine.low %v1605_v12, %v1605_v12 }
  0xee   : > { %v1644_v47 = vrot.slane %v5765_v38, 1 }
  0xef   : > { %v823_v49 = vpop.permute.xlu1 %822  ;;  %v821_v52 = vpop.permute.xlu0 %820  ;;  %1621 = vst [vmem:[#allocation2 + $0x188] sm:$0x70] %v1613_v42 }
  0xf0   : > { %v834_v54 = vsel %vm832_vm5, %v5714_v26, %v821_v52  ;;  %v835_v55 = vsel %vm832_vm5, %v821_v52, %v823_v49 }
  0xf1   : > { %848 = vst [vmem:[#allocation2 + $0x78] sm:$0x1c] %v834_v54  ;;  %849 = vst [vmem:[#allocation2 + $0x80] sm:$0x1c] %v835_v55  ;;  %1508 = vrot.lane.b32.xlu1 %v1497_v45, %s7279_s19  ;;  %1506 = vrot.lane.b32.xlu0 %v1496_v46, %s7279_s19  ;;  %v1494_v54 = vrot.slane %v5686_v7, 2  ;;  %v1436_v55 = vrot.slane %v5670_v50, 5 }
  0xf2   : > { %v1693_v7 = vld [vmem:[%s5432_s26 + $0xc] sm:$0x77] }
  0xf3   : > { %v5735_v0 = vpop.permute.xlu1 %876  ;;  %v5737_v1 = vpop.permute.xlu0 %824 }
  0xf4   : > { %v836_v9 = vsel %vm832_vm5, %v823_v49, %v5737_v1  ;;  %v1863_v11 = vld [vmem:[#allocation2 + $0x38] sm:$0xff] }
  0xf5   : > { %850 = vst [vmem:[#allocation2 + $0x88] sm:$0x1c] %v836_v9  ;;  %1569 = vrot.lane.b32.xlu1 %v1560_v56, %s7275_s21  ;;  %1510 = vrot.lane.b32.xlu0 %v1498_v57, %s7279_s19  ;;  %v4395_v14 = vpack.c.bf16 %v1863_v11, %v1856_v10  ;;  %v5785_v56 = vld [vmem:[%s5432_s26 + $0x4] sm:$0x77]  ;;  %v1559_v9 = vrot.slane %v5712_v39, 7 }
  0xf6   : > { %v1700_v50 = vcombine.high %v5785_v56, %v5785_v56 }
  0xf7   : > { %v881_v21 = vpop.permute.xlu1 %880  ;;  %v879_v61 = vpop.permute.xlu0 %878  ;;  %4396 = vmatpush1.bf16.msra.mxu0 %v4395_v14  ;;  %v1701_v14 = vcombine.high %v1693_v7, %v1693_v7 }
  0xf8   : > { %v892_v22 = vsel %vm890_vm6, %v5735_v0, %v879_v61  ;;  %v893_v24 = vsel %vm890_vm6, %v879_v61, %v881_v21  ;;  %v1705_v12 = vrot.slane %v1700_v50, 6 }
  0xf9   : > { %906 = vst [vmem:[#allocation2 + $0x78] sm:$0xe0] %v892_v22  ;;  %907 = vst [vmem:[#allocation2 + $0x80] sm:$0xe0] %v893_v24  ;;  %1573 = vrot.lane.b32.xlu1 %v1562_v15, %s7275_s21  ;;  %1571 = vrot.lane.b32.xlu0 %v1561_v16, %s7275_s21  ;;  %v5804_v15 = vld [vmem:[%s5432_s26 + $0x14] sm:$0x77] }
  0xfa   : > { %v5807_v16 = vld [vmem:[%s5432_s26 + $0x4] sm:$0x77]  ;;  %v1708_v22 = vrot.slane %v5804_v15, 6  ;;  %v1707_v24 = vrot.slane %v1701_v14, 6 }
  0xfb   : > { %v5756_v32 = vpop.permute.xlu1 %926  ;;  %v5758_v33 = vpop.permute.xlu0 %882 }
  0xfc   : > { %v894_v34 = vsel %vm890_vm6, %v881_v21, %v5758_v33 }
  0xfd   : > { %908 = vst [vmem:[#allocation2 + $0x88] sm:$0xe0] %v894_v34  ;;  %1650 = vrot.lane.b32.xlu1 %v1641_v27, %s7273_s25  ;;  %1575 = vrot.lane.b32.xlu0 %v1563_v28, %s7275_s21  ;;  %v1757_v27 = vcombine.high %v5807_v16, %v5807_v16  ;;  %v1750_v28 = vld [vmem:[%s5432_s26 + $0xc] sm:$0x77] }
  0xfe   : > { %v1758_v42 = vcombine.high %v1750_v28, %v1750_v28 }
  0xff   : > { %v931_v40 = vpop.permute.xlu1 %930  ;;  %v929_v41 = vpop.permute.xlu0 %928 }
 0x100   : > { %v942_v45 = vsel %vm940_vm7, %v5756_v32, %v929_v41  ;;  %v943_v46 = vsel %vm940_vm7, %v929_v41, %v931_v40  ;;  %v1762_v41 = vrot.slane %v1757_v27, 3 }
 0x101   : > { %956 = vst [vmem:[#allocation2 + $0xb0] sm:$0x7] %v942_v45  ;;  %957 = vst [vmem:[#allocation2 + $0xb8] sm:$0x7] %v943_v46  ;;  %1654 = vrot.lane.b32.xlu1 %v1643_v35, %s7273_s25  ;;  %1652 = vrot.lane.b32.xlu0 %v1642_v36, %s7273_s25  ;;  %v5826_v45 = vld [vmem:[%s5432_s26 + $0x14] sm:$0x77] }
 0x103   : > { %v5773_v48 = vpop.permute.xlu1 %984  ;;  %v5775_v49 = vpop.permute.xlu0 %932 }
 0x104   : > { %v944_v52 = vsel %vm940_vm7, %v931_v40, %v5775_v49  ;;  %v1763_v40 = vrot.slane %v1750_v28, 3  ;;  %v5120_v28 = vld [vmem:[%s5432_s26 + $0x10] sm:$0x77] }
 0x105   : > { %958 = vst [vmem:[#allocation2 + $0xc0] sm:$0x7] %v944_v52  ;;  %1386 = vrot.lane.b32.xlu1 %v5656_v43, %s7285_s28  ;;  %1656 = vrot.lane.b32.xlu0 %v1644_v47, %s7273_s25  ;;  %v1640_v43 = vrot.slane %v5732_v62, 1  ;;  %v1706_v62 = vrot.slane %v1693_v7, 6  ;;  %v1873_v7 = vld [vmem:[#allocation2 + $0x88] sm:$0xff] }
 0x107   : > { %v989_v57 = vpop.permute.xlu1 %988  ;;  %v987_v58 = vpop.permute.xlu0 %986 }
 0x108   : > { %v1000_v63 = vsel %vm998_vm8, %v5773_v48, %v987_v58  ;;  %v1001_v4 = vsel %vm998_vm8, %v987_v58, %v989_v57  ;;  %v1765_v58 = vrot.slane %v5826_v45, 3 }
 0x109   : > { %1014 = vst [vmem:[#allocation2 + $0xb0] sm:$0x38] %v1000_v63  ;;  %1015 = vst [vmem:[#allocation2 + $0xb8] sm:$0x38] %v1001_v4  ;;  %1502 = vrot.lane.b32.xlu1 %v1494_v54, %s7279_s19  ;;  %1444 = vrot.lane.b32.xlu0 %v1436_v55, %s7282_s20  ;;  %v1871_v54 = vld [vmem:[#allocation2 + $0x78] sm:$0xff]  ;;  %v1764_v63 = vrot.slane %v1758_v42, 3 }
 0x10a   : > { %v5836_v4 = vld [vmem:[%s5432_s26 + $0x4] sm:$0x77]  ;;  %v482_v42 = vld [vmem:[%s5432_s26 + $0x10] sm:$0x77]  ;;  %s7329_s19 = smov 60   ;;  %s7330_s20 = smov 32  }
 0x10b   : > { %v1043_v10 = vpop.permute.xlu1 %1042  ;;  %v5797_v11 = vpop.permute.xlu0 %990  ;;  %v1814_v14 = vcombine.high %v5836_v4, %v5836_v4  ;;  %497 = vst [vmem:[#allocation2 + $0x20] sm:$0x7] %v482_v42 }
 0x10c   : > { %v1002_v39 = vsel %vm998_vm8, %v989_v57, %v5797_v11 }
 0x10d   : > { %1016 = vst [vmem:[#allocation2 + $0xc0] sm:$0x38] %v1002_v39  ;;  %1648 = vrot.lane.b32.xlu1 %v1640_v43, %s7273_s25  ;;  %1567 = vrot.lane.b32.xlu0 %v1559_v9, %s7275_s21  ;;  %s7327_s21 = smov 62  }
 0x10f   : > { %v1047_v17 = vpop.permute.xlu1 %1046  ;;  %v1045_v20 = vpop.permute.xlu0 %1044 }
 0x110   : > { %v1058_v21 = vsel %vm7298_vm9, %v1043_v10, %v1045_v20  ;;  %v1059_v61 = vsel %vm7298_vm9, %v1045_v20, %v1047_v17 }
 0x111   : > { %1072 = vst [vmem:[#allocation2 + $0xe8] ss:$-52 sps:$4 sm:$0xc1] %v1058_v21   ;;  %1073 = vst [vmem:[#allocation2 + $0xf0] ss:$-52 sps:$4 sm:$0xc1] %v1059_v61   ;;  %1716 = vrot.lane.b32.xlu1 %v1706_v62, %s7271_s27  ;;  %1714 = vrot.lane.b32.xlu0 %v1705_v12, %s7271_s27 }
 0x112   : > { %v1872_v12 = vld [vmem:[#allocation2 + $0x80] sm:$0xff] }
 0x113   : > { %v817_v30 = vpop.permute.xlu1 %816  ;;  %v5817_v34 = vpop.permute.xlu0 %1048 }
 0x114   : > { %v833_v35 = vsel %vm832_vm5, %v817_v30, %v5714_v26  ;;  %v1060_v36 = vsel %vm7298_vm9, %v1047_v17, %v5817_v34  ;;  %v1807_v17 = vld [vmem:[%s5432_s26 + $0xc] sm:$0x77]  ;;  %v510_v30 = vcombine.high %v5120_v28, %v5120_v28  ;;  %v489_v28 = vcombine.high %v482_v42, %v482_v42  ;;  %v5912_v42 = vld [vmem:[%s5432_s26 + $0x18] sm:$0x77] }
 0x115   : > { %847 = vst [vmem:[#allocation2 + $0x70] sm:$0x1c] %v833_v35  ;;  %1074 = vst [vmem:[#allocation2 + $0xf8] ss:$-52 sps:$4 sm:$0xc1] %v1060_v36   ;;  %1720 = vrot.lane.b32.xlu1 %v1708_v22, %s7271_s27  ;;  %1718 = vrot.lane.b32.xlu0 %v1707_v24, %s7271_s27  ;;  %v1815_v61 = vcombine.high %v1807_v17, %v1807_v17 }
 0x116   : > { %v5853_v22 = vld [vmem:[%s5432_s26 + $0x14] sm:$0x77]  ;;  %498 = vst [vmem:[#allocation2 + $0x28] sm:$0x7] %v489_v28 }
 0x117   : > { %v925_v46 = vpop.permute.xlu1 %924  ;;  %v875_v47 = vpop.permute.xlu0 %874 }
 0x118   : > { %v941_v26 = vsel %vm940_vm7, %v925_v46, %v5756_v32  ;;  %v891_v52 = vsel %vm890_vm6, %v875_v47, %v5735_v0  ;;  %v1878_v55 = vld [vmem:[#allocation2 + $0xb0] sm:$0xff]  ;;  %v1879_v32 = vld [vmem:[#allocation2 + $0xb8] sm:$0xff]  ;;  %v1761_v47 = vrot.slane %v5807_v16, 3 }
 0x119   : > { %955 = vst [vmem:[#allocation2 + $0xa8] sm:$0x7] %v941_v26  ;;  %905 = vst [vmem:[#allocation2 + $0x70] sm:$0xe0] %v891_v52  ;;  %1773 = vrot.lane.b32.xlu1 %v1763_v40, %s7265_s15  ;;  %1771 = vrot.lane.b32.xlu0 %v1762_v41, %s7265_s15  ;;  %v4397_v57 = vpack.c.bf16 %v1878_v55, %v1871_v54  ;;  %v1704_v26 = vrot.slane %v5785_v56, 6 }
 0x11a   : > { %v5875_v16 = vld [vmem:[%s5432_s26 + $0x18] sm:$0x77] }
 0x11b   : > { %v1041_v9 = vpop.permute.xlu1 %1040  ;;  %v983_v43 = vpop.permute.xlu0 %982  ;;  %4398 = vmatprep.subr.bf16.mxu0 %v4397_v57  ;;  %v517_v57 = vrot.slane %v510_v30, 5 }
 0x11c   : > { %v1057_v0 = vsel %vm7298_vm9, %v1041_v9, %v1043_v10  ;;  %v999_v50 = vsel %vm998_vm8, %v983_v43, %v5773_v48  ;;  %v1880_v39 = vld [vmem:[#allocation2 + $0xc0] sm:$0xff]  ;;  %v4421_v10 = vpack.c.bf16 %v1879_v32, %v1872_v12  ;;  %v5890_v12 = vld [vmem:[%s5432_s26 + $0x18] sm:$0x77] }
 0x11d   : > { %1071 = vst [vmem:[#allocation2 + $0xe0] ss:$-52 sps:$4 sm:$0xc1] %v1057_v0   ;;  %1013 = vst [vmem:[#allocation2 + $0xa8] sm:$0x38] %v999_v50  ;;  %1777 = vrot.lane.b32.xlu1 %v1765_v58, %s7265_s15  ;;  %1775 = vrot.lane.b32.xlu0 %v1764_v63, %s7265_s15  ;;  %v4419_v62 = vpack.c.bf16 %v1880_v39, %v1873_v7  ;;  %v5244_v0 = vmov 0.0  }
 0x11e   : > { %v5121_v58 = vld [vmem:[%s5432_s26 + $0x10] sm:$0x77]  ;;  %2093 = vmatprep.mubr.f32.mxu1 %v5244_v0  ;;  %2022 = vmatprep.mubr.f32.mxu0 %v5244_v0 }
 0x11f   : > { %v1110_v20 = vpop.permute.xlu1 %1109  ;;  %v5846_v48 = vpop.permute.xlu0 %1107  ;;  %4420 = vmatprep.subr.bf16.mxu1 %v4419_v62  ;;  %v568_v63 = vcombine.high %v5121_v58, %v5121_v58  ;;  %v5122_v7 = vld [vmem:[%s5432_s26 + $0x10] sm:$0x77]  ;;  %v518_v62 = vrot.slane %v5875_v16, 5  ;;  %v692_v58 = vcombine.low %v5912_v42, %v5912_v42 }
 0x120   : > { %v1123_v21 = vsel %vm7299_vm10, %v5846_v48, %v1110_v20  ;;  %4422 = vmatpush1.bf16.msra.mxu1 %v4421_v10  ;;  %v1870_v40 = vld [vmem:[#allocation2 + $0x70] sm:$0xff]  ;;  %v633_v39 = vcombine.high %v5122_v7, %v5122_v7  ;;  %v864_v7 = vcombine.high %v5509_v3, %v5509_v3 }
 0x121   : > { %1137 = vst [vmem:[#allocation2 + $0xe8] sm:$0xe] %v1123_v21  ;;  %1822 = vrot.lane.b32.xlu1 %v1807_v17, %s7269_s22  ;;  %1820 = vrot.lane.b32.xlu0 %v1814_v14, %s7269_s22  ;;  %v575_v50 = vrot.slane %v568_v63, 2  ;;  %v5900_v21 = vld [vmem:[%s5432_s26 + $0x18] sm:$0x77] }
 0x122   : > { %v5926_v63 = vld [vmem:[%s5432_s26 + $0x18] sm:$0x77] }
 0x123   : > { %v5855_v24 = vpop.permute.xlu1 %1113  ;;  %v1112_v27 = vpop.permute.xlu0 %1111 }
 0x124   : > { %v1124_v35 = vsel %vm7299_vm10, %v1110_v20, %v1112_v27  ;;  %v1125_v36 = vsel %vm7299_vm10, %v1112_v27, %v5855_v24  ;;  %v1877_v41 = vld [vmem:[#allocation2 + $0xa8] sm:$0xff]  ;;  %v640_v20 = vrot.slane %v633_v39, 7  ;;  %v749_v39 = vrot.slane %v5926_v63, 1 }
 0x125   : > { %1138 = vst [vmem:[#allocation2 + $0xf0] sm:$0xe] %v1124_v35  ;;  %1139 = vst [vmem:[#allocation2 + $0xf8] sm:$0xe] %v1125_v36  ;;  %1826 = vrot.lane.b32.xlu1 %v5853_v22, %s7269_s22  ;;  %1824 = vrot.lane.b32.xlu0 %v1815_v61, %s7269_s22  ;;  %v4399_v46 = vpack.c.bf16 %v1877_v41, %v1870_v40  ;;  %v5123_v36 = vld [vmem:[%s5432_s26 + $0x10] sm:$0x77] }
 0x126   : > { %v741_v40 = vcombine.high %v5123_v36, %v5123_v36  ;;  %v641_v41 = vrot.slane %v5900_v21, 7 }
 0x127   : > { %v1160_v52 = vpop.permute.xlu1 %1159  ;;  %v5867_v54 = vpop.permute.xlu0 %1157  ;;  %4400 = vmatpush1.bf16.msra.mxu0 %v4399_v46 }
 0x128   : > { %v1173_v55 = vsel %vm7300_vm11, %v5867_v54, %v1160_v52 }
 0x129   : > { %1187 = vst [vmem:[#allocation2 + $0xe8] sm:$0x70] %v1173_v55  ;;  %1769 = vrot.lane.b32.xlu1 %v1761_v47, %s7265_s15  ;;  %1712 = vrot.lane.b32.xlu0 %v1704_v26, %s7271_s27  ;;  %v806_v55 = vcombine.high %v5499_v59, %v5499_v59 }
 0x12b   : > { %v5877_v56 = vpop.permute.xlu1 %1163  ;;  %v1162_v9 = vpop.permute.xlu0 %1161 }
 0x12c   : > { %v1174_v43 = vsel %vm7300_vm11, %v1160_v52, %v1162_v9  ;;  %v1175_v32 = vsel %vm7300_vm11, %v1162_v9, %v5877_v56  ;;  %v748_v52 = vrot.slane %v741_v40, 1  ;;  %v922_v40 = vcombine.high %v5522_v13, %v5522_v13 }
 0x12d   : > { %1188 = vst [vmem:[#allocation2 + $0xf0] sm:$0x70] %v1174_v43  ;;  %1189 = vst [vmem:[#allocation2 + $0xf8] sm:$0x70] %v1175_v32  ;;  %530 = vrot.lane.b32.xlu1 %v517_v57, %s7273_s25  ;;  %1818 = vrot.lane.b32.xlu0 %v5836_v4, %s7269_s22  ;;  %v576_v4 = vrot.slane %v5890_v12, 2 }
 0x12e   : > { %v5124_v57 = vld [vmem:[%s5432_s26 + $0x10] sm:$0x77] }
 0x12f   : > { %v1218_v14 = vpop.permute.xlu1 %1217  ;;  %v5892_v10 = vpop.permute.xlu0 %1215 }
 0x130   : > { %v1231_v17 = vsel %vm7284_vm12, %v5892_v10, %v1218_v14 }
 0x131   : > { %1245 = vst [vmem:[#allocation2 + $0x120] ss:$-52 sps:$4 sm:$0x83] %v1231_v17   ;;  %588 = vrot.lane.b32.xlu1 %v575_v50, %s7271_s27  ;;  %532 = vrot.lane.b32.xlu0 %v518_v62, %s7273_s25  ;;  %v813_v50 = vrot.slane %v806_v55, 6  ;;  %v5939_v62 = vld [vmem:[%s5432_s26 + $0x18] sm:$0x77]  ;;  %v1030_v55 = vcombine.high %v5538_v25, %v5538_v25 }
 0x132   : > { %v814_v3 = vrot.slane %v5939_v62, 6  ;;  %s7326_s25 = smov 64  }
 0x133   : > { %v5902_v61 = vpop.permute.xlu1 %1221  ;;  %v1220_v27 = vpop.permute.xlu0 %1219 }
 0x134   : > { %v1232_v30 = vsel %vm7284_vm12, %v1218_v14, %v1220_v27  ;;  %v1233_v35 = vsel %vm7284_vm12, %v1220_v27, %v5902_v61  ;;  %v5946_v27 = vld [vmem:[%s5432_s26 + $0x18] sm:$0x77] }
 0x135   : > { %1246 = vst [vmem:[#allocation2 + $0x128] ss:$-52 sps:$4 sm:$0x83] %v1232_v30   ;;  %1247 = vst [vmem:[#allocation2 + $0x130] ss:$-52 sps:$4 sm:$0x83] %v1233_v35   ;;  %653 = vrot.lane.b32.xlu1 %v640_v20, %s7265_s15  ;;  %590 = vrot.lane.b32.xlu0 %v576_v4, %s7271_s27 }
 0x136   : > { %v871_v4 = vrot.slane %v864_v7, 3  ;;  %s7325_s27 = smov 92  }
 0x137   : > { %v1283_v46 = vpop.permute.xlu1 %1282  ;;  %v5914_v47 = vpop.permute.xlu0 %1280 }
 0x138   : > { %v1296_v26 = vsel %vm7281_vm13, %v5914_v47, %v1283_v46 }
 0x139   : > { %1310 = vst [vmem:[#allocation2 + $0x120] sm:$0x1c] %v1296_v26  ;;  %703 = vrot.lane.b32.xlu1 %v5124_v57, %s7269_s22  ;;  %655 = vrot.lane.b32.xlu0 %v641_v41, %s7265_s15  ;;  %s7322_s15 = smov 95   ;;  %v972_v41 = vcombine.high %v5529_v18, %v5529_v18  ;;  %v1885_v57 = vld [vmem:[#allocation2 + $0xe8] sm:$0xff] }
 0x13b   : > { %v5928_v9 = vpop.permute.xlu1 %1286  ;;  %v1285_v43 = vpop.permute.xlu0 %1284 }
 0x13c   : > { %v1297_v32 = vsel %vm7281_vm13, %v1283_v46, %v1285_v43  ;;  %v1298_v59 = vsel %vm7281_vm13, %v1285_v43, %v5928_v9  ;;  %v872_v46 = vrot.slane %v5946_v27, 3  ;;  %v979_v43 = vrot.slane %v972_v41, 5 }
 0x13d   : > { %1311 = vst [vmem:[#allocation2 + $0x128] sm:$0x1c] %v1297_v32  ;;  %1312 = vst [vmem:[#allocation2 + $0x130] sm:$0x1c] %v1298_v59  ;;  %761 = vrot.lane.b32.xlu1 %v748_v52, %s7267_s18  ;;  %705 = vrot.lane.b32.xlu0 %v692_v58, %s7269_s22  ;;  %s7324_s22 = smov 93  }
 0x13e   : > { %v5969_v59 = vld [vmem:[%s5432_s26 + $0x18] sm:$0x77] }
 0x13f   : > { %v1341_v14 = vpop.permute.xlu1 %1340  ;;  %v1339_v17 = vpop.permute.xlu0 %1338 }
 0x140   : > { %v1354_v20 = vsel %vm7277_vm14, %v1339_v17, %v1341_v14 }
 0x141   : > { %1368 = vst [vmem:[#allocation2 + $0x120] sm:$0xe0] %v1354_v20  ;;  %826 = vrot.lane.b32.xlu1 %v813_v50, %s7322_s15  ;;  %763 = vrot.lane.b32.xlu0 %v749_v39, %s7267_s18  ;;  %s7323_s18 = smov 94   ;;  %v5972_v50 = vld [vmem:[%s5432_s26 + $0x18] sm:$0x77] }
 0x143   : > { %v5948_v28 = vpop.permute.xlu1 %1344  ;;  %v1343_v30 = vpop.permute.xlu0 %1342 }
 0x144   : > { %v1355_v35 = vsel %vm7277_vm14, %v1341_v14, %v1343_v30  ;;  %v1356_v36 = vsel %vm7277_vm14, %v1343_v30, %v5948_v28  ;;  %v1095_v30 = vcombine.high %v5558_v37, %v5558_v37 }
 0x145   : > { %1369 = vst [vmem:[#allocation2 + $0x128] sm:$0xe0] %v1355_v35  ;;  %1370 = vst [vmem:[#allocation2 + $0x130] sm:$0xe0] %v1356_v36  ;;  %884 = vrot.lane.b32.xlu1 %v871_v4, %s7323_s18  ;;  %828 = vrot.lane.b32.xlu0 %v814_v3, %s7322_s15  ;;  %v1886_v4 = vld [vmem:[#allocation2 + $0xf0] sm:$0xff] }
 0x147   : > { %v1156_v26 = vpop.permute.xlu1 %1155  ;;  %v1106_v52 = vpop.permute.xlu0 %1105 }
 0x148   : > { %v1172_v13 = vsel %vm7300_vm11, %v1156_v26, %v5867_v54  ;;  %v1122_v18 = vsel %vm7299_vm10, %v1106_v52, %v5846_v48  ;;  %v1892_v58 = vld [vmem:[#allocation2 + $0x120] sm:$0xff]  ;;  %v1887_v54 = vld [vmem:[#allocation2 + $0xf8] sm:$0xff]  ;;  %v1037_v48 = vrot.slane %v1030_v55, 2 }
 0x149   : > { %1186 = vst [vmem:[#allocation2 + $0xe0] sm:$0x70] %v1172_v13  ;;  %1136 = vst [vmem:[#allocation2 + $0xe0] sm:$0xe] %v1122_v18  ;;  %934 = vrot.lane.b32.xlu1 %v922_v40, %s7324_s22  ;;  %886 = vrot.lane.b32.xlu0 %v872_v46, %s7323_s18  ;;  %v4401_v32 = vpack.c.bf16 %v1892_v58, %v1885_v57  ;;  %v5985_v40 = vld [vmem:[%s5432_s26 + $0x18] sm:$0x77]  ;;  %v1203_v18 = vcombine.high %v5582_v51, %v5582_v51 }
 0x14a   : > { %v1102_v46 = vrot.slane %v1095_v30, 7  ;;  %v1038_v26 = vrot.slane %v5985_v40, 2  ;;  %v5994_v52 = vld [vmem:[%s5432_s26 + $0x18] sm:$0x77] }
 0x14b   : > { %v1279_v25 = vpop.permute.xlu1 %1278  ;;  %v1214_v7 = vpop.permute.xlu0 %1213  ;;  %4402 = vmatprep.subr.bf16.mxu0 %v4401_v32  ;;  %v1103_v58 = vrot.slane %v5994_v52, 7 }
 0x14c   : > { %v1295_v39 = vsel %vm7281_vm13, %v1279_v25, %v5914_v47  ;;  %v1230_v14 = vsel %vm7284_vm12, %v1214_v7, %v5892_v10  ;;  %v1894_v20 = vld [vmem:[#allocation2 + $0x130] sm:$0xff]  ;;  %v1893_v3 = vld [vmem:[#allocation2 + $0x128] sm:$0xff]  ;;  %v980_v47 = vrot.slane %v5972_v50, 5  ;;  %v1210_v25 = vrot.slane %v1203_v18, 1 }
 0x14d   : > { %1309 = vst [vmem:[#allocation2 + $0x118] sm:$0x1c] %v1295_v39  ;;  %1244 = vst [vmem:[#allocation2 + $0x118] ss:$-52 sps:$4 sm:$0x83] %v1230_v14   ;;  %992 = vrot.lane.b32.xlu1 %v979_v43, %s7325_s27  ;;  %936 = vrot.lane.b32.xlu0 %v5969_v59, %s7324_s22  ;;  %v4423_v35 = vpack.c.bf16 %v1894_v20, %v1887_v54  ;;  %v4425_v36 = vpack.c.bf16 %v1893_v3, %v1886_v4  ;;  %vm7293_vm13 = vcmask 236544  }
 0x14e   : > { %v6005_v43 = vld [vmem:[%s5432_s26 + $0x18] sm:$0x77]  ;;  %v1268_v39 = vcombine.high %v5602_v2, %v5602_v2  ;;  %v5125_v14 = vld [vmem:[%s5432_s26 + $0x10] sm:$0x77]  ;;  %vm7292_vm12 = vcmask 228352  }
 0x14f   : > { %v5987_v10 = vpop.permute.xlu1 %1388  ;;  %v1337_v41 = vpop.permute.xlu0 %1336  ;;  %4424 = vmatprep.subr.bf16.mxu1 %v4423_v35  ;;  %v1154_v4 = vcombine.low %v6005_v43, %v6005_v43  ;;  %v6021_v3 = vld [vmem:[%s5432_s26 + $0x18] sm:$0x77] }
 0x150   : > { %v1353_v37 = vsel %vm7277_vm14, %v1337_v41, %v1339_v17  ;;  %4426 = vmatpush1.bf16.msra.mxu1 %v4425_v36  ;;  %vm7294_vm14 = vcmask 244736   ;;  %v1326_v41 = vcombine.high %v5628_v23, %v5628_v23 }
 0x151   : > { %1367 = vst [vmem:[#allocation2 + $0x118] sm:$0xe0] %v1353_v37  ;;  %1050 = vrot.lane.b32.xlu1 %v1037_v48, %s7326_s25  ;;  %994 = vrot.lane.b32.xlu0 %v980_v47, %s7325_s27  ;;  %v1275_v47 = vrot.slane %v1268_v39, 6  ;;  %v1211_v37 = vrot.slane %v6021_v3, 1 }
 0x152   : > { %v1333_v18 = vrot.slane %v1326_v41, 3 }
 0x153   : > { %v1393_v55 = vpop.permute.xlu1 %1392  ;;  %v1391_v13 = vpop.permute.xlu0 %1390 }
 0x154   : > { %v1404_v17 = vsel %vm1402_vm15, %v5987_v10, %v1391_v13  ;;  %v1405_v57 = vsel %vm1402_vm15, %v1391_v13, %v1393_v55  ;;  %v1884_v54 = vld [vmem:[#allocation2 + $0xe0] sm:$0xff] }
 0x155   : > { %1418 = vst [vmem:[#allocation2 + $0x158] sm:$0x7] %v1404_v17  ;;  %1419 = vst [vmem:[#allocation2 + $0x160] sm:$0x7] %v1405_v57  ;;  %1115 = vrot.lane.b32.xlu1 %v1102_v46, %s7278_s24  ;;  %1052 = vrot.lane.b32.xlu0 %v1038_v26, %s7326_s25  ;;  %v6032_v46 = vld [vmem:[%s5432_s26 + $0x18] sm:$0x77] }
 0x156   : > { %v1276_v23 = vrot.slane %v6032_v46, 6  ;;  %v6044_v17 = vld [vmem:[%s5432_s26 + $0x18] sm:$0x77] }
 0x157   : > { %v6007_v32 = vpop.permute.xlu1 %1446  ;;  %v6009_v51 = vpop.permute.xlu0 %1394  ;;  %v1334_v39 = vrot.slane %v6044_v17, 3 }
 0x158   : > { %v1406_v7 = vsel %vm1402_vm15, %v1393_v55, %v6009_v51  ;;  %v1891_v48 = vld [vmem:[#allocation2 + $0x118] sm:$0xff] }
 0x159   : > { %1420 = vst [vmem:[#allocation2 + $0x168] sm:$0x7] %v1406_v7  ;;  %1165 = vrot.lane.b32.xlu1 %v5125_v14, %s7327_s21  ;;  %1117 = vrot.lane.b32.xlu0 %v1103_v58, %s7278_s24  ;;  %v4403_v20 = vpack.c.bf16 %v1891_v48, %v1884_v54  ;;  %s7328_s24 = smov 61   ;;  %v1384_v54 = vcombine.high %v5689_v8, %v5689_v8 }
 0x15a   : > { %v1434_v48 = vcombine.high %v5701_v6, %v5701_v6  ;;  %v1492_v6 = vcombine.high %v5722_v44, %v5722_v44 }
 0x15b   : > { %v1451_v30 = vpop.permute.xlu1 %1450  ;;  %v1449_v35 = vpop.permute.xlu0 %1448  ;;  %4404 = vmatpush1.bf16.msra.mxu0 %v4403_v20 }
 0x15c   : > { %v1462_v2 = vsel %vm7294_vm14, %v6007_v32, %v1449_v35  ;;  %v1463_v36 = vsel %vm7294_vm14, %v1449_v35, %v1451_v30  ;;  %v6070_v35 = vld [vmem:[%s5432_s26 + $0x18] sm:$0x77] }
 0x15d   : > { %1476 = vst [vmem:[#allocation2 + $0x158] sm:$0x38] %v1462_v2  ;;  %1477 = vst [vmem:[#allocation2 + $0x160] sm:$0x38] %v1463_v36  ;;  %1223 = vrot.lane.b32.xlu1 %v1210_v25, %s7328_s24  ;;  %1167 = vrot.lane.b32.xlu0 %v1154_v4, %s7327_s21  ;;  %v1441_v4 = vrot.slane %v1434_v48, 5 }
 0x15e   : > { %v1607_v2 = vld [vmem:[%s5432_s26 + $0x14] sm:$0x77] }
 0x15f   : > { %v6034_v26 = vpop.permute.xlu1 %1504  ;;  %v6036_v55 = vpop.permute.xlu0 %1452  ;;  %v1615_v41 = vcombine.low %v1607_v2, %v1607_v2  ;;  %1626 = vst [vmem:[#allocation2 + $0x1b0] sm:$0x70] %v1607_v2 }
 0x160   : > { %v1464_v13 = vsel %vm7294_vm14, %v1451_v30, %v6036_v55  ;;  %v6067_v30 = vld [vmem:[%s5432_s26 + $0x18] sm:$0x77] }
 0x161   : > { %1478 = vst [vmem:[#allocation2 + $0x168] sm:$0x38] %v1464_v13  ;;  %1288 = vrot.lane.b32.xlu1 %v1275_v47, %s7329_s19  ;;  %1225 = vrot.lane.b32.xlu0 %v1211_v37, %s7328_s24  ;;  %v1499_v13 = vrot.slane %v1492_v6, 2  ;;  %1625 = vst [vmem:[#allocation2 + $0x1a8] sm:$0x70] %v1615_v41 }
 0x162   : > { %v6105_v41 = vld [vmem:[%s5432_s26 + $0x1c] sm:$0x77] }
 0x163   : > { %v1509_v57 = vpop.permute.xlu1 %1508  ;;  %v1507_v58 = vpop.permute.xlu0 %1506 }
 0x164   : > { %v1520_v25 = vsel %vm7293_vm13, %v6034_v26, %v1507_v58  ;;  %v1521_v7 = vsel %vm7293_vm13, %v1507_v58, %v1509_v57 }
 0x165   : > { %1534 = vst [vmem:[#allocation2 + $0x190] ss:$-52 sps:$4 sm:$0xc1] %v1520_v25   ;;  %1535 = vst [vmem:[#allocation2 + $0x198] ss:$-52 sps:$4 sm:$0xc1] %v1521_v7   ;;  %1346 = vrot.lane.b32.xlu1 %v1333_v18, %s7330_s20  ;;  %1290 = vrot.lane.b32.xlu0 %v1276_v23, %s7329_s19  ;;  %v1557_v18 = vcombine.high %v5747_v19, %v5747_v19 }
 0x166   : > { %v1442_v23 = vrot.slane %v6070_v35, 5 }
 0x167   : > { %v6056_v14 = vpop.permute.xlu1 %1569  ;;  %v6058_v20 = vpop.permute.xlu0 %1510  ;;  %v1564_v19 = vrot.slane %v1557_v18, 7 }
 0x168   : > { %v1522_v8 = vsel %vm7293_vm13, %v1509_v57, %v6058_v20  ;;  %v6083_v57 = vld [vmem:[%s5432_s26 + $0x18] sm:$0x77] }
 0x169   : > { %1536 = vst [vmem:[#allocation2 + $0x1a0] ss:$-52 sps:$4 sm:$0xc1] %v1522_v8   ;;  %1396 = vrot.lane.b32.xlu1 %v1384_v54, %s7285_s28  ;;  %1348 = vrot.lane.b32.xlu0 %v1334_v39, %s7330_s20  ;;  %s7331_s28 = smov 30   ;;  %v1638_v54 = vcombine.high %v5765_v38, %v5765_v38  ;;  %v1500_v48 = vrot.slane %v6083_v57, 2 }
 0x16a   : > { %v6095_v39 = vld [vmem:[%s5432_s26 + $0x18] sm:$0x77] }
 0x16b   : > { %v1574_v36 = vpop.permute.xlu1 %1573  ;;  %v1572_v47 = vpop.permute.xlu0 %1571  ;;  %v1565_v38 = vrot.slane %v6095_v39, 7 }
 0x16c   : > { %v1585_v37 = vsel %vm7292_vm12, %v6056_v14, %v1572_v47  ;;  %v1586_v44 = vsel %vm7292_vm12, %v1572_v47, %v1574_v36  ;;  %v1702_v47 = vcombine.high %v5804_v15, %v5804_v15  ;;  %v1646_v15 = vrot.slane %v6105_v41, 1 }
 0x16d   : > { %1599 = vst [vmem:[#allocation2 + $0x190] sm:$0xe] %v1585_v37  ;;  %1600 = vst [vmem:[#allocation2 + $0x198] sm:$0xe] %v1586_v44  ;;  %1454 = vrot.lane.b32.xlu1 %v1441_v4, %s7331_s28  ;;  %1398 = vrot.lane.b32.xlu0 %v6067_v30, %s7332_s0 }
 0x16f   : > { %v1651_v58 = vpop.permute.xlu1 %1650  ;;  %v6085_v25 = vpop.permute.xlu0 %1575 }
 0x170   : > { %v1587_v7 = vsel %vm7292_vm12, %v1574_v36, %v6085_v25  ;;  %v1645_v36 = vrot.slane %v1638_v54, 1 }
 0x171   : > { %1601 = vst [vmem:[#allocation2 + $0x1a0] sm:$0xe] %v1587_v7  ;;  %1512 = vrot.lane.b32.xlu1 %v1499_v13, %s7333_s3  ;;  %1456 = vrot.lane.b32.xlu0 %v1442_v23, %s7331_s28  ;;  %v1709_v23 = vrot.slane %v1702_v47, 6  ;;  %v1759_v7 = vcombine.high %v5826_v45, %v5826_v45 }
 0x173   : > { %v1655_v8 = vpop.permute.xlu1 %1654  ;;  %v1653_v4 = vpop.permute.xlu0 %1652 }
 0x174   : > { %v1665_v6 = vsel %vm536_vm0, %v1651_v58, %v1653_v4  ;;  %v1666_v2 = vsel %vm536_vm0, %v1653_v4, %v1655_v8  ;;  %v1899_v4 = vld [vmem:[#allocation2 + $0x158] sm:$0xff] }
 0x175   : > { %1679 = vst [vmem:[#allocation2 + $0x1c8] ss:$-52 sps:$4 sm:$0x83] %v1665_v6   ;;  %1680 = vst [vmem:[#allocation2 + $0x1d0] ss:$-52 sps:$4 sm:$0x83] %v1666_v2   ;;  %1577 = vrot.lane.b32.xlu1 %v1564_v19, %s7334_s29  ;;  %1514 = vrot.lane.b32.xlu0 %v1500_v48, %s7333_s3 }
 0x176   : > { %v6119_v19 = vld [vmem:[%s5432_s26 + $0x1c] sm:$0x77]  ;;  %v1766_v2 = vrot.slane %v1759_v7, 3 }
 0x177   : > { %v1387_v37 = vpop.permute.xlu1 %1386  ;;  %v6107_v44 = vpop.permute.xlu0 %1656 }
 0x178   : > { %v1403_v13 = vsel %vm1402_vm15, %v1387_v37, %v5987_v10  ;;  %v1667_v18 = vsel %vm536_vm0, %v1655_v8, %v6107_v44 }
 0x179   : > { %1417 = vst [vmem:[#allocation2 + $0x150] sm:$0x7] %v1403_v13  ;;  %1681 = vst [vmem:[#allocation2 + $0x1d8] ss:$-52 sps:$4 sm:$0x83] %v1667_v18   ;;  %1658 = vrot.lane.b32.xlu1 %v1645_v36, %s7335_s16  ;;  %1579 = vrot.lane.b32.xlu0 %v1565_v38, %s7334_s29  ;;  %v1710_v36 = vrot.slane %v6119_v19, 6 }
 0x17a   : > { %v6129_v38 = vld [vmem:[%s5432_s26 + $0x1c] sm:$0x77]  ;;  %v1901_v18 = vld [vmem:[#allocation2 + $0x168] sm:$0xff] }
 0x17b   : > { %v1503_v54 = vpop.permute.xlu1 %1502  ;;  %v1445_v10 = vpop.permute.xlu0 %1444 }
 0x17c   : > { %v1519_v48 = vsel %vm7293_vm13, %v1503_v54, %v6034_v26  ;;  %v1461_v8 = vsel %vm7294_vm14, %v1445_v10, %v6007_v32  ;;  %v1906_v6 = vld [vmem:[#allocation2 + $0x190] sm:$0xff]  ;;  %v1907_v37 = vld [vmem:[#allocation2 + $0x198] sm:$0xff]  ;;  %v1900_v10 = vld [vmem:[#allocation2 + $0x160] sm:$0xff]  ;;  %vm7295_vm13 = vmmov 1  }
 0x17d   : > { %1533 = vst [vmem:[#allocation2 + $0x188] ss:$-52 sps:$4 sm:$0xc1] %v1519_v48   ;;  %1475 = vst [vmem:[#allocation2 + $0x150] sm:$0x38] %v1461_v8  ;;  %1722 = vrot.lane.b32.xlu1 %v1709_v23, %s7336_s14  ;;  %1660 = vrot.lane.b32.xlu0 %v1646_v15, %s7335_s16  ;;  %v4405_v45 = vpack.c.bf16 %v1906_v6, %v1899_v4  ;;  %v1816_v15 = vcombine.high %v5853_v22, %v5853_v22  ;;  %v1767_v48 = vrot.slane %v6129_v38, 3 }
 0x17e   : > { %v483_v23 = vld [vmem:[%s5432_s26 + $0x18] sm:$0x7]  ;;  %v5245_v8 = vmov 0  }
 0x17f   : > { %v1649_v47 = vpop.permute.xlu1 %1648  ;;  %v1568_v26 = vpop.permute.xlu0 %1567  ;;  %4406 = vmatprep.subr.bf16.mxu0 %v4405_v45  ;;  %499 = vst [vmem:[#allocation2 + $0x30] sm:$0x7] %v483_v23  ;;  %4994 = vset.pattern.permute.xlu0 %v5245_v8  ;;  %v634_v45 = vcombine.high %v5900_v21, %v5900_v21  ;;  %v742_v23 = vcombine.high %v5926_v63, %v5926_v63 }
 0x180   : > { %v1664_v32 = vsel %vm536_vm0, %v1649_v47, %v1651_v58  ;;  %v1584_v13 = vsel %vm7292_vm12, %v1568_v26, %v6056_v14  ;;  %v1908_v54 = vld [vmem:[#allocation2 + $0x1a0] sm:$0xff]  ;;  %v511_v58 = vcombine.high %v5875_v16, %v5875_v16  ;;  %v4429_v14 = vpack.c.bf16 %v1907_v37, %v1900_v10  ;;  %5020 = vset.pattern.permute.xlu1 %v5245_v8 }
 0x181   : > { %1678 = vst [vmem:[#allocation2 + $0x1c0] ss:$-52 sps:$4 sm:$0x83] %v1664_v32   ;;  %1598 = vst [vmem:[#allocation2 + $0x188] sm:$0xe] %v1584_v13  ;;  %1779 = vrot.lane.b32.xlu1 %v1766_v2, %s7337_s13  ;;  %1724 = vrot.lane.b32.xlu0 %v1710_v36, %s7336_s14  ;;  %v4427_v7 = vpack.c.bf16 %v1908_v54, %v1901_v18  ;;  %v569_v2 = vcombine.high %v5890_v12, %v5890_v12  ;;  %v642_v21 = vrot.slane %v634_v45, 7 }
 0x182   : > { %v519_v16 = vrot.slane %v511_v58, 5  ;;  %v6153_v36 = vld [vmem:[%s5432_s26 + $0x1c] sm:$0x77]  ;;  %v865_v58 = vcombine.high %v5946_v27, %v5946_v27  ;;  %vm1936_vm12 = vcmask 1042432  }
 0x183   : > { %v1717_v22 = vpop.permute.xlu1 %1716  ;;  %v6142_v4 = vpop.permute.xlu0 %1714  ;;  %4428 = vmatprep.subr.bf16.mxu1 %v4427_v7  ;;  %v577_v54 = vrot.slane %v569_v2, 2  ;;  %vm6204_vm14 = vmpackc.low %vm1936_vm12, %vm7295_vm13  ;;  %vm1932_vm12 = vcmask 613376   ;;  %vm7296_vm13 = vmmov 0  }
 0x184   : > { %v1729_v6 = vsel %vm594_vm1, %v6142_v4, %v1717_v22  ;;  %4430 = vmatpush1.bf16.msra.mxu1 %v4429_v14  ;;  %v1898_v13 = vld [vmem:[#allocation2 + $0x150] sm:$0xff]  ;;  %v807_v14 = vcombine.high %v5939_v62, %v5939_v62  ;;  %v973_v62 = vcombine.high %v5972_v50, %v5972_v50 }
 0x185   : > { %1743 = vst [vmem:[#allocation2 + $0x1c8] sm:$0x1c] %v1729_v6  ;;  %1828 = vrot.lane.b32.xlu1 %v1816_v15, %s7338_s23  ;;  %1781 = vrot.lane.b32.xlu0 %v1767_v48, %s7337_s13  ;;  %v750_v48 = vrot.slane %v742_v23, 1 }
 0x186   : > { %v815_v27 = vrot.slane %v807_v14, 6 }
 0x187   : > { %v6155_v47 = vpop.permute.xlu1 %1720  ;;  %v1719_v26 = vpop.permute.xlu0 %1718 }
 0x188   : > { %v1730_v37 = vsel %vm594_vm1, %v1717_v22, %v1719_v26  ;;  %v1731_v32 = vsel %vm594_vm1, %v1719_v26, %v6155_v47  ;;  %v1905_v18 = vld [vmem:[#allocation2 + $0x188] sm:$0xff] }
 0x189   : > { %1744 = vst [vmem:[#allocation2 + $0x1d0] sm:$0x1c] %v1730_v37  ;;  %1745 = vst [vmem:[#allocation2 + $0x1d8] sm:$0x1c] %v1731_v32  ;;  %534 = vrot.lane.b32.xlu1 %v519_v16, %s7335_s16  ;;  %1830 = vrot.lane.b32.xlu0 %v6153_v36, %s7338_s23  ;;  %v4407_v12 = vpack.c.bf16 %v1905_v18, %v1898_v13  ;;  %v873_v16 = vrot.slane %v865_v58, 3  ;;  %v1096_v37 = vcombine.high %v5994_v52, %v5994_v52 }
 0x18a   : > { %v923_v32 = vcombine.high %v5969_v59, %v5969_v59  ;;  %v1031_v13 = vcombine.high %v5985_v40, %v5985_v40  ;;  %v1204_v40 = vcombine.high %v6021_v3, %v6021_v3 }
 0x18b   : > { %v1774_v15 = vpop.permute.xlu1 %1773  ;;  %v1772_v7 = vpop.permute.xlu0 %1771  ;;  %4408 = vmatpush1.bf16.msra.mxu0 %v4407_v12 }
 0x18c   : > { %v1786_v10 = vsel %vm659_vm2, %v1772_v7, %v1774_v15  ;;  %v1039_v59 = vrot.slane %v1031_v13, 2 }
 0x18d   : > { %1800 = vst [vmem:[#allocation2 + $0x1c8] sm:$0xe0] %v1786_v10  ;;  %657 = vrot.lane.b32.xlu1 %v642_v21, %s7337_s13  ;;  %592 = vrot.lane.b32.xlu0 %v577_v54, %s7336_s14  ;;  %v1104_v21 = vrot.slane %v1096_v37, 7 }
 0x18f   : > { %v6172_v8 = vpop.permute.xlu1 %1777  ;;  %v1776_v63 = vpop.permute.xlu0 %1775 }
 0x190   : > { %v1787_v22 = vsel %vm659_vm2, %v1774_v15, %v1776_v63  ;;  %v1788_v6 = vsel %vm659_vm2, %v1776_v63, %v6172_v8  ;;  %v1327_v63 = vcombine.high %v6044_v17, %v6044_v17 }
 0x191   : > { %1801 = vst [vmem:[#allocation2 + $0x1d0] sm:$0xe0] %v1787_v22  ;;  %1802 = vst [vmem:[#allocation2 + $0x1d8] sm:$0xe0] %v1788_v6  ;;  %765 = vrot.lane.b32.xlu1 %v750_v48, %s7339_s11  ;;  %707 = vrot.lane.b32.xlu0 %v5912_v42, %s7338_s23  ;;  %v981_v42 = vrot.slane %v973_v62, 5 }
 0x192   : > { %v1335_v37 = vrot.slane %v1327_v63, 3  ;;  %v1703_v63 = vcombine.high %v6119_v19, %v6119_v19 }
 0x193   : > { %v1823_v45 = vpop.permute.xlu1 %1822  ;;  %v1821_v2 = vpop.permute.xlu0 %1820 }
 0x194   : > { %v1835_v26 = vsel %vm709_vm3, %v1821_v2, %v1823_v45  ;;  %v1913_v48 = vld [vmem:[#allocation2 + $0x1c8] sm:$0xff]  ;;  %v1711_v19 = vrot.slane %v1703_v63, 6 }
 0x195   : > { %1849 = vst [vmem:[#allocation2 + $0x200] sm:$0x7] %v1835_v26  ;;  %888 = vrot.lane.b32.xlu1 %v873_v16, %s7323_s18  ;;  %830 = vrot.lane.b32.xlu0 %v815_v27, %s7322_s15  ;;  %s5252_s18 = smov 72   ;;  %s5264_s15 = smov 71  }
 0x197   : > { %v6191_v50 = vpop.permute.xlu1 %1826  ;;  %v1825_v18 = vpop.permute.xlu0 %1824 }
 0x198   : > { %v1836_v12 = vsel %vm709_vm3, %v1823_v45, %v1825_v18  ;;  %v1837_v52 = vsel %vm709_vm3, %v1825_v18, %v6191_v50  ;;  %v1915_v16 = vld [vmem:[#allocation2 + $0x1d8] sm:$0xff]  ;;  %v1914_v45 = vld [vmem:[#allocation2 + $0x1d0] sm:$0xff] }
 0x199   : > { %1850 = vst [vmem:[#allocation2 + $0x208] sm:$0x7] %v1836_v12  ;;  %1851 = vst [vmem:[#allocation2 + $0x210] sm:$0x7] %v1837_v52  ;;  %996 = vrot.lane.b32.xlu1 %v981_v42, %s7325_s27  ;;  %938 = vrot.lane.b32.xlu0 %v923_v32, %s7324_s22  ;;  %s7342_s27 = smov 63   ;;  %s5251_s22 = smov 85  }
 0x19a   : > { %v5119_v18 = vld [vmem:[%s5432_s26 + $0x1c] ss:$0 sps:$4 sm:$0x77]   ;;  %s5250_s26 = smov 98  }
 0x19b   : > { %v1770_v54 = vpop.permute.xlu1 %1769  ;;  %v1713_v23 = vpop.permute.xlu0 %1712  ;;  %1627 = vst [vmem:[#allocation2 + $0x1b8] sm:$0x70] %v5119_v18 }
 0x19c   : > { %v1785_v15 = vsel %vm659_vm2, %v1770_v54, %v1772_v7  ;;  %v1728_v10 = vsel %vm594_vm1, %v1713_v23, %v6142_v4  ;;  %v1920_v58 = vld [vmem:[#allocation2 + $0x200] sm:$0x7]  ;;  %v1212_v7 = vrot.slane %v1204_v40, 1  ;;  %v1269_v4 = vcombine.high %v6032_v46, %v6032_v46 }
 0x19d   : > { %1799 = vst [vmem:[#allocation2 + $0x1c0] sm:$0xe0] %v1785_v15  ;;  %1742 = vst [vmem:[#allocation2 + $0x1c0] sm:$0x1c] %v1728_v10  ;;  %1119 = vrot.lane.b32.xlu1 %v1104_v21, %s7342_s27  ;;  %1054 = vrot.lane.b32.xlu0 %v1039_v59, %s7326_s25  ;;  %v4409_v3 = vpack.c.bf16 %v1920_v58, %v1913_v48  ;;  %v1385_v21 = vcombine.high %v6067_v30, %v6067_v30  ;;  %s5261_s27 = smov 84   ;;  %s5262_s25 = smov 83  }
 0x19e   : > { %v1277_v42 = vrot.slane %v1269_v4, 6  ;;  %v1493_v59 = vcombine.high %v6083_v57, %v6083_v57 }
 0x19f   : > { %v531_v22 = vpop.permute.xlu1 %530  ;;  %v1819_v6 = vpop.permute.xlu0 %1818  ;;  %4411 = vmatprep.subr.msk.bf16.mxu0 %vm6204_vm14, %v4409_v3 }
 0x1a0   : > { %v541_v17 = vsel %vm536_vm0, %v5587_v53, %v531_v22  ;;  %v1834_v27 = vsel %vm709_vm3, %v1819_v6, %v1821_v2  ;;  %v1922_v62 = vld [vmem:[#allocation2 + $0x210] sm:$0x7]  ;;  %v1921_v26 = vld [vmem:[#allocation2 + $0x208] sm:$0x7]  ;;  %v1435_v53 = vcombine.high %v6070_v35, %v6070_v35  ;;  %v6240_v35 = vld [vmem:[%s7226_s1] sm:$0x3f]  ;;  %v1760_v6 = vcombine.high %v6129_v38, %v6129_v38 }
 0x1a1   : > { %555 = vst [vmem:[#allocation2 + $0x20] sm:$0x38] %v541_v17  ;;  %1848 = vst [vmem:[#allocation2 + $0x1f8] sm:$0x7] %v1834_v27  ;;  %1227 = vrot.lane.b32.xlu1 %v1212_v7, %s7328_s24  ;;  %1169 = vrot.lane.b32.xlu0 %v6005_v43, %s7327_s21  ;;  %v4431_v46 = vpack.c.bf16 %v1922_v62, %v1915_v16  ;;  %v4434_v32 = vpack.c.bf16 %v1921_v26, %v1914_v45  ;;  %v1501_v58 = vrot.slane %v1493_v59, 2  ;;  %s5258_s24 = smov 99  }
 0x1a2   : > { %v1558_v43 = vcombine.high %v6095_v39, %v6095_v39  ;;  %v5247_v39 = vmov 0.0|0.0   ;;  %v1817_v62 = vcombine.high %v6153_v36, %v6153_v36  ;;  %v1768_v38 = vrot.slane %v1760_v6, 3  ;;  %v1926_v36 = vld [vmem:[%s7227_s2] sm:$0x3f]  ;;  %s5259_s21 = smov 97  }
 0x1a3   : > { %v589_v13 = vpop.permute.xlu1 %588  ;;  %v6224_v2 = vpop.permute.xlu0 %532  ;;  %4433 = vmatprep.subr.msk.bf16.mxu1 %vm6204_vm14, %v4431_v46 }
 0x1a4   : > { %v599_v12 = vsel %vm594_vm1, %v5607_v5, %v589_v13  ;;  %v542_v52 = vsel %vm536_vm0, %v531_v22, %v6224_v2  ;;  %4436 = vmatpush1.bf16.msk.msra.mxu1 %vm6204_vm14, %v4434_v32  ;;  %v1443_v5 = vrot.slane %v1435_v53, 5  ;;  %v1912_v15 = vld [vmem:[#allocation2 + $0x1c0] sm:$0xff]  ;;  %v1566_v48 = vrot.slane %v1558_v43, 7 }
 0x1a5   : > { %613 = vst [vmem:[#allocation2 + $0x58] ss:$-52 sps:$4 sm:$0xc1] %v599_v12   ;;  %556 = vst [vmem:[#allocation2 + $0x28] sm:$0x38] %v542_v52  ;;  %1350 = vrot.lane.b32.xlu1 %v1335_v37, %s7330_s20  ;;  %1292 = vrot.lane.b32.xlu0 %v1277_v42, %s7329_s19  ;;  %s5256_s20 = smov 110  }
 0x1a6   : > { %4459 = vmatprep.subr.bf16.mxu1 %v5247_v39  ;;  %s5257_s19 = smov 100  }
 0x1a7   : > { %v654_v40 = vpop.permute.xlu1 %653  ;;  %v6249_v54 = vpop.permute.xlu0 %590  ;;  %4210 = vmatmul.mubr.msk.f32.vlgmr.msra.gmra.mrb[0].mxu1 %vm1932_vm12, %v6240_v35 }
 0x1a8   : > { %v664_v30 = vsel %vm659_vm2, %v5637_v31, %v654_v40  ;;  %v600_v23 = vsel %vm594_vm1, %v589_v13, %v6249_v54  ;;  %v1919_v10 = vld [vmem:[#allocation2 + $0x1f8] sm:$0x7]  ;;  %v1639_v31 = vcombine.high %v6105_v41, %v6105_v41  ;;  %4332 = vmatprep.mubr.msk.f32.mxu1 %vm7296_vm13, %v5244_v0  ;;  %vm7343_vm13 = vcmask 498688  }
 0x1a9   : > { %678 = vst [vmem:[#allocation2 + $0x58] sm:$0xe] %v664_v30  ;;  %614 = vst [vmem:[#allocation2 + $0x60] ss:$-52 sps:$4 sm:$0xc1] %v600_v23   ;;  %1458 = vrot.lane.b32.xlu1 %v1443_v5, %s7331_s28  ;;  %1400 = vrot.lane.b32.xlu0 %v1385_v21, %s7332_s0  ;;  %v4412_v57 = vpack.c.bf16 %v1919_v10, %v1912_v15  ;;  %s5260_s28 = smov 86  }
 0x1aa   : > { %v1647_v41 = vrot.slane %v1639_v31, 1  ;;  %s5265_s0 = smov 70  }
 0x1ab   : > { %v704_v3 = vpop.permute.xlu1 %703  ;;  %v6263_v7 = vpop.permute.xlu0 %655  ;;  %4414 = vmatpush1.bf16.msk.msra.mxu0 %vm6204_vm14, %v4412_v57 }
 0x1ac   : > { %v714_v4 = vsel %vm709_vm3, %v5658_v29, %v704_v3  ;;  %v665_v22 = vsel %vm659_vm2, %v654_v40, %v6263_v7  ;;  %v1860_v5 = vld [vmem:[#allocation2 + $0x20] sm:$0xff] }
 0x1ad   : > { %728 = vst [vmem:[#allocation2 + $0x58] sm:$0x70] %v714_v4  ;;  %679 = vst [vmem:[#allocation2 + $0x60] sm:$0xe] %v665_v22  ;;  %1581 = vrot.lane.b32.xlu1 %v1566_v48, %s7334_s29  ;;  %1516 = vrot.lane.b32.xlu0 %v1501_v58, %s7333_s3  ;;  %s5249_s29 = smov 111   ;;  %s5266_s3 = smov 69  }
 0x1ae   : > { %4207 = vmatmul.mubr.msk.f32.vlgmr.msra.gmra.mrb[0].mxu0 %vm1932_vm12, %v6240_v35 }
 0x1af   : > { %v762_v16 = vpop.permute.xlu1 %761  ;;  %v6277_v17 = vpop.permute.xlu0 %705  ;;  %2164 = vmatprep.mubr.f32.mxu0 %v5244_v0 }
 0x1b0   : > { %v772_v29 = vsel %vm767_vm4, %v5678_v60, %v762_v16  ;;  %v715_v27 = vsel %vm709_vm3, %v704_v3, %v6277_v17  ;;  %v1861_v53 = vld [vmem:[#allocation2 + $0x28] sm:$0xff] }
 0x1b1   : > { %786 = vst [vmem:[#allocation2 + $0x90] ss:$-52 sps:$4 sm:$0x83] %v772_v29   ;;  %729 = vst [vmem:[#allocation2 + $0x60] sm:$0x70] %v715_v27  ;;  %1726 = vrot.lane.b32.xlu1 %v1711_v19, %s7336_s14  ;;  %1662 = vrot.lane.b32.xlu0 %v1647_v41, %s7335_s16 }
 0x1b3   : > { %v827_v45 = vpop.permute.xlu1 %826  ;;  %v6288_v26 = vpop.permute.xlu0 %763 }
 0x1b4   : > { %v837_v37 = vsel %vm832_vm5, %v5737_v1, %v827_v45  ;;  %v773_v60 = vsel %vm767_vm4, %v762_v16, %v6288_v26 }
 0x1b5   : > { %851 = vst [vmem:[#allocation2 + $0x90] sm:$0x1c] %v837_v37  ;;  %787 = vst [vmem:[#allocation2 + $0x98] ss:$-52 sps:$4 sm:$0x83] %v773_v60   ;;  %1832 = vrot.lane.b32.xlu1 %v1817_v62, %s7338_s23  ;;  %1783 = vrot.lane.b32.xlu0 %v1768_v38, %s7337_s13 }
 0x1b7   : > { %v885_v46 = vpop.permute.xlu1 %884  ;;  %v6301_v32 = vpop.permute.xlu0 %828 }
 0x1b8   : > { %v895_v1 = vsel %vm890_vm6, %v5758_v33, %v885_v46  ;;  %v838_v42 = vsel %vm832_vm5, %v827_v45, %v6301_v32  ;;  %v1867_v12 = vld [vmem:[#allocation2 + $0x58] sm:$0xff] }
 0x1b9   : > { %909 = vst [vmem:[#allocation2 + $0x90] sm:$0xe0] %v895_v1  ;;  %852 = vst [vmem:[#allocation2 + $0x98] sm:$0x1c] %v838_v42  ;;  %1929 = vperm.xlu0 %4994, %v1926_v36   ;;  %v4439_v59 = vpack.c.bf16 %v1867_v12, %v1860_v5 }
 0x1bb   : > { %v935_v13 = vpop.permute.xlu1 %934  ;;  %v6307_v18 = vpop.permute.xlu0 %886 }
 0x1bc   : > { %v945_v52 = vsel %vm940_vm7, %v5775_v49, %v935_v13  ;;  %v896_v43 = vsel %vm890_vm6, %v885_v46, %v6307_v18  ;;  %v1868_v21 = vld [vmem:[#allocation2 + $0x60] sm:$0xff] }
 0x1bd   : > { %959 = vst [vmem:[#allocation2 + $0xc8] sm:$0x7] %v945_v52  ;;  %910 = vst [vmem:[#allocation2 + $0x98] sm:$0xe0] %v896_v43  ;;  %v4437_v33 = vpack.c.bf16 %v1868_v21, %v1861_v53 }
 0x1bf   : > { %v993_v40 = vpop.permute.xlu1 %992  ;;  %v6313_v30 = vpop.permute.xlu0 %936  ;;  %4438 = vmatprep.subr.bf16.mxu0 %v4437_v33 }
 0x1c0   : > { %v1003_v23 = vsel %vm998_vm8, %v5797_v11, %v993_v40  ;;  %v946_v15 = vsel %vm940_vm7, %v935_v13, %v6313_v30  ;;  %4440 = vmatpush1.bf16.msra.mxu0 %v4439_v59  ;;  %v1874_v62 = vld [vmem:[#allocation2 + $0x90] sm:$0xff] }
 0x1c1   : > { %1017 = vst [vmem:[#allocation2 + $0xc8] sm:$0x38] %v1003_v23  ;;  %960 = vst [vmem:[#allocation2 + $0xd0] sm:$0x7] %v946_v15 }
 0x1c3   : > { %v1051_v49 = vpop.permute.xlu1 %1050  ;;  %v6319_v10 = vpop.permute.xlu0 %994 }
 0x1c4   : > { %v1061_v48 = vsel %vm7298_vm9, %v5817_v34, %v1051_v49  ;;  %v1004_v57 = vsel %vm998_vm8, %v993_v40, %v6319_v10  ;;  %v1875_v19 = vld [vmem:[#allocation2 + $0x98] sm:$0xff] }
 0x1c5   : > { %1075 = vst [vmem:[#allocation2 + $0x100] ss:$-52 sps:$4 sm:$0xc1] %v1061_v48   ;;  %1018 = vst [vmem:[#allocation2 + $0xd0] sm:$0x38] %v1004_v57 }
 0x1c7   : > { %v1116_v58 = vpop.permute.xlu1 %1115  ;;  %v6325_v63 = vpop.permute.xlu0 %1052 }
 0x1c8   : > { %v1126_v11 = vsel %vm7299_vm10, %v5855_v24, %v1116_v58  ;;  %v1062_v31 = vsel %vm7298_vm9, %v1051_v49, %v6325_v63  ;;  %vm7344_vm9 = vcmask 490496  }
 0x1c9   : > { %1140 = vst [vmem:[#allocation2 + $0x100] sm:$0xe] %v1126_v11  ;;  %1076 = vst [vmem:[#allocation2 + $0x108] ss:$-52 sps:$4 sm:$0xc1] %v1062_v31  }
 0x1cb   : > { %v1166_v3 = vpop.permute.xlu1 %1165  ;;  %v6331_v4 = vpop.permute.xlu0 %1117 }
 0x1cc   : > { %v1176_v34 = vsel %vm7300_vm11, %v5877_v56, %v1166_v3  ;;  %v1127_v22 = vsel %vm7299_vm10, %v1116_v58, %v6331_v4  ;;  %v1881_v24 = vld [vmem:[#allocation2 + $0xc8] sm:$0xff]  ;;  %vm7345_vm10 = vmmov %vm7343_vm13 }
 0x1cd   : > { %1190 = vst [vmem:[#allocation2 + $0x100] sm:$0x70] %v1176_v34  ;;  %1141 = vst [vmem:[#allocation2 + $0x108] sm:$0xe] %v1127_v22  ;;  %v4443_v38 = vpack.c.bf16 %v1881_v24, %v1874_v62 }
 0x1cf   : > { %v1224_v41 = vpop.permute.xlu1 %1223  ;;  %v6337_v6 = vpop.permute.xlu0 %1167 }
 0x1d0   : > { %v1234_v16 = vsel %vm7343_vm13, %v5902_v61, %v1224_v41  ;;  %v1177_v29 = vsel %vm7300_vm11, %v1166_v3, %v6337_v6  ;;  %v1882_v27 = vld [vmem:[#allocation2 + $0xd0] sm:$0xff]  ;;  %vm7346_vm13 = vcmask 261120   ;;  %vm7347_vm11 = vmmov %vm7344_vm9 }
 0x1d1   : > { %1248 = vst [vmem:[#allocation2 + $0x138] ss:$-52 sps:$4 sm:$0x83] %v1234_v16   ;;  %1191 = vst [vmem:[#allocation2 + $0x108] sm:$0x70] %v1177_v29  ;;  %v4441_v56 = vpack.c.bf16 %v1882_v27, %v1875_v19 }
 0x1d3   : > { %v1289_v45 = vpop.permute.xlu1 %1288  ;;  %v6343_v37 = vpop.permute.xlu0 %1225  ;;  %4442 = vmatprep.subr.bf16.mxu0 %v4441_v56 }
 0x1d4   : > { %v1299_v60 = vsel %vm7344_vm9, %v5928_v9, %v1289_v45  ;;  %v1235_v36 = vsel %vm7345_vm10, %v1224_v41, %v6343_v37  ;;  %4444 = vmatpush1.bf16.msra.mxu0 %v4443_v38  ;;  %vm7348_vm9 = vmmov %vm7346_vm13  ;;  %vm7349_vm10 = vcmask 244736  }
 0x1d5   : > { %1313 = vst [vmem:[#allocation2 + $0x138] sm:$0x1c] %v1299_v60  ;;  %1249 = vst [vmem:[#allocation2 + $0x140] ss:$-52 sps:$4 sm:$0x83] %v1235_v36  }
 0x1d7   : > { %v1347_v61 = vpop.permute.xlu1 %1346  ;;  %v6349_v46 = vpop.permute.xlu0 %1290 }
 0x1d8   : > { %v1357_v1 = vsel %vm7346_vm13, %v5948_v28, %v1347_v61  ;;  %v1300_v42 = vsel %vm7347_vm11, %v1289_v45, %v6349_v46  ;;  %vm7350_vm11 = vcmask 236544   ;;  %vm7351_vm13 = vmmov %vm7349_vm10  ;;  %v1888_v49 = vld [vmem:[#allocation2 + $0x100] sm:$0xff] }
 0x1d9   : > { %1371 = vst [vmem:[#allocation2 + $0x138] sm:$0xe0] %v1357_v1  ;;  %1314 = vst [vmem:[#allocation2 + $0x140] sm:$0x1c] %v1300_v42 }
 0x1db   : > { %v1397_v53 = vpop.permute.xlu1 %1396  ;;  %v6355_v13 = vpop.permute.xlu0 %1348 }
 0x1dc   : > { %v1407_v9 = vsel %vm1402_vm15, %v6009_v51, %v1397_v53  ;;  %v1358_v12 = vsel %vm7348_vm9, %v1347_v61, %v6355_v13  ;;  %v1889_v33 = vld [vmem:[#allocation2 + $0x108] sm:$0xff]  ;;  %vm7352_vm9 = vcmask 228352  }
 0x1dd   : > { %1421 = vst [vmem:[#allocation2 + $0x170] sm:$0x7] %v1407_v9  ;;  %1372 = vst [vmem:[#allocation2 + $0x140] sm:$0xe0] %v1358_v12 }
 0x1df   : > { %v1455_v52 = vpop.permute.xlu1 %1454  ;;  %v6361_v43 = vpop.permute.xlu0 %1398 }
 0x1e0   : > { %v1465_v28 = vsel %vm7349_vm10, %v6036_v55, %v1455_v52  ;;  %v1408_v21 = vsel %vm1402_vm15, %v1397_v53, %v6361_v43  ;;  %v1895_v51 = vld [vmem:[#allocation2 + $0x138] sm:$0xff]  ;;  %vm7353_vm10 = vmmov %vm7350_vm11 }
 0x1e1   : > { %1479 = vst [vmem:[#allocation2 + $0x170] sm:$0x38] %v1465_v28  ;;  %1422 = vst [vmem:[#allocation2 + $0x178] sm:$0x7] %v1408_v21  ;;  %v4447_v48 = vpack.c.bf16 %v1895_v51, %v1888_v49 }
 0x1e3   : > { %v1513_v5 = vpop.permute.xlu1 %1512  ;;  %v6367_v59 = vpop.permute.xlu0 %1456 }
 0x1e4   : > { %v1523_v40 = vsel %vm7350_vm11, %v6058_v20, %v1513_v5  ;;  %v1466_v23 = vsel %vm7351_vm13, %v1455_v52, %v6367_v59  ;;  %v1896_v15 = vld [vmem:[#allocation2 + $0x140] sm:$0xff]  ;;  %vm7354_vm11 = vmmov %vm7352_vm9  ;;  %vm7358_vm13 = vcmask 506880  }
 0x1e5   : > { %1537 = vst [vmem:[#allocation2 + $0x1a8] ss:$-52 sps:$4 sm:$0xc1] %v1523_v40   ;;  %1480 = vst [vmem:[#allocation2 + $0x178] sm:$0x38] %v1466_v23  ;;  %v4445_v55 = vpack.c.bf16 %v1896_v15, %v1889_v33 }
 0x1e7   : > { %v1578_v57 = vpop.permute.xlu1 %1577  ;;  %v6373_v58 = vpop.permute.xlu0 %1514  ;;  %4446 = vmatprep.subr.bf16.mxu0 %v4445_v55 }
 0x1e8   : > { %v1588_v11 = vsel %vm7352_vm9, %v6085_v25, %v1578_v57  ;;  %v1524_v31 = vsel %vm7353_vm10, %v1513_v5, %v6373_v58  ;;  %4448 = vmatpush1.bf16.msra.mxu0 %v4447_v48  ;;  %vm7359_vm9 = vcmask 261120   ;;  %vm7360_vm10 = vcmask 490496  }
 0x1e9   : > { %1602 = vst [vmem:[#allocation2 + $0x1a8] sm:$0xe] %v1588_v11  ;;  %1538 = vst [vmem:[#allocation2 + $0x1b0] ss:$-52 sps:$4 sm:$0xc1] %v1524_v31  }
 0x1eb   : > { %v1659_v20 = vpop.permute.xlu1 %1658  ;;  %v6379_v3 = vpop.permute.xlu0 %1579 }
 0x1ec   : > { %v1668_v34 = vsel %vm536_vm0, %v6107_v44, %v1659_v20  ;;  %v1589_v22 = vsel %vm7354_vm11, %v1578_v57, %v6379_v3  ;;  %v1902_v61 = vld [vmem:[#allocation2 + $0x170] sm:$0xff]  ;;  %vm7361_vm11 = vcmask 244736  }
 0x1ed   : > { %1682 = vst [vmem:[#allocation2 + $0x1e0] ss:$-52 sps:$4 sm:$0x83] %v1668_v34   ;;  %1603 = vst [vmem:[#allocation2 + $0x1b0] sm:$0xe] %v1589_v22 }
 0x1ef   : > { %v1723_v19 = vpop.permute.xlu1 %1722  ;;  %v6385_v41 = vpop.permute.xlu0 %1660 }
 0x1f0   : > { %v1732_v25 = vsel %vm594_vm1, %v6155_v47, %v1723_v19  ;;  %v1669_v24 = vsel %vm536_vm0, %v1659_v20, %v6385_v41  ;;  %v1903_v56 = vld [vmem:[#allocation2 + $0x178] sm:$0xff] }
 0x1f1   : > { %1746 = vst [vmem:[#allocation2 + $0x1e0] sm:$0x1c] %v1732_v25  ;;  %1683 = vst [vmem:[#allocation2 + $0x1e8] ss:$-52 sps:$4 sm:$0x83] %v1669_v24  }
 0x1f3   : > { %v1780_v16 = vpop.permute.xlu1 %1779  ;;  %v6391_v29 = vpop.permute.xlu0 %1724 }
 0x1f4   : > { %v1789_v44 = vsel %vm659_vm2, %v6172_v8, %v1780_v16  ;;  %v1733_v27 = vsel %vm594_vm1, %v1723_v19, %v6391_v29  ;;  %v1909_v47 = vld [vmem:[#allocation2 + $0x1a8] sm:$0xff] }
 0x1f5   : > { %1803 = vst [vmem:[#allocation2 + $0x1e0] sm:$0xe0] %v1789_v44  ;;  %1747 = vst [vmem:[#allocation2 + $0x1e8] sm:$0x1c] %v1733_v27  ;;  %v4451_v1 = vpack.c.bf16 %v1909_v47, %v1902_v61 }
 0x1f7   : > { %v1829_v62 = vpop.permute.xlu1 %1828  ;;  %v6397_v38 = vpop.permute.xlu0 %1781 }
 0x1f8   : > { %v1838_v45 = vsel %vm709_vm3, %v6191_v50, %v1829_v62  ;;  %v1790_v60 = vsel %vm659_vm2, %v1780_v16, %v6397_v38  ;;  %v1910_v36 = vld [vmem:[#allocation2 + $0x1b0] sm:$0xff] }
 0x1f9   : > { %1852 = vst [vmem:[#allocation2 + $0x218] sm:$0x7] %v1838_v45  ;;  %1804 = vst [vmem:[#allocation2 + $0x1e8] sm:$0xe0] %v1790_v60  ;;  %v4449_v8 = vpack.c.bf16 %v1910_v36, %v1903_v56 }
 0x1fb   : > { %v535_v42 = vpop.permute.xlu1 %534  ;;  %v6403_v53 = vpop.permute.xlu0 %1830  ;;  %4450 = vmatprep.subr.bf16.mxu0 %v4449_v8 }
 0x1fc   : > { %v543_v9 = vsel %vm536_vm0, %v6224_v2, %v535_v42  ;;  %v1839_v12 = vsel %vm709_vm3, %v1829_v62, %v6403_v53  ;;  %4452 = vmatpush1.bf16.msra.mxu0 %v4451_v1 }
 0x1fd   : > { %557 = vst [vmem:[#allocation2 + $0x30] sm:$0x38] %v543_v9  ;;  %1853 = vst [vmem:[#allocation2 + $0x220] sm:$0x7] %v1839_v12 }
 0x1ff   : > { %v658_v50 = vpop.permute.xlu1 %657  ;;  %v593_v52 = vpop.permute.xlu0 %592 }
 0x200   : > { %v666_v28 = vsel %vm659_vm2, %v6263_v7, %v658_v50  ;;  %v601_v21 = vsel %vm594_vm1, %v6249_v54, %v593_v52  ;;  %v1917_v33 = vld [vmem:[#allocation2 + $0x1e8] sm:$0xff]  ;;  %v1923_v2 = vld [vmem:[#allocation2 + $0x218] sm:$0x7]  ;;  %v1916_v7 = vld [vmem:[#allocation2 + $0x1e0] sm:$0xff] }
 0x201   : > { %680 = vst [vmem:[#allocation2 + $0x68] sm:$0xe] %v666_v28  ;;  %615 = vst [vmem:[#allocation2 + $0x68] ss:$-52 sps:$4 sm:$0xc1] %v601_v21   ;;  %v4456_v49 = vpack.c.bf16 %v1923_v2, %v1916_v7 }
 0x203   : > { %v766_v5 = vpop.permute.xlu1 %765  ;;  %v708_v51 = vpop.permute.xlu0 %707 }
 0x204   : > { %v774_v40 = vsel %vm767_vm4, %v6288_v26, %v766_v5  ;;  %v716_v23 = vsel %vm709_vm3, %v6277_v17, %v708_v51  ;;  %v1924_v15 = vld [vmem:[#allocation2 + $0x220] sm:$0x7] }
 0x205   : > { %788 = vst [vmem:[#allocation2 + $0xa0] ss:$-52 sps:$4 sm:$0x83] %v774_v40   ;;  %730 = vst [vmem:[#allocation2 + $0x68] sm:$0x70] %v716_v23  ;;  %v4453_v55 = vpack.c.bf16 %v1924_v15, %v1917_v33 }
 0x207   : > { %v889_v48 = vpop.permute.xlu1 %888  ;;  %v831_v54 = vpop.permute.xlu0 %830  ;;  %4455 = vmatprep.subr.msk.bf16.mxu0 %vm6204_vm14, %v4453_v55 }
 0x208   : > { %v897_v57 = vsel %vm890_vm6, %v6307_v18, %v889_v48  ;;  %v839_v26 = vsel %vm832_vm5, %v6301_v32, %v831_v54  ;;  %4458 = vmatpush1.bf16.msk.msra.mxu0 %vm6204_vm14, %v4456_v49  ;;  %v1862_v18 = vld [vmem:[#allocation2 + $0x30] sm:$0xff]  ;;  %vm7355_vm5 = vcmask 515072   ;;  %vm7356_vm6 = vcmask 523264  }
 0x209   : > { %911 = vst [vmem:[#allocation2 + $0xa0] sm:$0xe0] %v897_v57  ;;  %853 = vst [vmem:[#allocation2 + $0xa0] sm:$0x1c] %v839_v26 }
 0x20b   : > { %v997_v17 = vpop.permute.xlu1 %996  ;;  %v939_v11 = vpop.permute.xlu0 %938  ;;  %4213 = vmatmul.mubr.msk.f32.vlgmr.msra.gmra.mrb[2].mxu0 %vm1932_vm12, %v6240_v35 }
 0x20c   : > { %v1005_v31 = vsel %vm998_vm8, %v6319_v10, %v997_v17  ;;  %v947_v20 = vsel %vm940_vm7, %v6313_v30, %v939_v11  ;;  %v1869_v34 = vld [vmem:[#allocation2 + $0x68] sm:$0xff]  ;;  %vm7357_vm7 = vcmask 498688  }
 0x20d   : > { %1019 = vst [vmem:[#allocation2 + $0xd8] sm:$0x38] %v1005_v31  ;;  %961 = vst [vmem:[#allocation2 + $0xd8] sm:$0x7] %v947_v20  ;;  %v4460_v32 = vpack.c.bf16 %v1869_v34, %v1862_v18  ;;  %v2345_v18 = vld [vmem:[#allocation7 + $0x8] sm:$0xff]  ;;  %v2347_v34 = vld [vmem:[#allocation7 + $0x18] sm:$0xff] }
 0x20f   : > { %v1120_v22 = vpop.permute.xlu1 %1119  ;;  %v1055_v19 = vpop.permute.xlu0 %1054  ;;  %4461 = vmatpush3.bf16.msra.mxu1 %v4460_v32  ;;  %v2344_v32 = vld [vmem:[#allocation7] sm:$0xff] }
 0x210   : > { %v1128_v25 = vsel %vm7355_vm5, %v6331_v4, %v1120_v22  ;;  %v1063_v24 = vsel %vm7356_vm6, %v6325_v63, %v1055_v19  ;;  %4462 = vmatprep.subr.bf16.mxu1 %v5247_v39  ;;  %v1876_v62 = vld [vmem:[#allocation2 + $0xa0] sm:$0xff]  ;;  %vm7362_vm5 = vcmask 228352   ;;  %vm7363_vm6 = vcmask 236544   ;;  %v2346_v19 = vld [vmem:[#allocation7 + $0x10] sm:$0xff] }
 0x211   : > { %1142 = vst [vmem:[#allocation2 + $0x110] sm:$0xe] %v1128_v25  ;;  %1077 = vst [vmem:[#allocation2 + $0x110] ss:$-52 sps:$4 sm:$0xc1] %v1063_v24   ;;  %v4475_v22 = vpack.c.bf16 %v2347_v34, %v2345_v18  ;;  %v2349_v25 = vld [vmem:[#allocation7 + $0x28] sm:$0xff] }
 0x212   : > { %v2351_v24 = vld [vmem:[#allocation7 + $0x38] sm:$0xff]  ;;  %v2380_v18 = vld [vmem:[#allocation7 + $0x120] sm:$0xff]  ;;  %v2382_v34 = vld [vmem:[#allocation7 + $0x130] sm:$0xff] }
 0x213   : > { %v1228_v10 = vpop.permute.xlu1 %1227  ;;  %v1170_v30 = vpop.permute.xlu0 %1169  ;;  %4476 = vmatprep.subr.bf16.mxu0 %v4475_v22  ;;  %v2387_v22 = vld [vmem:[#allocation7 + $0x158] sm:$0xff] }
 0x214   : > { %v1236_v16 = vsel %vm7357_vm7, %v6343_v37, %v1228_v10  ;;  %v1178_v44 = vsel %vm7358_vm13, %v6337_v6, %v1170_v30  ;;  %v4477_v10 = vpack.c.bf16 %v2346_v19, %v2344_v32  ;;  %v4479_v30 = vpack.c.bf16 %v2351_v24, %v2349_v25  ;;  %v2385_v32 = vld [vmem:[#allocation7 + $0x148] sm:$0xff]  ;;  %v2384_v24 = vld [vmem:[#allocation7 + $0x140] sm:$0xff] }
 0x215   : > { %1250 = vst [vmem:[#allocation2 + $0x148] ss:$-52 sps:$4 sm:$0x83] %v1236_v16   ;;  %1192 = vst [vmem:[#allocation2 + $0x110] sm:$0x70] %v1178_v44  ;;  %v2348_v16 = vld [vmem:[#allocation7 + $0x20] sm:$0xff]  ;;  %v4513_v19 = vpack.c.bf16 %v2382_v34, %v2380_v18  ;;  %v4515_v25 = vpack.c.bf16 %v2387_v22, %v2385_v32 }
 0x216   : > { %v2350_v44 = vld [vmem:[#allocation7 + $0x30] sm:$0xff]  ;;  %4478 = vmatpush1.bf16.msra.mxu0 %v4477_v10  ;;  %vm3311_vm7 = vcmask 179200   ;;  %vm2988_vm13 = vcmask 908288  }
 0x217   : > { %v1351_v27 = vpop.permute.xlu1 %1350  ;;  %v1293_v56 = vpop.permute.xlu0 %1292  ;;  %4480 = vmatprep.subr.bf16.mxu0 %v4479_v30  ;;  %v2386_v10 = vld [vmem:[#allocation7 + $0x150] sm:$0xff]  ;;  %v2389_v30 = vld [vmem:[#allocation7 + $0x168] sm:$0xff] }
 0x218   : > { %v1359_v4 = vsel %vm7359_vm9, %v6355_v13, %v1351_v27  ;;  %v1301_v63 = vsel %vm7360_vm10, %v6349_v46, %v1293_v56  ;;  %v1883_v47 = vld [vmem:[#allocation2 + $0xd8] sm:$0xff]  ;;  %v2353_v27 = vld [vmem:[#allocation7 + $0x48] sm:$0xff]  ;;  %v2355_v56 = vld [vmem:[#allocation7 + $0x58] sm:$0xff]  ;;  %vm3054_vm9 = vcmask 801792   ;;  %vm3119_vm10 = vcmask 695296  }
 0x219   : > { %1373 = vst [vmem:[#allocation2 + $0x148] sm:$0xe0] %v1359_v4  ;;  %1315 = vst [vmem:[#allocation2 + $0x148] sm:$0x1c] %v1301_v63  ;;  %v4463_v45 = vpack.c.bf16 %v1883_v47, %v1876_v62  ;;  %v4481_v4 = vpack.c.bf16 %v2350_v44, %v2348_v16  ;;  %v4483_v63 = vpack.c.bf16 %v2355_v56, %v2353_v27  ;;  %v2352_v62 = vld [vmem:[#allocation7 + $0x40] sm:$0xff]  ;;  %v2354_v47 = vld [vmem:[#allocation7 + $0x50] sm:$0xff] }
 0x21a   : > { %v2391_v16 = vld [vmem:[#allocation7 + $0x178] sm:$0xff]  ;;  %v4517_v44 = vpack.c.bf16 %v2386_v10, %v2384_v24  ;;  %v2388_v56 = vld [vmem:[#allocation7 + $0x160] sm:$0xff] }
 0x21b   : > { %v1459_v60 = vpop.permute.xlu1 %1458  ;;  %v1401_v37 = vpop.permute.xlu0 %1400  ;;  %4464 = vmatpush3.bf16.msra.mxu1 %v4463_v45  ;;  %v2357_v45 = vld [vmem:[#allocation7 + $0x68] sm:$0xff]  ;;  %4482 = vmatpush1.bf16.msra.mxu0 %v4481_v4  ;;  %v4519_v27 = vpack.c.bf16 %v2391_v16, %v2389_v30  ;;  %v2390_v4 = vld [vmem:[#allocation7 + $0x170] sm:$0xff]  ;;  %v2411_v30 = vld [vmem:[#allocation7 + $0x218] sm:$0xff] }
 0x21c   : > { %v1467_v6 = vsel %vm7361_vm11, %v6367_v59, %v1459_v60  ;;  %v1409_v36 = vsel %vm1402_vm15, %v6361_v43, %v1401_v37  ;;  %4465 = vmatprep.subr.bf16.mxu1 %v5247_v39  ;;  %v1890_v1 = vld [vmem:[#allocation2 + $0x110] sm:$0xff]  ;;  %v2359_v60 = vld [vmem:[#allocation7 + $0x78] sm:$0xff]  ;;  %v4485_v37 = vpack.c.bf16 %v2354_v47, %v2352_v62  ;;  %4484 = vmatprep.subr.bf16.mxu0 %v4483_v63  ;;  %vm7364_vm15 = vmmov 1  }
 0x21d   : > { %1481 = vst [vmem:[#allocation2 + $0x180] sm:$0x38] %v1467_v6  ;;  %1423 = vst [vmem:[#allocation2 + $0x180] sm:$0x7] %v1409_v36  ;;  %v4487_v6 = vpack.c.bf16 %v2359_v60, %v2357_v45  ;;  %v2356_v36 = vld [vmem:[#allocation7 + $0x60] sm:$0xff]  ;;  %v2393_v63 = vld [vmem:[#allocation7 + $0x188] sm:$0xff]  ;;  %v4521_v47 = vpack.c.bf16 %v2390_v4, %v2388_v56 }
 0x21e   : > { %v2395_v62 = vld [vmem:[#allocation7 + $0x198] sm:$0xff]  ;;  %v2392_v60 = vld [vmem:[#allocation7 + $0x180] sm:$0xff]  ;;  %v2410_v56 = vld [vmem:[#allocation7 + $0x210] sm:$0xff]  ;;  %vm3185_vm11 = vcmask 588800  }
 0x21f   : > { %v1582_v13 = vpop.permute.xlu1 %1581  ;;  %v1517_v46 = vpop.permute.xlu0 %1516  ;;  %4486 = vmatpush1.bf16.msra.mxu0 %v4485_v37  ;;  %v4523_v45 = vpack.c.bf16 %v2395_v62, %v2393_v63  ;;  %v2394_v37 = vld [vmem:[#allocation7 + $0x190] sm:$0xff]  ;;  %v2413_v63 = vld [vmem:[#allocation7 + $0x228] sm:$0xff]  ;;  %v2415_v62 = vld [vmem:[#allocation7 + $0x238] sm:$0xff] }
 0x220   : > { %v1590_v8 = vsel %vm7362_vm5, %v6379_v3, %v1582_v13  ;;  %v1525_v61 = vsel %vm7363_vm6, %v6373_v58, %v1517_v46  ;;  %v1897_v42 = vld [vmem:[#allocation2 + $0x148] sm:$0xff]  ;;  %v2358_v13 = vld [vmem:[#allocation7 + $0x70] sm:$0xff]  ;;  %v2361_v46 = vld [vmem:[#allocation7 + $0x88] sm:$0xff]  ;;  %4488 = vmatprep.subr.bf16.mxu0 %v4487_v6  ;;  %vm2875_vm5 = vcmask 97286   ;;  %vm2878_vm6 = vcmask 93184  }
 0x221   : > { %1604 = vst [vmem:[#allocation2 + $0x1b8] sm:$0xe] %v1590_v8  ;;  %1539 = vst [vmem:[#allocation2 + $0x1b8] ss:$-52 sps:$4 sm:$0xc1] %v1525_v61   ;;  %v4466_v59 = vpack.c.bf16 %v1897_v42, %v1890_v1  ;;  %v2363_v8 = vld [vmem:[#allocation7 + $0x98] sm:$0xff]  ;;  %v4489_v61 = vpack.c.bf16 %v2358_v13, %v2356_v36  ;;  %v4525_v13 = vpack.c.bf16 %v2394_v37, %v2392_v60 }
 0x222   : > { %v4491_v1 = vpack.c.bf16 %v2363_v8, %v2361_v46  ;;  %v2360_v42 = vld [vmem:[#allocation7 + $0x80] sm:$0xff]  ;;  %v2397_v6 = vld [vmem:[#allocation7 + $0x1a8] sm:$0xff]  ;;  %v2399_v36 = vld [vmem:[#allocation7 + $0x1b8] sm:$0xff] }
 0x223   : > { %v1727_v9 = vpop.permute.xlu1 %1726  ;;  %v1663_v12 = vpop.permute.xlu0 %1662  ;;  %4467 = vmatpush3.bf16.msra.mxu1 %v4466_v59  ;;  %v2362_v59 = vld [vmem:[#allocation7 + $0x90] sm:$0xff]  ;;  %4490 = vmatpush1.bf16.msra.mxu0 %v4489_v61  ;;  %v4527_v46 = vpack.c.bf16 %v2399_v36, %v2397_v6  ;;  %v2396_v8 = vld [vmem:[#allocation7 + $0x1a0] sm:$0xff] }
 0x224   : > { %v1734_v43 = vsel %vm594_vm1, %v6391_v29, %v1727_v9  ;;  %v1670_v50 = vsel %vm536_vm0, %v6385_v41, %v1663_v12  ;;  %4468 = vmatprep.subr.bf16.mxu1 %v5247_v39  ;;  %v2365_v9 = vld [vmem:[#allocation7 + $0xa8] sm:$0xff]  ;;  %v2367_v12 = vld [vmem:[#allocation7 + $0xb8] sm:$0xff]  ;;  %4492 = vmatprep.subr.bf16.mxu0 %v4491_v1  ;;  %v2398_v61 = vld [vmem:[#allocation7 + $0x1b0] sm:$0xff] }
 0x225   : > { %1748 = vst [vmem:[#allocation2 + $0x1f0] sm:$0x1c] %v1734_v43  ;;  %1684 = vst [vmem:[#allocation2 + $0x1f0] ss:$-52 sps:$4 sm:$0x83] %v1670_v50   ;;  %v4493_v43 = vpack.c.bf16 %v2362_v59, %v2360_v42  ;;  %v4495_v50 = vpack.c.bf16 %v2367_v12, %v2365_v9  ;;  %v4529_v1 = vpack.c.bf16 %v2398_v61, %v2396_v8  ;;  %v2412_v61 = vld [vmem:[#allocation7 + $0x220] sm:$0xff] }
 0x226   : > { %v4543_v8 = vpack.c.bf16 %v2415_v62, %v2413_v63  ;;  %v2443_v63 = vld [vmem:[#allocation7 + $0x318] sm:$0xff] }
 0x227   : > { %v1833_v3 = vpop.permute.xlu1 %1832  ;;  %v1784_v58 = vpop.permute.xlu0 %1783  ;;  %4494 = vmatpush1.bf16.msra.mxu0 %v4493_v43 }
 0x228   : > { %v1840_v52 = vsel %vm709_vm3, %v6403_v53, %v1833_v3  ;;  %v1791_v28 = vsel %vm659_vm2, %v6397_v38, %v1784_v58  ;;  %v1904_v21 = vld [vmem:[#allocation2 + $0x180] sm:$0xff]  ;;  %v2364_v3 = vld [vmem:[#allocation7 + $0xa0] sm:$0xff]  ;;  %v2366_v58 = vld [vmem:[#allocation7 + $0xb0] sm:$0xff]  ;;  %4496 = vmatprep.subr.bf16.mxu0 %v4495_v50 }
 0x229   : > { %1854 = vst [vmem:[#allocation2 + $0x228] sm:$0x7] %v1840_v52  ;;  %1805 = vst [vmem:[#allocation2 + $0x1f0] sm:$0xe0] %v1791_v28  ;;  %v2369_v52 = vld [vmem:[#allocation7 + $0xc8] sm:$0xff]  ;;  %v2371_v28 = vld [vmem:[#allocation7 + $0xd8] sm:$0xff] }
 0x22c   : > { %v1911_v33 = vld [vmem:[#allocation2 + $0x1b8] sm:$0xff] }
 0x22d   : > { %v4469_v29 = vpack.c.bf16 %v1911_v33, %v1904_v21  ;;  %v4497_v21 = vpack.c.bf16 %v2366_v58, %v2364_v3  ;;  %v4499_v33 = vpack.c.bf16 %v2371_v28, %v2369_v52  ;;  %v2401_v3 = vld [vmem:[#allocation7 + $0x1c8] sm:$0xff]  ;;  %v2403_v58 = vld [vmem:[#allocation7 + $0x1d8] sm:$0xff]  ;;  %v2400_v28 = vld [vmem:[#allocation7 + $0x1c0] sm:$0xff] }
 0x22e   : > { %v4531_v52 = vpack.c.bf16 %v2403_v58, %v2401_v3 }
 0x22f   : > { %4470 = vmatpush3.bf16.msra.mxu1 %v4469_v29  ;;  %v2368_v29 = vld [vmem:[#allocation7 + $0xc0] sm:$0xff]  ;;  %4498 = vmatpush1.bf16.msra.mxu0 %v4497_v21  ;;  %v2402_v21 = vld [vmem:[#allocation7 + $0x1d0] sm:$0xff] }
 0x230   : > { %4471 = vmatprep.subr.bf16.mxu1 %v5247_v39  ;;  %v1918_v41 = vld [vmem:[#allocation2 + $0x1f0] sm:$0xff]  ;;  %v1925_v5 = vld [vmem:[#allocation2 + $0x228] sm:$0x7]  ;;  %4500 = vmatprep.subr.bf16.mxu0 %v4499_v33  ;;  %v4533_v33 = vpack.c.bf16 %v2402_v21, %v2400_v28 }
 0x231   : > { %v4472_v51 = vpack.c.bf16 %v1925_v5, %v1918_v41  ;;  %v2370_v41 = vld [vmem:[#allocation7 + $0xd0] sm:$0xff]  ;;  %v2373_v5 = vld [vmem:[#allocation7 + $0xe8] sm:$0xff]  ;;  %v2416_v21 = vld [vmem:[#allocation7 + $0x240] sm:$0xff] }
 0x233   : > { %4474 = vmatpush3.bf16.msk.msra.mxu1 %vm6204_vm14, %v4472_v51  ;;  %v2375_v51 = vld [vmem:[#allocation7 + $0xf8] sm:$0xff]  ;;  %vm2563_vm14 = vcmask 1043456  }
 0x236   : > { %4333 = vmatmul.mubr.msk.f32.vlgmr.msra.gmra.mrb[2].mxu1 %vm1932_vm12, %v6240_v35  ;;  %vm6558_vm12 = vmpackc.low %vm2563_vm14, %vm7364_vm15  ;;  %vm2894_vm15 = vcmask 97284  }
 0x238   : > { %v6467_v53 = vpop.permute.xlu0 %1929 }
 0x27a   : > { %v2095_v38 = vpop.f32.mrb[0].mxu1 }
 0x27b   : > { %v2096_v2 = vadd.f32 %v2095_v38, %v6467_v53  ;;  %v2097_v40 = vpop.f32.mrb[1].mxu1  ;;  %v4501_v38 = vpack.c.bf16 %v2370_v41, %v2368_v29  ;;  %v2405_v29 = vld [vmem:[#allocation7 + $0x1e8] sm:$0xff]  ;;  %v2407_v41 = vld [vmem:[#allocation7 + $0x1f8] sm:$0xff] }
 0x27c   : > { %v2098_v23 = vadd.f32 %v2097_v40, %v6467_v53  ;;  %v2372_v40 = vld [vmem:[#allocation7 + $0xe0] sm:$0xff] }
 0x27d   : > { %v2243_v15 = vmax.f32 %v2096_v2, 0.0  ;;  %v4503_v2 = vpack.c.bf16 %v2375_v51, %v2373_v5  ;;  %4502 = vmatpush1.bf16.msra.mxu0 %v4501_v38  ;;  %v4535_v5 = vpack.c.bf16 %v2407_v41, %v2405_v29  ;;  %v2404_v51 = vld [vmem:[#allocation7 + $0x1e0] sm:$0xff]  ;;  %v2406_v38 = vld [vmem:[#allocation7 + $0x1f0] sm:$0xff]  ;;  %v2421_v41 = vld [vmem:[#allocation7 + $0x268] sm:$0xff] }
 0x27e   : > { %v2244_v55 = vmax.f32 %v2098_v23, 0.0  ;;  %v2374_v23 = vld [vmem:[#allocation7 + $0xf0] sm:$0xff] }
 0x27f   : > { %2250 = vst [vmem:[#allocation3 + $0x10] sm:$0x3f] %v2243_v15  ;;  %v2377_v15 = vld [vmem:[#allocation7 + $0x108] sm:$0xff]  ;;  %4504 = vmatprep.subr.bf16.mxu0 %v4503_v2 }
 0x280   : > { %2251 = vst [vmem:[#allocation3 + $0x18] sm:$0x3f] %v2244_v55  ;;  %v2379_v55 = vld [vmem:[#allocation7 + $0x118] sm:$0xff] }
 0x281   : > { %v2024_v7 = vpop.f32.mrb[0].mxu0 }
 0x282   : > { %v2025_v49 = vadd.f32 %v2024_v7, %v6467_v53  ;;  %v2026_v14 = vpop.f32.mrb[1].mxu0  ;;  %v4505_v7 = vpack.c.bf16 %v2374_v23, %v2372_v40  ;;  %v4537_v40 = vpack.c.bf16 %v2406_v38, %v2404_v51 }
 0x283   : > { %v2027_v48 = vadd.f32 %v2026_v14, %v6467_v53  ;;  %v2376_v14 = vld [vmem:[#allocation7 + $0x100] sm:$0xff] }
 0x284   : > { %v2241_v54 = vmax.f32 %v2025_v49, 0.0  ;;  %v4507_v49 = vpack.c.bf16 %v2379_v55, %v2377_v15  ;;  %4506 = vmatpush1.bf16.msra.mxu0 %v4505_v7 }
 0x285   : > { %v2242_v35 = vmax.f32 %v2027_v48, 0.0  ;;  %v2378_v48 = vld [vmem:[#allocation7 + $0x110] sm:$0xff] }
 0x286   : > { %2248 = vst [vmem:[#allocation3] sm:$0x3f] %v2241_v54  ;;  %v6473_v57 = vld [vmem:[#allocation3 + $0x10] sm:$0x3f]  ;;  %v2381_v54 = vld [vmem:[#allocation7 + $0x128] sm:$0xff]  ;;  %4508 = vmatprep.subr.bf16.mxu0 %v4507_v49 }
 0x287   : > { %2249 = vst [vmem:[#allocation3 + $0x8] sm:$0x3f] %v2242_v35  ;;  %v6481_v31 = vld [vmem:[#allocation3 + $0x18] sm:$0x3f]  ;;  %v2383_v35 = vld [vmem:[#allocation7 + $0x138] sm:$0xff] }
 0x28d   : > { %v6479_v11 = vld [vmem:[#allocation3] sm:$0x3f] }
 0x28e   : > { %v6475_v26 = vld [vmem:[#allocation3 + $0x8] sm:$0x3f]  ;;  %v5000_v20 = vpack.i.bf16 %v6479_v11, %v6481_v31 }
 0x28f   : > { %v4995_v17 = vpack.i.bf16 %v6473_v57, %v6475_v26 }
 0x291   : > { %4996 = vrot.lane.b32.xlu1 %v4995_v17, %s7335_s16  ;;  %v4509_v17 = vpack.c.bf16 %v2378_v48, %v2376_v14 }
 0x293   : > { %4510 = vmatpush1.bf16.msra.mxu0 %v4509_v17 }
 0x295   : > { %5001 = vrot.lane.b32.xlu1 %v5000_v20, %s7335_s16  ;;  %v4511_v20 = vpack.c.bf16 %v2383_v35, %v2381_v54 }
 0x297   : > { %4512 = vmatprep.subr.bf16.mxu0 %v4511_v20 }
 0x298   : > { %4514 = vmatpush1.bf16.msra.mxu0 %v4513_v19 }
 0x299   : > { %4516 = vmatprep.subr.bf16.mxu0 %v4515_v25 }
 0x29c   : > { %4518 = vmatpush1.bf16.msra.mxu0 %v4517_v44 }
 0x29d   : > { %4520 = vmatprep.subr.bf16.mxu0 %v4519_v27  ;;  %v2408_v27 = vld [vmem:[#allocation7 + $0x200] sm:$0xff] }
 0x29e   : > { %v4541_v36 = vpack.c.bf16 %v2410_v56, %v2408_v27  ;;  %v2436_v27 = vld [vmem:[#allocation7 + $0x2e0] sm:$0xff]  ;;  %v2438_v56 = vld [vmem:[#allocation7 + $0x2f0] sm:$0xff] }
 0x29f   : > { %v4569_v62 = vpack.c.bf16 %v2438_v56, %v2436_v27 }
 0x2a0   : > { %4522 = vmatpush1.bf16.msra.mxu0 %v4521_v47 }
 0x2a1   : > { %4524 = vmatprep.subr.bf16.mxu0 %v4523_v45 }
 0x2a4   : > { %4526 = vmatpush1.bf16.msra.mxu0 %v4525_v13 }
 0x2a5   : > { %4528 = vmatprep.subr.bf16.mxu0 %v4527_v46 }
 0x2a8   : > { %4530 = vmatpush1.bf16.msra.mxu0 %v4529_v1  ;;  %v2414_v1 = vld [vmem:[#allocation7 + $0x230] sm:$0xff] }
 0x2a9   : > { %4532 = vmatprep.subr.bf16.mxu0 %v4531_v52  ;;  %v4545_v58 = vpack.c.bf16 %v2414_v1, %v2412_v61  ;;  %v2449_v61 = vld [vmem:[#allocation7 + $0x348] sm:$0xff]  ;;  %v2451_v1 = vld [vmem:[#allocation7 + $0x358] sm:$0xff] }
 0x2ac   : > { %4534 = vmatpush1.bf16.msra.mxu0 %v4533_v33  ;;  %v2418_v33 = vld [vmem:[#allocation7 + $0x250] sm:$0xff] }
 0x2ad   : > { %4536 = vmatprep.subr.bf16.mxu0 %v4535_v5  ;;  %v2423_v5 = vld [vmem:[#allocation7 + $0x278] sm:$0xff] }
 0x2ae   : > { %v4551_v38 = vpack.c.bf16 %v2423_v5, %v2421_v41  ;;  %v2457_v41 = vld [vmem:[#allocation7 + $0x388] sm:$0xff]  ;;  %v2459_v5 = vld [vmem:[#allocation7 + $0x398] sm:$0xff] }
 0x2b0   : > { %4538 = vmatpush1.bf16.msra.mxu0 %v4537_v40  ;;  %v2422_v40 = vld [vmem:[#allocation7 + $0x270] sm:$0xff] }
 0x2de   : > { %v2166_v42 = vpop.f32.mrb[2].mxu0 }
 0x2df   : > { %v2167_v59 = vadd.f32 %v2166_v42, %v6467_v53  ;;  %v2168_v9 = vpop.f32.mrb[3].mxu0  ;;  %v2417_v42 = vld [vmem:[#allocation7 + $0x248] sm:$0xff] }
 0x2e0   : > { %v2169_v12 = vadd.f32 %v2168_v9, %v6467_v53 }
 0x2e1   : > { %v2245_v43 = vmax.f32 %v2167_v59, 0.0  ;;  %v2419_v59 = vld [vmem:[#allocation7 + $0x258] sm:$0xff] }
 0x2e2   : > { %v2246_v50 = vmax.f32 %v2169_v12, 0.0  ;;  %v4547_v28 = vpack.c.bf16 %v2419_v59, %v2417_v42  ;;  %v4579_v59 = vpack.c.bf16 %v2451_v1, %v2449_v61  ;;  %v2476_v61 = vld [vmem:[#allocation7 + $0x420] sm:$0xff] }
 0x2e3   : > { %2252 = vst [vmem:[#allocation3 + $0x20] sm:$0x3f] %v2245_v43 }
 0x2e4   : > { %2253 = vst [vmem:[#allocation3 + $0x28] sm:$0x3f] %v2246_v50 }
 0x2ea   : > { %v2259_v25 = vld [vmem:[#allocation3 + $0x20] sm:$0x3f] }
 0x2eb   : > { %v2260_v24 = vld [vmem:[#allocation3 + $0x28] sm:$0x3f] }
 0x2ec   : > { %v5010_v10 = vpack.i.bf16 %v2260_v24, %v2259_v25 }
 0x303   : > { %v4997_v2 = vpop.permute.xlu1 %4996 }
 0x304   : > { %v4999_v23 = vunpack.i.h.bf16 %v4997_v2  ;;  %v4998_v15 = vunpack.i.l.bf16 %v4997_v2  ;;  %v2420_v2 = vld [vmem:[#allocation7 + $0x260] sm:$0xff] }
 0x306   : > { %v2284_v7 = vsel %vm536_vm0, %v4998_v15, %v4999_v23 }
 0x307   : > { %v5002_v55 = vpop.permute.xlu1 %5001  ;;  %v2297_v18 = vmax.f32 %v6475_v26, %v2284_v7  ;;  %v4553_v7 = vpack.c.bf16 %v2422_v40, %v2420_v2  ;;  %v2458_v2 = vld [vmem:[#allocation7 + $0x390] sm:$0xff]  ;;  %v2461_v40 = vld [vmem:[#allocation7 + $0x3a8] sm:$0xff] }
 0x308   : > { %v5004_v49 = vunpack.i.h.bf16 %v5002_v55  ;;  %v5003_v14 = vunpack.i.l.bf16 %v5002_v55  ;;  %v2427_v55 = vld [vmem:[#allocation7 + $0x298] sm:$0xff] }
 0x309   : > { %v2237_v48 = vpop.f32.mrb[2].mxu1 }
 0x30a   : > { %v2283_v54 = vsel %vm536_vm0, %v5004_v49, %v4998_v15  ;;  %v2285_v35 = vsel %vm536_vm0, %v4999_v23, %v5003_v14  ;;  %v2238_v17 = vadd.f32 %v2237_v48, %v6467_v53  ;;  %v4334_v20 = vpop.f32.mrb[3].mxu1  ;;  %v2409_v53 = vld [vmem:[#allocation7 + $0x208] sm:$0xff]  ;;  %v2426_v48 = vld [vmem:[#allocation7 + $0x290] sm:$0xff] }
 0x30b   : > { %v2296_v34 = vmax.f32 %v6479_v11, %v2283_v54  ;;  %v6496_v32 = vmax.f32 %v6473_v57, %v2285_v35  ;;  %v4539_v16 = vpack.c.bf16 %v2411_v30, %v2409_v53  ;;  %v2425_v15 = vld [vmem:[#allocation7 + $0x288] sm:$0xff]  ;;  %v2431_v35 = vld [vmem:[#allocation7 + $0x2b8] sm:$0xff]  ;;  %v2434_v53 = vld [vmem:[#allocation7 + $0x2d0] sm:$0xff] }
 0x30c   : > { %v2247_v22 = vmax.f32 %v2238_v17, 0.0  ;;  %v4555_v49 = vpack.c.bf16 %v2427_v55, %v2425_v15  ;;  %v2429_v54 = vld [vmem:[#allocation7 + $0x2a8] sm:$0xff]  ;;  %v2463_v15 = vld [vmem:[#allocation7 + $0x3b8] sm:$0xff] }
 0x30d   : > { %2310 = vrot.lane.b32.xlu1 %v2296_v34, %s7339_s11  ;;  %v5005_v19 = vpack.i.bf16 %v6496_v32, %v2297_v18  ;;  %4540 = vmatprep.subr.bf16.mxu0 %v4539_v16  ;;  %v4559_v20 = vpack.c.bf16 %v2431_v35, %v2429_v54  ;;  %v2437_v30 = vld [vmem:[#allocation7 + $0x2e8] sm:$0xff]  ;;  %v2439_v16 = vld [vmem:[#allocation7 + $0x2f8] sm:$0xff] }
 0x30e   : > { %2254 = vst [vmem:[#allocation3 + $0x30] sm:$0x3f] %v2247_v22  ;;  %v2433_v22 = vld [vmem:[#allocation7 + $0x2c8] sm:$0xff]  ;;  %v2467_v54 = vld [vmem:[#allocation7 + $0x3d8] sm:$0xff] }
 0x30f   : > { %5006 = vrot.lane.b32.xlu0 %v5005_v19, %s7339_s11  ;;  %v2435_v19 = vld [vmem:[#allocation7 + $0x2d8] sm:$0xff] }
 0x313   : > { %5011 = vrot.lane.b32.xlu0 %v5010_v10, %s7335_s16  ;;  %v2432_v10 = vld [vmem:[#allocation7 + $0x2c0] sm:$0xff] }
 0x315   : > { %v2261_v26 = vld [vmem:[#allocation3 + $0x30] sm:$0x3f] }
 0x317   : > { %2281 = vrot.lane.b32.xlu0 %v2261_v26, %s7335_s16 }
 0x37f   : > { %v2311_v4 = vpop.permute.xlu1 %2310 }
 0x381   : > { %v6503_v57 = vpop.permute.xlu0 %5006 }
 0x382   : > { %v5009_v11 = vunpack.i.h.bf16 %v6503_v57  ;;  %v5008_v44 = vunpack.i.l.bf16 %v6503_v57 }
 0x384   : > { %v2324_v47 = vsel %vm767_vm4, %v2311_v4, %v5008_v44  ;;  %v2325_v45 = vsel %vm767_vm4, %v5008_v44, %v5009_v11  ;;  %v4567_v44 = vpack.c.bf16 %v2439_v16, %v2437_v30  ;;  %v2441_v4 = vld [vmem:[#allocation7 + $0x308] sm:$0xff]  ;;  %v2475_v30 = vld [vmem:[#allocation7 + $0x418] sm:$0xff] }
 0x385   : > { %v2337_v60 = vmax.f32 %v2296_v34, %v2324_v47  ;;  %v5012_v37 = vpop.permute.xlu0 %5011  ;;  %v2338_v6 = vmax.f32 %v2297_v18, %v2325_v45  ;;  %v2428_v18 = vld [vmem:[#allocation7 + $0x2a0] sm:$0xff]  ;;  %v2430_v34 = vld [vmem:[#allocation7 + $0x2b0] sm:$0xff]  ;;  %v4571_v47 = vpack.c.bf16 %v2443_v63, %v2441_v4 }
 0x386   : > { %v5014_v13 = vunpack.i.h.bf16 %v5012_v37  ;;  %v5013_v46 = vunpack.i.l.bf16 %v5012_v37  ;;  %v2440_v45 = vld [vmem:[#allocation7 + $0x300] sm:$0xff]  ;;  %v2445_v37 = vld [vmem:[#allocation7 + $0x328] sm:$0xff]  ;;  %v2474_v63 = vld [vmem:[#allocation7 + $0x410] sm:$0xff] }
 0x387   : > { %2634 = vmatprep.mubr.f32.mxu0 %v2338_v6  ;;  %v2447_v6 = vld [vmem:[#allocation7 + $0x338] sm:$0xff]  ;;  %v2472_v4 = vld [vmem:[#allocation7 + $0x400] sm:$0xff] }
 0x388   : > { %v2286_v9 = vsel %vm536_vm0, %v5003_v14, %v5013_v46  ;;  %v2287_v12 = vsel %vm536_vm0, %v5013_v46, %v5014_v13  ;;  %2635 = vmatmul.mubr.f32.vlgmr.msra.gmra.mrb[4].mxu0 %v2337_v60  ;;  %v2424_v14 = vld [vmem:[#allocation7 + $0x280] sm:$0xff]  ;;  %v2442_v60 = vld [vmem:[#allocation7 + $0x310] sm:$0xff] }
 0x389   : > { %v6514_v43 = vmax.f32 %v6481_v31, %v2286_v9  ;;  %v6516_v50 = vmax.f32 %v2259_v25, %v2287_v12  ;;  %v2282_v3 = vpop.permute.xlu0 %2281  ;;  %4542 = vmatpush1.bf16.msra.mxu0 %v4541_v36  ;;  %v4549_v31 = vpack.c.bf16 %v2418_v33, %v2416_v21  ;;  %v4557_v17 = vpack.c.bf16 %v2426_v48, %v2424_v14  ;;  %v2444_v46 = vld [vmem:[#allocation7 + $0x320] sm:$0xff]  ;;  %v2450_v12 = vld [vmem:[#allocation7 + $0x350] sm:$0xff]  ;;  %v2465_v48 = vld [vmem:[#allocation7 + $0x3c8] sm:$0xff] }
 0x38a   : > { %v6518_v52 = vmax.f32 %v2261_v26, %v2282_v3  ;;  %4544 = vmatprep.subr.bf16.mxu0 %v4543_v8  ;;  %v2288_v51 = vsel %vm536_vm0, %v5014_v13, %v2282_v3  ;;  %v4561_v25 = vpack.c.bf16 %v2430_v34, %v2428_v18  ;;  %v4565_v26 = vpack.c.bf16 %v2434_v53, %v2432_v10  ;;  %v2446_v8 = vld [vmem:[#allocation7 + $0x330] sm:$0xff]  ;;  %v2448_v9 = vld [vmem:[#allocation7 + $0x340] sm:$0xff]  ;;  %v2453_v3 = vld [vmem:[#allocation7 + $0x368] sm:$0xff] }
 0x38b   : > { %v5015_v29 = vpack.i.bf16 %v6516_v50, %v6514_v43  ;;  %v6526_v23 = vmax.f32 %v2260_v24, %v2288_v51  ;;  %v4563_v24 = vpack.c.bf16 %v2435_v19, %v2433_v22  ;;  %v4573_v36 = vpack.c.bf16 %v2442_v60, %v2440_v45  ;;  %v2452_v33 = vld [vmem:[#allocation7 + $0x360] sm:$0xff]  ;;  %v2462_v14 = vld [vmem:[#allocation7 + $0x3b0] sm:$0xff]  ;;  %v2469_v34 = vld [vmem:[#allocation7 + $0x3e8] sm:$0xff] }
 0x38c   : > { %2322 = vrot.lane.b32.xlu0 %v6518_v52, %s7339_s11  ;;  %v4575_v13 = vpack.c.bf16 %v2447_v6, %v2445_v37  ;;  %v4577_v42 = vpack.c.bf16 %v2446_v8, %v2444_v46  ;;  %v2466_v18 = vld [vmem:[#allocation7 + $0x3d0] sm:$0xff]  ;;  %v2471_v22 = vld [vmem:[#allocation7 + $0x3f8] sm:$0xff]  ;;  %v2473_v53 = vld [vmem:[#allocation7 + $0x408] sm:$0xff]  ;;  %v4605_v46 = vpack.c.bf16 %v2474_v63, %v2472_v4 }
 0x38d   : > { %5016 = vrot.lane.b32.xlu1 %v5015_v29, %s7339_s11  ;;  %4546 = vmatpush1.bf16.msra.mxu0 %v4545_v58  ;;  %v2455_v58 = vld [vmem:[#allocation7 + $0x378] sm:$0xff]  ;;  %v2454_v29 = vld [vmem:[#allocation7 + $0x370] sm:$0xff]  ;;  %v2509_v4 = vld [vmem:[#allocation7 + $0x528] sm:$0xff] }
 0x38e   : > { %4548 = vmatprep.subr.bf16.mxu0 %v4547_v28  ;;  %v4581_v28 = vpack.c.bf16 %v2450_v12, %v2448_v9  ;;  %v4583_v21 = vpack.c.bf16 %v2455_v58, %v2453_v3  ;;  %v4585_v51 = vpack.c.bf16 %v2454_v29, %v2452_v33  ;;  %v2470_v10 = vld [vmem:[#allocation7 + $0x3f0] sm:$0xff]  ;;  %v2485_v3 = vld [vmem:[#allocation7 + $0x468] sm:$0xff]  ;;  %v2487_v58 = vld [vmem:[#allocation7 + $0x478] sm:$0xff] }
 0x38f   : > { %v2482_v12 = vld [vmem:[#allocation7 + $0x450] sm:$0xff]  ;;  %v2484_v33 = vld [vmem:[#allocation7 + $0x460] sm:$0xff]  ;;  %v2511_v63 = vld [vmem:[#allocation7 + $0x538] sm:$0xff] }
 0x390   : > { %v2486_v29 = vld [vmem:[#allocation7 + $0x470] sm:$0xff] }
 0x391   : > { %2320 = vrot.lane.b32.xlu1 %v6526_v23, %s7339_s11  ;;  %4550 = vmatpush1.bf16.msra.mxu0 %v4549_v31  ;;  %v4587_v31 = vpack.c.bf16 %v2459_v5, %v2457_v41  ;;  %v2491_v41 = vld [vmem:[#allocation7 + $0x498] sm:$0xff]  ;;  %v4617_v5 = vpack.c.bf16 %v2486_v29, %v2484_v33  ;;  %v2525_v33 = vld [vmem:[#allocation7 + $0x5a8] sm:$0xff] }
 0x392   : > { %4552 = vmatprep.subr.bf16.mxu0 %v4551_v38  ;;  %v2456_v38 = vld [vmem:[#allocation7 + $0x380] sm:$0xff]  ;;  %v2527_v29 = vld [vmem:[#allocation7 + $0x5b8] sm:$0xff] }
 0x393   : > { %v4589_v55 = vpack.c.bf16 %v2458_v2, %v2456_v38  ;;  %v2490_v38 = vld [vmem:[#allocation7 + $0x490] sm:$0xff]  ;;  %v2493_v2 = vld [vmem:[#allocation7 + $0x4a8] sm:$0xff] }
 0x395   : > { %4554 = vmatpush1.bf16.msra.mxu0 %v4553_v7  ;;  %v4591_v7 = vpack.c.bf16 %v2463_v15, %v2461_v40  ;;  %v2495_v40 = vld [vmem:[#allocation7 + $0x4b8] sm:$0xff] }
 0x396   : > { %4556 = vmatprep.subr.bf16.mxu0 %v4555_v49  ;;  %v2460_v49 = vld [vmem:[#allocation7 + $0x3a0] sm:$0xff] }
 0x397   : > { %v4593_v35 = vpack.c.bf16 %v2462_v14, %v2460_v49  ;;  %v2494_v49 = vld [vmem:[#allocation7 + $0x4b0] sm:$0xff]  ;;  %v2497_v14 = vld [vmem:[#allocation7 + $0x4c8] sm:$0xff] }
 0x399   : > { %4558 = vmatpush1.bf16.msra.mxu0 %v4557_v17  ;;  %v4595_v17 = vpack.c.bf16 %v2467_v54, %v2465_v48  ;;  %v2499_v48 = vld [vmem:[#allocation7 + $0x4d8] sm:$0xff] }
 0x39a   : > { %4560 = vmatprep.subr.bf16.mxu0 %v4559_v20  ;;  %v2464_v20 = vld [vmem:[#allocation7 + $0x3c0] sm:$0xff] }
 0x39b   : > { %v4597_v19 = vpack.c.bf16 %v2466_v18, %v2464_v20  ;;  %v2498_v20 = vld [vmem:[#allocation7 + $0x4d0] sm:$0xff]  ;;  %v2501_v18 = vld [vmem:[#allocation7 + $0x4e8] sm:$0xff] }
 0x39d   : > { %4562 = vmatpush1.bf16.msra.mxu0 %v4561_v25  ;;  %v4599_v25 = vpack.c.bf16 %v2471_v22, %v2469_v34  ;;  %v2503_v34 = vld [vmem:[#allocation7 + $0x4f8] sm:$0xff] }
 0x39e   : > { %4564 = vmatprep.subr.bf16.mxu0 %v4563_v24  ;;  %v2468_v24 = vld [vmem:[#allocation7 + $0x3e0] sm:$0xff] }
 0x39f   : > { %v4601_v16 = vpack.c.bf16 %v2470_v10, %v2468_v24  ;;  %v2502_v24 = vld [vmem:[#allocation7 + $0x4f0] sm:$0xff]  ;;  %v2505_v10 = vld [vmem:[#allocation7 + $0x508] sm:$0xff] }
 0x3a1   : > { %4566 = vmatpush1.bf16.msra.mxu0 %v4565_v26  ;;  %v4603_v26 = vpack.c.bf16 %v2475_v30, %v2473_v53  ;;  %v2507_v53 = vld [vmem:[#allocation7 + $0x518] sm:$0xff] }
 0x3a2   : > { %4568 = vmatprep.subr.bf16.mxu0 %v4567_v44 }
 0x3a5   : > { %4570 = vmatpush1.bf16.msra.mxu0 %v4569_v62  ;;  %v2477_v62 = vld [vmem:[#allocation7 + $0x428] sm:$0xff] }
 0x3a6   : > { %4572 = vmatprep.subr.bf16.mxu0 %v4571_v47  ;;  %v2479_v47 = vld [vmem:[#allocation7 + $0x438] sm:$0xff] }
 0x3a7   : > { %v4607_v57 = vpack.c.bf16 %v2479_v47, %v2477_v62  ;;  %v4639_v47 = vpack.c.bf16 %v2511_v63, %v2509_v4  ;;  %v2545_v4 = vld [vmem:[#allocation7 + $0x648] sm:$0xff]  ;;  %v2547_v63 = vld [vmem:[#allocation7 + $0x658] sm:$0xff] }
 0x3a9   : > { %4574 = vmatpush1.bf16.msra.mxu0 %v4573_v36 }
 0x3aa   : > { %4576 = vmatprep.subr.bf16.mxu0 %v4575_v13 }
 0x3ad   : > { %4578 = vmatpush1.bf16.msra.mxu0 %v4577_v42  ;;  %v2481_v42 = vld [vmem:[#allocation7 + $0x448] sm:$0xff] }
 0x3ae   : > { %4580 = vmatprep.subr.bf16.mxu0 %v4579_v59  ;;  %v2483_v59 = vld [vmem:[#allocation7 + $0x458] sm:$0xff] }
 0x3af   : > { %v4611_v9 = vpack.c.bf16 %v2483_v59, %v2481_v42 }
 0x3b1   : > { %4582 = vmatpush1.bf16.msra.mxu0 %v4581_v28 }
 0x3b2   : > { %4584 = vmatprep.subr.bf16.mxu0 %v4583_v21  ;;  %v4615_v21 = vpack.c.bf16 %v2487_v58, %v2485_v3 }
 0x3b5   : > { %4586 = vmatpush1.bf16.msra.mxu0 %v4585_v51 }
 0x3b6   : > { %4588 = vmatprep.subr.bf16.mxu0 %v4587_v31  ;;  %v2488_v31 = vld [vmem:[#allocation7 + $0x480] sm:$0xff] }
 0x3b7   : > { %v4621_v15 = vpack.c.bf16 %v2490_v38, %v2488_v31  ;;  %v2529_v31 = vld [vmem:[#allocation7 + $0x5c8] sm:$0xff]  ;;  %v2531_v38 = vld [vmem:[#allocation7 + $0x5d8] sm:$0xff] }
 0x3b9   : > { %4590 = vmatpush1.bf16.msra.mxu0 %v4589_v55  ;;  %v4623_v55 = vpack.c.bf16 %v2495_v40, %v2493_v2  ;;  %v4659_v40 = vpack.c.bf16 %v2531_v38, %v2529_v31 }
 0x3ba   : > { %4592 = vmatprep.subr.bf16.mxu0 %v4591_v7  ;;  %v2492_v7 = vld [vmem:[#allocation7 + $0x4a0] sm:$0xff] }
 0x3bb   : > { %v4625_v54 = vpack.c.bf16 %v2494_v49, %v2492_v7  ;;  %v2533_v7 = vld [vmem:[#allocation7 + $0x5e8] sm:$0xff]  ;;  %v2535_v49 = vld [vmem:[#allocation7 + $0x5f8] sm:$0xff] }
 0x3bd   : > { %4594 = vmatpush1.bf16.msra.mxu0 %v4593_v35  ;;  %v4627_v35 = vpack.c.bf16 %v2499_v48, %v2497_v14  ;;  %v4663_v48 = vpack.c.bf16 %v2535_v49, %v2533_v7 }
 0x3be   : > { %4596 = vmatprep.subr.bf16.mxu0 %v4595_v17  ;;  %v2496_v17 = vld [vmem:[#allocation7 + $0x4c0] sm:$0xff] }
 0x3bf   : > { %v4629_v22 = vpack.c.bf16 %v2498_v20, %v2496_v17  ;;  %v2537_v17 = vld [vmem:[#allocation7 + $0x608] sm:$0xff]  ;;  %v2539_v20 = vld [vmem:[#allocation7 + $0x618] sm:$0xff] }
 0x3c1   : > { %4598 = vmatpush1.bf16.msra.mxu0 %v4597_v19  ;;  %v4631_v19 = vpack.c.bf16 %v2503_v34, %v2501_v18  ;;  %v4667_v34 = vpack.c.bf16 %v2539_v20, %v2537_v17 }
 0x3c2   : > { %4600 = vmatprep.subr.bf16.mxu0 %v4599_v25  ;;  %v2500_v25 = vld [vmem:[#allocation7 + $0x4e0] sm:$0xff] }
 0x3c3   : > { %v4633_v30 = vpack.c.bf16 %v2502_v24, %v2500_v25  ;;  %v2541_v24 = vld [vmem:[#allocation7 + $0x628] sm:$0xff] }
 0x3c5   : > { %4602 = vmatpush1.bf16.msra.mxu0 %v4601_v16  ;;  %v4635_v16 = vpack.c.bf16 %v2507_v53, %v2505_v10  ;;  %v2543_v10 = vld [vmem:[#allocation7 + $0x638] sm:$0xff] }
 0x3c6   : > { %4604 = vmatprep.subr.bf16.mxu0 %v4603_v26  ;;  %v2504_v26 = vld [vmem:[#allocation7 + $0x500] sm:$0xff] }
 0x3fe   : > { %v6540_v37 = vpop.permute.xlu0 %2322 }
 0x3ff   : > { %v6530_v44 = vpop.permute.xlu1 %5016 }
 0x400   : > { %v5019_v27 = vunpack.i.h.bf16 %v6530_v44  ;;  %v5018_v56 = vunpack.i.l.bf16 %v6530_v44  ;;  %v4675_v44 = vpack.c.bf16 %v2547_v63, %v2545_v4 }
 0x402   : > { %v2326_v45 = vsel %vm767_vm4, %v5009_v11, %v5018_v56  ;;  %v2327_v60 = vsel %vm767_vm4, %v5018_v56, %v5019_v27  ;;  %v2478_v11 = vld [vmem:[#allocation7 + $0x430] sm:$0xff] }
 0x403   : > { %v2339_v6 = vmax.f32 %v6496_v32, %v2326_v45  ;;  %v6543_v36 = vpop.permute.xlu1 %2320  ;;  %v2340_v13 = vmax.f32 %v6514_v43, %v2327_v60  ;;  %v4609_v32 = vpack.c.bf16 %v2478_v11, %v2476_v61  ;;  %v2480_v43 = vld [vmem:[#allocation7 + $0x440] sm:$0xff]  ;;  %v2506_v56 = vld [vmem:[#allocation7 + $0x510] sm:$0xff]  ;;  %v2517_v11 = vld [vmem:[#allocation7 + $0x568] sm:$0xff] }
 0x404   : > { %v2329_v8 = vsel %vm767_vm4, %v6543_v36, %v6540_v37  ;;  %v4613_v28 = vpack.c.bf16 %v2482_v12, %v2480_v43  ;;  %v4637_v62 = vpack.c.bf16 %v2506_v56, %v2504_v26  ;;  %v2508_v45 = vld [vmem:[#allocation7 + $0x520] sm:$0xff]  ;;  %v2510_v60 = vld [vmem:[#allocation7 + $0x530] sm:$0xff]  ;;  %v2521_v43 = vld [vmem:[#allocation7 + $0x588] sm:$0xff]  ;;  %v2328_v25 = vsel %vm767_vm4, %v5019_v27, %v6543_v36 }
 0x405   : > { %v2342_v1 = vmax.f32 %v6526_v23, %v2329_v8  ;;  %2705 = vmatprep.mubr.f32.mxu0 %v2340_v13  ;;  %v2489_v23 = vld [vmem:[#allocation7 + $0x488] sm:$0xff]  ;;  %v2515_v13 = vld [vmem:[#allocation7 + $0x558] sm:$0xff]  ;;  %v2514_v61 = vld [vmem:[#allocation7 + $0x550] sm:$0xff] }
 0x406   : > { %2706 = vmatmul.mubr.f32.vlgmr.msra.gmra.mrb[4].mxu0 %v2339_v6  ;;  %v4619_v51 = vpack.c.bf16 %v2491_v41, %v2489_v23  ;;  %v2513_v6 = vld [vmem:[#allocation7 + $0x548] sm:$0xff]  ;;  %v2523_v12 = vld [vmem:[#allocation7 + $0x598] sm:$0xff]  ;;  %v4655_v41 = vpack.c.bf16 %v2527_v29, %v2525_v33  ;;  %v2540_v26 = vld [vmem:[#allocation7 + $0x620] sm:$0xff] }
 0x407   : > { %4606 = vmatpush1.bf16.msra.mxu0 %v4605_v46  ;;  %2776 = vmatprep.mubr.f32.mxu0 %v2342_v1  ;;  %v4641_v46 = vpack.c.bf16 %v2510_v60, %v2508_v45  ;;  %v4643_v8 = vpack.c.bf16 %v2515_v13, %v2513_v6  ;;  %v2519_v1 = vld [vmem:[#allocation7 + $0x578] sm:$0xff]  ;;  %v4651_v58 = vpack.c.bf16 %v2523_v12, %v2521_v43  ;;  %v2542_v56 = vld [vmem:[#allocation7 + $0x630] sm:$0xff]  ;;  %v2544_v27 = vld [vmem:[#allocation7 + $0x640] sm:$0xff] }
 0x408   : > { %4608 = vmatprep.subr.bf16.mxu0 %v4607_v57  ;;  %v2512_v57 = vld [vmem:[#allocation7 + $0x540] sm:$0xff]  ;;  %v4647_v59 = vpack.c.bf16 %v2519_v1, %v2517_v11  ;;  %v2546_v36 = vld [vmem:[#allocation7 + $0x650] sm:$0xff]  ;;  %v2551_v45 = vld [vmem:[#allocation7 + $0x678] sm:$0xff] }
 0x409   : > { %v4645_v42 = vpack.c.bf16 %v2514_v61, %v2512_v57  ;;  %v4677_v60 = vpack.c.bf16 %v2546_v36, %v2544_v27  ;;  %v2548_v6 = vld [vmem:[#allocation7 + $0x660] sm:$0xff]  ;;  %v2550_v13 = vld [vmem:[#allocation7 + $0x670] sm:$0xff] }
 0x40a   : > { %v4681_v57 = vpack.c.bf16 %v2550_v13, %v2548_v6  ;;  %v2552_v11 = vld [vmem:[#allocation7 + $0x680] sm:$0xff]  ;;  %v2554_v1 = vld [vmem:[#allocation7 + $0x690] sm:$0xff] }
 0x40b   : > { %4610 = vmatpush1.bf16.msra.mxu0 %v4609_v32  ;;  %v2516_v32 = vld [vmem:[#allocation7 + $0x560] sm:$0xff]  ;;  %v2558_v12 = vld [vmem:[#allocation7 + $0x6b0] sm:$0xf] }
 0x40c   : > { %4612 = vmatprep.subr.bf16.mxu0 %v4611_v9  ;;  %v2518_v9 = vld [vmem:[#allocation7 + $0x570] sm:$0xff]  ;;  %v2556_v43 = vld [vmem:[#allocation7 + $0x6a0] sm:$0xff] }
 0x40d   : > { %v4649_v3 = vpack.c.bf16 %v2518_v9, %v2516_v32  ;;  %v4685_v32 = vpack.c.bf16 %v2554_v1, %v2552_v11 }
 0x40f   : > { %4614 = vmatpush1.bf16.msra.mxu0 %v4613_v28  ;;  %v2520_v28 = vld [vmem:[#allocation7 + $0x580] sm:$0xff] }
 0x410   : > { %4616 = vmatprep.subr.bf16.mxu0 %v4615_v21  ;;  %v2522_v21 = vld [vmem:[#allocation7 + $0x590] sm:$0xff] }
 0x411   : > { %v4653_v23 = vpack.c.bf16 %v2522_v21, %v2520_v28  ;;  %v2343_v28 = vmax.f32 %v6518_v52, %v6540_v37 }
 0x413   : > { %4618 = vmatpush1.bf16.msra.mxu0 %v4617_v5  ;;  %v2524_v5 = vld [vmem:[#allocation7 + $0x5a0] sm:$0xff] }
 0x414   : > { %4620 = vmatprep.subr.bf16.mxu0 %v4619_v51  ;;  %v2526_v51 = vld [vmem:[#allocation7 + $0x5b0] sm:$0xff] }
 0x415   : > { %v4657_v2 = vpack.c.bf16 %v2526_v51, %v2524_v5 }
 0x417   : > { %4622 = vmatpush1.bf16.msra.mxu0 %v4621_v15  ;;  %v2528_v15 = vld [vmem:[#allocation7 + $0x5c0] sm:$0xff] }
 0x418   : > { %4624 = vmatprep.subr.bf16.mxu0 %v4623_v55  ;;  %v2530_v55 = vld [vmem:[#allocation7 + $0x5d0] sm:$0xff] }
 0x419   : > { %v4661_v14 = vpack.c.bf16 %v2530_v55, %v2528_v15 }
 0x41b   : > { %4626 = vmatpush1.bf16.msra.mxu0 %v4625_v54  ;;  %v2532_v54 = vld [vmem:[#allocation7 + $0x5e0] sm:$0xff] }
 0x41c   : > { %4628 = vmatprep.subr.bf16.mxu0 %v4627_v35  ;;  %v2534_v35 = vld [vmem:[#allocation7 + $0x5f0] sm:$0xff] }
 0x41d   : > { %v4665_v18 = vpack.c.bf16 %v2534_v35, %v2532_v54 }
 0x41f   : > { %4630 = vmatpush1.bf16.msra.mxu0 %v4629_v22  ;;  %v2536_v22 = vld [vmem:[#allocation7 + $0x600] sm:$0xff] }
 0x420   : > { %4632 = vmatprep.subr.bf16.mxu0 %v4631_v19  ;;  %v2538_v19 = vld [vmem:[#allocation7 + $0x610] sm:$0xff] }
 0x421   : > { %v4669_v53 = vpack.c.bf16 %v2538_v19, %v2536_v22 }
 0x423   : > { %4634 = vmatpush1.bf16.msra.mxu0 %v4633_v30  ;;  %v2341_v30 = vmax.f32 %v6516_v50, %v2328_v25 }
 0x424   : > { %4636 = vmatprep.subr.bf16.mxu0 %v4635_v16  ;;  %v4671_v16 = vpack.c.bf16 %v2543_v10, %v2541_v24 }
 0x427   : > { %4638 = vmatpush1.bf16.msra.mxu0 %v4637_v62  ;;  %v4673_v62 = vpack.c.bf16 %v2542_v56, %v2540_v26 }
 0x428   : > { %4640 = vmatprep.subr.bf16.mxu0 %v4639_v47  ;;  %v2549_v47 = vld [vmem:[#allocation7 + $0x668] sm:$0xff] }
 0x429   : > { %v4679_v50 = vpack.c.bf16 %v2551_v45, %v2549_v47 }
 0x42b   : > { %4642 = vmatpush1.bf16.msra.mxu0 %v4641_v46  ;;  %v2553_v46 = vld [vmem:[#allocation7 + $0x688] sm:$0xff] }
 0x42c   : > { %4644 = vmatprep.subr.bf16.mxu0 %v4643_v8  ;;  %v2555_v8 = vld [vmem:[#allocation7 + $0x698] sm:$0xff] }
 0x42d   : > { %v4683_v61 = vpack.c.bf16 %v2555_v8, %v2553_v46 }
 0x42f   : > { %4646 = vmatpush1.bf16.msra.mxu0 %v4645_v42  ;;  %v2557_v42 = vld [vmem:[#allocation7 + $0x6a8] sm:$0xff] }
 0x430   : > { %4648 = vmatprep.subr.bf16.mxu0 %v4647_v59  ;;  %v2559_v59 = vld [vmem:[#allocation7 + $0x6b8] sm:$0xf] }
 0x431   : > { %v4687_v9 = vpack.c.bf16 %v2559_v59, %v2557_v42 }
 0x433   : > { %4650 = vmatpush1.bf16.msra.mxu0 %v4649_v3  ;;  %v3763_v3 = vld [vmem:[%s7233_s8 + $0xa8] sm:$0xff] }
 0x434   : > { %4652 = vmatprep.subr.bf16.mxu0 %v4651_v58  ;;  %v4690_v58 = vpack.c.bf16 %v2558_v12, %v2556_v43 }
 0x437   : > { %4654 = vmatpush1.bf16.msra.mxu0 %v4653_v23 }
 0x438   : > { %4656 = vmatprep.subr.bf16.mxu0 %v4655_v41 }
 0x43b   : > { %4658 = vmatpush1.bf16.msra.mxu0 %v4657_v2 }
 0x43c   : > { %4660 = vmatprep.subr.bf16.mxu0 %v4659_v40 }
 0x43f   : > { %4662 = vmatpush1.bf16.msra.mxu0 %v4661_v14 }
 0x440   : > { %4664 = vmatprep.subr.bf16.mxu0 %v4663_v48 }
 0x443   : > { %4666 = vmatpush1.bf16.msra.mxu0 %v4665_v18 }
 0x444   : > { %4668 = vmatprep.subr.bf16.mxu0 %v4667_v34 }
 0x446   : > { %2777 = vmatmul.mubr.f32.vlgmr.msra.gmra.mrb[4].mxu0 %v2341_v30 }
 0x447   : > { %4670 = vmatpush1.bf16.msra.mxu0 %v4669_v53  ;;  %2847 = vmatprep.mubr.f32.mxu0 %v5244_v0 }
 0x448   : > { %4672 = vmatprep.subr.bf16.mxu0 %v4671_v16 }
 0x44b   : > { %4674 = vmatpush1.bf16.msra.mxu0 %v4673_v62 }
 0x44c   : > { %4676 = vmatprep.subr.bf16.mxu0 %v4675_v44 }
 0x44f   : > { %4678 = vmatpush1.bf16.msra.mxu0 %v4677_v60 }
 0x450   : > { %4680 = vmatprep.subr.bf16.mxu0 %v4679_v50 }
 0x453   : > { %4682 = vmatpush1.bf16.msra.mxu0 %v4681_v57 }
 0x454   : > { %4684 = vmatprep.subr.bf16.mxu0 %v4683_v61 }
 0x457   : > { %4686 = vmatpush1.bf16.msra.mxu0 %v4685_v32 }
 0x458   : > { %4689 = vmatprep.subr.msk.bf16.mxu0 %vm6558_vm12, %v4687_v9 }
 0x45b   : > { %4692 = vmatpush1.bf16.msk.msra.mxu0 %vm6558_vm12, %v4690_v58 }
 0x45e   : > { %4218 = vmatmul.mubr.msk.f32.vlgmr.msra.gmra.mrb[4].mxu0 %vm998_vm8, %v2343_v28  ;;  %vm2859_vm8 = vcmask 95232  }
 0x531   : > { %v2849_v21 = vpop.f32.mrb[4].mxu0 }
 0x532   : > { %2854 = vst [vmem:[#allocation4] sm:$0x3f] %v2849_v21  ;;  %v2851_v33 = vpop.f32.mrb[5].mxu0 }
 0x533   : > { %2855 = vst [vmem:[#allocation4 + $0x8] sm:$0x3f] %v2851_v33 }
 0x539   : > { %v2856_v29 = vld [vmem:[#allocation4] sm:$0x3f] }
 0x53a   : > { %v2915_v23 = vld [vmem:[#allocation4] sm:$0x3f]  ;;  %2858 = vst [vmem:[#allocation5] sm:$0x3f] %v2856_v29  ;;  %v2916_v41 = vld [vmem:[#allocation4 + $0x8] sm:$0x3f] }
 0x53b   : > { %2919 = vrot.lane.b32.xlu1 %v2915_v23, %s7338_s23  ;;  %2921 = vrot.lane.b32.xlu0 %v2916_v41, %s7338_s23  ;;  %v2980_v5 = vld [vmem:[#allocation4] sm:$0x3f]  ;;  %v2981_v51 = vld [vmem:[#allocation4 + $0x8] sm:$0x3f]  ;;  %s5253_s23 = smov 114  }
 0x53c   : > { %v3046_v52 = vld [vmem:[#allocation4] sm:$0x3f]  ;;  %v3047_v37 = vld [vmem:[#allocation4 + $0x8] sm:$0x3f] }
 0x53d   : > { %v3111_v31 = vld [vmem:[#allocation4] sm:$0x3f]  ;;  %v3112_v38 = vld [vmem:[#allocation4 + $0x8] sm:$0x3f] }
 0x53e   : > { %v3177_v2 = vld [vmem:[#allocation4] sm:$0x3f]  ;;  %v3178_v15 = vld [vmem:[#allocation4 + $0x8] sm:$0x3f] }
 0x53f   : > { %2984 = vrot.lane.b32.xlu1 %v2980_v5, %s5249_s29  ;;  %2986 = vrot.lane.b32.xlu0 %v2981_v51, %s5249_s29  ;;  %v2861_v40 = vld [vmem:[#allocation4] sm:$0x3f]  ;;  %v2862_v55 = vld [vmem:[#allocation4 + $0x8] sm:$0x3f]  ;;  %s473_s29 = sand.u32 1, %s5212_s30  }
 0x540   : > { %v2865_v7 = vrot.slane %v2861_v40, 2  ;;  %v2866_v49 = vrot.slane %v2862_v55, 2  ;;  %v2880_v14 = vld [vmem:[#allocation4] sm:$0x3f]  ;;  %v2881_v48 = vld [vmem:[#allocation4 + $0x8] sm:$0x3f] }
 0x541   : > { %v2857_v54 = vld [vmem:[#allocation4 + $0x8] sm:$0x3f]  ;;  %v2884_v35 = vrot.slane %v2880_v14, 4  ;;  %v2885_v17 = vrot.slane %v2881_v48, 4  ;;  %v2899_v20 = vld [vmem:[#allocation4] sm:$0x3f] }
 0x542   : > { %2860 = vst.msk [vmem:[#allocation5 + $0x8] sm:$0x3f] %vm2859_vm8, %v2857_v54  ;;  %v2900_v18 = vld [vmem:[#allocation4 + $0x8] sm:$0x3f]  ;;  %v2903_v34 = vrot.slane %v2899_v20, 6 }
 0x543   : > { %3050 = vrot.lane.b32.xlu1 %v3046_v52, %s5250_s26  ;;  %3052 = vrot.lane.b32.xlu0 %v3047_v37, %s5250_s26  ;;  %v2904_v22 = vrot.slane %v2900_v18, 6  ;;  %v2928_v19 = vld [vmem:[#allocation4] sm:$0x3f]  ;;  %v2929_v25 = vld [vmem:[#allocation4 + $0x8] sm:$0x3f] }
 0x544   : > { %v2932_v24 = vrot.slane %v2928_v19, 2  ;;  %v2933_v10 = vrot.slane %v2929_v25, 2  ;;  %v2946_v53 = vld [vmem:[#allocation4] sm:$0x3f]  ;;  %v2947_v30 = vld [vmem:[#allocation4 + $0x8] sm:$0x3f] }
 0x545   : > { %v2950_v16 = vrot.slane %v2946_v53, 4  ;;  %v2951_v26 = vrot.slane %v2947_v30, 4  ;;  %v2964_v56 = vld [vmem:[#allocation4] sm:$0x3f]  ;;  %v2965_v4 = vld [vmem:[#allocation4 + $0x8] sm:$0x3f] }
 0x546   : > { %v2968_v63 = vrot.slane %v2964_v56, 6  ;;  %v2969_v62 = vrot.slane %v2965_v4, 6  ;;  %v2994_v44 = vld [vmem:[#allocation4] sm:$0x3f]  ;;  %v2995_v27 = vld [vmem:[#allocation4 + $0x8] sm:$0x3f] }
 0x547   : > { %3115 = vrot.lane.b32.xlu1 %v3111_v31, %s5251_s22  ;;  %3117 = vrot.lane.b32.xlu0 %v3112_v38, %s5251_s22  ;;  %v2998_v36 = vrot.slane %v2994_v44, 2  ;;  %v2999_v47 = vrot.slane %v2995_v27, 2  ;;  %v3012_v45 = vld [vmem:[#allocation4] sm:$0x3f]  ;;  %v3013_v60 = vld [vmem:[#allocation4 + $0x8] sm:$0x3f] }
 0x548   : > { %v3016_v50 = vrot.slane %v3012_v45, 4  ;;  %v3017_v6 = vrot.slane %v3013_v60, 4  ;;  %v3030_v13 = vld [vmem:[#allocation4] sm:$0x3f]  ;;  %v3031_v46 = vld [vmem:[#allocation4 + $0x8] sm:$0x3f] }
 0x549   : > { %v3034_v8 = vrot.slane %v3030_v13, 6  ;;  %v3035_v57 = vrot.slane %v3031_v46, 6  ;;  %v3060_v61 = vld [vmem:[#allocation4] sm:$0x3f]  ;;  %v3061_v11 = vld [vmem:[#allocation4 + $0x8] sm:$0x3f] }
 0x54a   : > { %v3064_v1 = vrot.slane %v3060_v61, 2  ;;  %v3065_v42 = vrot.slane %v3061_v11, 2  ;;  %v3078_v59 = vld [vmem:[#allocation4] sm:$0x3f]  ;;  %v3079_v32 = vld [vmem:[#allocation4 + $0x8] sm:$0x3f] }
 0x54b   : > { %3181 = vrot.lane.b32.xlu1 %v3177_v2, %s5252_s18  ;;  %3183 = vrot.lane.b32.xlu0 %v3178_v15, %s5252_s18  ;;  %v3082_v9 = vrot.slane %v3078_v59, 4  ;;  %v3083_v43 = vrot.slane %v3079_v32, 4  ;;  %v3095_v12 = vld [vmem:[#allocation4] sm:$0x3f]  ;;  %v3096_v58 = vld [vmem:[#allocation4 + $0x8] sm:$0x3f] }
 0x54c   : > { %v3099_v28 = vrot.slane %v3095_v12, 6  ;;  %v3100_v21 = vrot.slane %v3096_v58, 6  ;;  %v3125_v33 = vld [vmem:[#allocation4] sm:$0x3f]  ;;  %v3126_v29 = vld [vmem:[#allocation4 + $0x8] sm:$0x3f] }
 0x54d   : > { %v3129_v23 = vrot.slane %v3125_v33, 2  ;;  %v3130_v41 = vrot.slane %v3126_v29, 2  ;;  %v3143_v5 = vld [vmem:[#allocation4] sm:$0x3f]  ;;  %v3144_v51 = vld [vmem:[#allocation4 + $0x8] sm:$0x3f] }
 0x54e   : > { %v3147_v52 = vrot.slane %v3143_v5, 4  ;;  %v3148_v37 = vrot.slane %v3144_v51, 4  ;;  %v3161_v31 = vld [vmem:[#allocation4] sm:$0x3f]  ;;  %v3162_v38 = vld [vmem:[#allocation4 + $0x8] sm:$0x3f] }
 0x54f   : > { %2867 = vrot.lane.b32.xlu1 %v2865_v7, %s7335_s16  ;;  %2869 = vrot.lane.b32.xlu0 %v2866_v49, %s7335_s16  ;;  %v3165_v2 = vrot.slane %v3161_v31, 6  ;;  %v3166_v40 = vrot.slane %v3162_v38, 6  ;;  %v3191_v15 = vld [vmem:[#allocation4] sm:$0x3f]  ;;  %v3192_v55 = vld [vmem:[#allocation4 + $0x8] sm:$0x3f] }
 0x550   : > { %v3195_v7 = vrot.slane %v3191_v15, 2  ;;  %v3196_v49 = vrot.slane %v3192_v55, 2  ;;  %v3209_v14 = vld [vmem:[#allocation4] sm:$0x3f]  ;;  %v3210_v48 = vld [vmem:[#allocation4 + $0x8] sm:$0x3f] }
 0x551   : > { %v3213_v54 = vrot.slane %v3209_v14, 4  ;;  %v3228_v20 = vld [vmem:[#allocation4 + $0x8] sm:$0x3f]  ;;  %v3258_v19 = vld [vmem:[%s7229_s4 + $0x8] sm:$0xff]  ;;  %s5267_s22 = smov 68   ;;  %s474_s18 = scalar_lea.vmem [#allocation10], %s473_s29 }
 0x552   : > { %v3244_v25 = vld [vmem:[#allocation4 + $0x8] sm:$0x3f]  ;;  %4221 = vmatprep.mubr.msk.f32.mxu1 %vm3311_vm7, %v3258_v19 }
 0x553   : > { %2886 = vrot.lane.b32.xlu1 %v2884_v35, %s7336_s14  ;;  %2888 = vrot.lane.b32.xlu0 %v2885_v17, %s7336_s14  ;;  %s5254_s14 = smov 113   ;;  %v3214_v35 = vrot.slane %v3210_v48, 4  ;;  %v3227_v17 = vld [vmem:[#allocation4] sm:$0x3f] }
 0x554   : > { %v3231_v18 = vrot.slane %v3227_v17, 6 }
 0x557   : > { %2905 = vrot.lane.b32.xlu1 %v2903_v34, %s7337_s13  ;;  %2907 = vrot.lane.b32.xlu0 %v2904_v22, %s7337_s13  ;;  %s5255_s13 = smov 112   ;;  %v3232_v34 = vrot.slane %v3228_v20, 6  ;;  %v3243_v22 = vld [vmem:[#allocation4] sm:$0x3f] }
 0x55b   : > { %2934 = vrot.lane.b32.xlu1 %v2932_v24, %s5253_s23  ;;  %2936 = vrot.lane.b32.xlu0 %v2933_v10, %s5253_s23  ;;  %v3300_v24 = vld [vmem:[%s7230_s5 + $0x8] sm:$0xff]  ;;  %v3299_v10 = vld [vmem:[%s7230_s5] sm:$0xff] }
 0x55f   : > { %2952 = vrot.lane.b32.xlu1 %v2950_v16, %s5254_s14  ;;  %2954 = vrot.lane.b32.xlu0 %v2951_v26, %s5254_s14  ;;  %s4131_s14 = sshll.u32 %s474_s18, 4  ;;  %s7185_s14 = int_to_ptr.vmem [resolvable:$true] %s4131_s14 }
 0x563   : > { %2970 = vrot.lane.b32.xlu1 %v2968_v63, %s5255_s13  ;;  %2972 = vrot.lane.b32.xlu0 %v2969_v62, %s5255_s13 }
 0x567   : > { %3000 = vrot.lane.b32.xlu1 %v2998_v36, %s5256_s20  ;;  %3002 = vrot.lane.b32.xlu0 %v2999_v47, %s5256_s20 }
 0x56b   : > { %3018 = vrot.lane.b32.xlu1 %v3016_v50, %s5257_s19  ;;  %3020 = vrot.lane.b32.xlu0 %v3017_v6, %s5257_s19  ;;  %s7371_s19 = sld [smem:[#allocation24_spill]] }
 0x56f   : > { %3036 = vrot.lane.b32.xlu1 %v3034_v8, %s5258_s24  ;;  %3038 = vrot.lane.b32.xlu0 %v3035_v57, %s5258_s24 }
 0x573   : > { %3066 = vrot.lane.b32.xlu1 %v3064_v1, %s5259_s21  ;;  %3068 = vrot.lane.b32.xlu0 %v3065_v42, %s5259_s21  ;;  %s4119_s21 = scalar_lea.sflag [#allocation9], %s473_s29 }
 0x577   : > { %3084 = vrot.lane.b32.xlu1 %v3082_v9, %s7339_s11  ;;  %3086 = vrot.lane.b32.xlu0 %v3083_v43, %s7339_s11  ;;  %s5263_s11 = smov 82  }
 0x57b   : > { %3101 = vrot.lane.b32.xlu1 %v3099_v28, %s5260_s28  ;;  %3103 = vrot.lane.b32.xlu0 %v3100_v21, %s5260_s28  ;;  %s5154_s28 = scalar_lea.vmem %s7185_s14, 16 }
 0x57c   : > { %p5155_p6 = scmp.ne.s32.totalorder %s7185_s14, %s5154_s28 }
 0x57f   : > { %3131 = vrot.lane.b32.xlu1 %v3129_v23, %s5261_s27  ;;  %3133 = vrot.lane.b32.xlu0 %v3130_v41, %s5261_s27 }
 0x583   : > { %3149 = vrot.lane.b32.xlu1 %v3147_v52, %s5262_s25  ;;  %3151 = vrot.lane.b32.xlu0 %v3148_v37, %s5262_s25 }
 0x587   : > { %3167 = vrot.lane.b32.xlu1 %v3165_v2, %s5263_s11  ;;  %3169 = vrot.lane.b32.xlu0 %v3166_v40, %s5263_s11 }
 0x58b   : > { %3197 = vrot.lane.b32.xlu1 %v3195_v7, %s5264_s15  ;;  %3199 = vrot.lane.b32.xlu0 %v3196_v49, %s5264_s15 }
 0x58f   : > { %3215 = vrot.lane.b32.xlu1 %v3213_v54, %s5265_s0  ;;  %3217 = vrot.lane.b32.xlu0 %v3214_v35, %s5265_s0  ;;  %s7368_s0 = sld [smem:[#allocation22_spill]] }
 0x593   : > { %3233 = vrot.lane.b32.xlu1 %v3231_v18, %s5266_s3  ;;  %3235 = vrot.lane.b32.xlu0 %v3232_v34, %s5266_s3  ;;  %s7369_s3 = sld [smem:[#allocation18_spill]] }
 0x597   : > { %3247 = vrot.lane.b32.xlu1 %v3243_v22, %s5267_s22  ;;  %3249 = vrot.lane.b32.xlu0 %v3244_v25, %s5267_s22  ;;  %s4235_s22 = sshll.u32 %s5365_s17, 4  ;;  %s5268_s17 = smov [#allocation10]  }
 0x598   : > { %s7183_s24 = scalar_lea.hbm %s7371_s19, %s4235_s22  ;;  %s5158_s27 = sshll.u32 %s5268_s17, 4  ;;  %s5159_s27 = int_to_ptr.vmem [resolvable:$false] %s5158_s27 }
 0x599   : > { %p7372_p9 = scmp.ne.s32.totalorder %s7369_s3, 0  ;;  %s5160_s25 = scalar_lea.vmem %s5159_s27, 32 }
 0x59a   : > { %p5161_p2 = scmp.lt.s32.totalorder %s7185_s14, %s5159_s27  ;;  %p5162_p3 = scmp.lt.s32.totalorder %s5160_s25, %s5154_s28 }
 0x59b   : > { %3308 = vperm.xlu0 %4994, %v3300_v24   ;;  %3303 = vperm.xlu1 %5020, %v3299_v10   ;;  %p5156_p10 = pnand %p5155_p6, %p7372_p9 }
 0x59c   : > { %p5163_p4 = por %p5162_p3, %p5161_p2 }
 0x59d   : > { %p5157_p12 = pneg %p5156_p10 }
 0x59f   : > { %p5164_p7 = pnand %p5163_p4, %p5157_p12 }
 0x5ad   : > { %v2920_v53 = vpop.permute.xlu1 %2919  ;;  %v2922_v30 = vpop.permute.xlu0 %2921 }
 0x5ae   : > { %v2923_v16 = vsel %vm709_vm3, %v2920_v53, %v2922_v30  ;;  %2927 = vst.msk [vmem:[#allocation5 + $0x38] sm:$0x3f] %vm2859_vm8, %v2922_v30 }
 0x5af   : > { %2926 = vst [vmem:[#allocation5 + $0x30] sm:$0x3f] %v2923_v16 }
 0x5b1   : > { %v2985_v26 = vpop.permute.xlu1 %2984  ;;  %v2987_v56 = vpop.permute.xlu0 %2986 }
 0x5b2   : > { %v2989_v4 = vsel %vm2988_vm13, %v2985_v26, %v2987_v56  ;;  %2993 = vst.msk [vmem:[#allocation5 + $0x68] sm:$0x3f] %vm2859_vm8, %v2987_v56  ;;  %vm2897_vm13 = vcmask 91136  }
 0x5b3   : > { %2992 = vst [vmem:[#allocation5 + $0x60] sm:$0x3f] %v2989_v4 }
 0x5b5   : > { %v3051_v63 = vpop.permute.xlu1 %3050  ;;  %v3053_v62 = vpop.permute.xlu0 %3052 }
 0x5b6   : > { %v3055_v44 = vsel %vm3054_vm9, %v3051_v63, %v3053_v62  ;;  %3059 = vst.msk [vmem:[#allocation5 + $0x98] sm:$0x3f] %vm2859_vm8, %v3053_v62  ;;  %vm2913_vm9 = vcmask 97282  }
 0x5b7   : > { %3058 = vst [vmem:[#allocation5 + $0x90] sm:$0x3f] %v3055_v44 }
 0x5b9   : > { %v3116_v27 = vpop.permute.xlu1 %3115  ;;  %v3118_v36 = vpop.permute.xlu0 %3117 }
 0x5ba   : > { %v3120_v47 = vsel %vm3119_vm10, %v3116_v27, %v3118_v36  ;;  %3124 = vst.msk [vmem:[#allocation5 + $0xc8] sm:$0x3f] %vm2859_vm8, %v3118_v36  ;;  %vm2938_vm10 = vcmask 932864  }
 0x5bb   : > { %3123 = vst [vmem:[#allocation5 + $0xc0] sm:$0x3f] %v3120_v47 }
 0x5bd   : > { %v3182_v45 = vpop.permute.xlu1 %3181  ;;  %v3184_v60 = vpop.permute.xlu0 %3183 }
 0x5be   : > { %v3186_v50 = vsel %vm3185_vm11, %v3182_v45, %v3184_v60  ;;  %3190 = vst.msk [vmem:[#allocation5 + $0xf8] sm:$0x3f] %vm2859_vm8, %v3184_v60  ;;  %vm3004_vm11 = vcmask 900096  }
 0x5bf   : > { %3189 = vst [vmem:[#allocation5 + $0xf0] sm:$0x3f] %v3186_v50 }
 0x5c1   : > { %v2868_v6 = vpop.permute.xlu1 %2867  ;;  %v2870_v13 = vpop.permute.xlu0 %2869 }
 0x5c2   : > { %v2871_v46 = vsel %vm536_vm0, %v2868_v6, %v2870_v13  ;;  %2876 = vst.msk [vmem:[#allocation5 + $0x8] sm:$0xc0] %vm2875_vm5, %v2870_v13 }
 0x5c3   : > { %2879 = vst.msk [vmem:[#allocation5 + $0x18] sm:$0xf] %vm2878_vm6, %v2870_v13  ;;  %2874 = vst [vmem:[#allocation5 + $0x10] ss:$-12 sps:$4 sm:$0xcf] %v2871_v46  }
 0x5c5   : > { %v2887_v8 = vpop.permute.xlu1 %2886  ;;  %v2889_v57 = vpop.permute.xlu0 %2888 }
 0x5c6   : > { %v2890_v61 = vsel %vm594_vm1, %v2887_v8, %v2889_v57  ;;  %2895 = vst.msk [vmem:[#allocation5 + $0x18] sm:$0xf0] %vm2894_vm15, %v2889_v57  ;;  %vm2956_vm1 = vcmask 924672  }
 0x5c7   : > { %2898 = vst.msk [vmem:[#allocation5 + $0x28] sm:$0x3] %vm2897_vm13, %v2889_v57  ;;  %2893 = vst [vmem:[#allocation5 + $0x20] ss:$-12 sps:$4 sm:$0xf3] %v2890_v61  }
 0x5c9   : > { %v2906_v11 = vpop.permute.xlu1 %2905  ;;  %v2908_v1 = vpop.permute.xlu0 %2907  ;;  %v3262_v9 = vld [vmem:[#allocation5 + $0x8] sm:$0xff] }
 0x5ca   : > { %v2909_v42 = vsel %vm659_vm2, %v2906_v11, %v2908_v1  ;;  %2914 = vst.msk [vmem:[#allocation5 + $0x28] sm:$0xfc] %vm2913_vm9, %v2908_v1  ;;  %v3261_v28 = vld [vmem:[#allocation5] sm:$0xff]  ;;  %vm2974_vm2 = vcmask 916480  }
 0x5cb   : > { %2912 = vst [vmem:[#allocation5 + $0x20] sm:$0xfc] %v2909_v42 }
 0x5cd   : > { %v2935_v59 = vpop.permute.xlu1 %2934  ;;  %v2937_v32 = vpop.permute.xlu0 %2936  ;;  %v3264_v43 = vld [vmem:[#allocation5 + $0x18] sm:$0xff] }
 0x5ce   : > { %v2939_v12 = vsel %vm2938_vm10, %v2935_v59, %v2937_v32  ;;  %2943 = vst.msk [vmem:[#allocation5 + $0x38] sm:$0xc0] %vm2875_vm5, %v2937_v32  ;;  %v4693_v58 = vpack.c.bf16 %v3264_v43, %v3262_v9  ;;  %v3263_v21 = vld [vmem:[#allocation5 + $0x10] sm:$0xff] }
 0x5cf   : > { %2945 = vst.msk [vmem:[#allocation5 + $0x48] sm:$0xf] %vm2878_vm6, %v2937_v32  ;;  %2942 = vst [vmem:[#allocation5 + $0x40] ss:$-12 sps:$4 sm:$0xcf] %v2939_v12   ;;  %v4695_v33 = vpack.c.bf16 %v3263_v21, %v3261_v28 }
 0x5d0   : > { %4694 = vmatprep.subr.bf16.mxu1 %v4693_v58 }
 0x5d1   : > { %v2953_v29 = vpop.permute.xlu1 %2952  ;;  %v2955_v23 = vpop.permute.xlu0 %2954  ;;  %4696 = vmatpush1.bf16.msra.mxu1 %v4695_v33  ;;  %v3266_v52 = vld [vmem:[#allocation5 + $0x28] sm:$0xff] }
 0x5d2   : > { %v2957_v41 = vsel %vm2956_vm1, %v2953_v29, %v2955_v23  ;;  %2961 = vst.msk [vmem:[#allocation5 + $0x48] sm:$0xf0] %vm2894_vm15, %v2955_v23  ;;  %v3265_v2 = vld [vmem:[#allocation5 + $0x20] sm:$0xff]  ;;  %vm3022_vm1 = vcmask 818176  }
 0x5d3   : > { %2963 = vst.msk [vmem:[#allocation5 + $0x58] sm:$0x3] %vm2897_vm13, %v2955_v23  ;;  %2960 = vst [vmem:[#allocation5 + $0x50] ss:$-12 sps:$4 sm:$0xf3] %v2957_v41  }
 0x5d5   : > { %v2971_v5 = vpop.permute.xlu1 %2970  ;;  %v2973_v51 = vpop.permute.xlu0 %2972  ;;  %v3268_v37 = vld [vmem:[#allocation5 + $0x38] sm:$0xff] }
 0x5d6   : > { %v2975_v31 = vsel %vm2974_vm2, %v2971_v5, %v2973_v51  ;;  %2979 = vst.msk [vmem:[#allocation5 + $0x58] sm:$0xfc] %vm2913_vm9, %v2973_v51  ;;  %v4697_v38 = vpack.c.bf16 %v3268_v37, %v3266_v52  ;;  %v3267_v40 = vld [vmem:[#allocation5 + $0x30] sm:$0xff]  ;;  %vm3040_vm2 = vcmask 809984  }
 0x5d7   : > { %2978 = vst [vmem:[#allocation5 + $0x50] sm:$0xfc] %v2975_v31  ;;  %v4699_v15 = vpack.c.bf16 %v3267_v40, %v3265_v2 }
 0x5d8   : > { %4698 = vmatprep.subr.bf16.mxu1 %v4697_v38 }
 0x5d9   : > { %v3001_v55 = vpop.permute.xlu1 %3000  ;;  %v3003_v7 = vpop.permute.xlu0 %3002  ;;  %4700 = vmatpush1.bf16.msra.mxu1 %v4699_v15  ;;  %v3270_v54 = vld [vmem:[#allocation5 + $0x48] sm:$0xff] }
 0x5da   : > { %v3005_v49 = vsel %vm3004_vm11, %v3001_v55, %v3003_v7  ;;  %3009 = vst.msk [vmem:[#allocation5 + $0x68] sm:$0xc0] %vm2875_vm5, %v3003_v7  ;;  %v3269_v18 = vld [vmem:[#allocation5 + $0x40] sm:$0xff]  ;;  %vm3070_vm11 = vcmask 793600  }
 0x5db   : > { %3011 = vst.msk [vmem:[#allocation5 + $0x78] sm:$0xf] %vm2878_vm6, %v3003_v7  ;;  %3008 = vst [vmem:[#allocation5 + $0x70] ss:$-12 sps:$4 sm:$0xcf] %v3005_v49  }
 0x5dd   : > { %v3019_v14 = vpop.permute.xlu1 %3018  ;;  %v3021_v48 = vpop.permute.xlu0 %3020  ;;  %v3272_v35 = vld [vmem:[#allocation5 + $0x58] sm:$0xff] }
 0x5de   : > { %v3023_v17 = vsel %vm3022_vm1, %v3019_v14, %v3021_v48  ;;  %3027 = vst.msk [vmem:[#allocation5 + $0x78] sm:$0xf0] %vm2894_vm15, %v3021_v48  ;;  %v4701_v20 = vpack.c.bf16 %v3272_v35, %v3270_v54  ;;  %v3271_v34 = vld [vmem:[#allocation5 + $0x50] sm:$0xff]  ;;  %vm3105_vm1 = vcmask 703488  }
 0x5df   : > { %3029 = vst.msk [vmem:[#allocation5 + $0x88] sm:$0x3] %vm2897_vm13, %v3021_v48  ;;  %3026 = vst [vmem:[#allocation5 + $0x80] ss:$-12 sps:$4 sm:$0xf3] %v3023_v17   ;;  %v4703_v22 = vpack.c.bf16 %v3271_v34, %v3269_v18 }
 0x5e0   : > { %4702 = vmatprep.subr.bf16.mxu1 %v4701_v20 }
 0x5e1   : > { %v3037_v19 = vpop.permute.xlu1 %3036  ;;  %v3039_v25 = vpop.permute.xlu0 %3038  ;;  %4704 = vmatpush1.bf16.msra.mxu1 %v4703_v22  ;;  %v3274_v30 = vld [vmem:[#allocation5 + $0x68] sm:$0xff] }
 0x5e2   : > { %v3041_v24 = vsel %vm3040_vm2, %v3037_v19, %v3039_v25  ;;  %3045 = vst.msk [vmem:[#allocation5 + $0x88] sm:$0xfc] %vm2913_vm9, %v3039_v25  ;;  %v3273_v4 = vld [vmem:[#allocation5 + $0x60] sm:$0xff]  ;;  %vm3135_vm2 = vcmask 687104  }
 0x5e3   : > { %3044 = vst [vmem:[#allocation5 + $0x80] sm:$0xfc] %v3041_v24 }
 0x5e5   : > { %v3067_v10 = vpop.permute.xlu1 %3066  ;;  %v3069_v53 = vpop.permute.xlu0 %3068  ;;  %v3276_v16 = vld [vmem:[#allocation5 + $0x78] sm:$0xff] }
 0x5e6   : > { %v3071_v26 = vsel %vm3070_vm11, %v3067_v10, %v3069_v53  ;;  %3075 = vst.msk [vmem:[#allocation5 + $0x98] sm:$0xc0] %vm2875_vm5, %v3069_v53  ;;  %v4705_v56 = vpack.c.bf16 %v3276_v16, %v3274_v30  ;;  %v3275_v63 = vld [vmem:[#allocation5 + $0x70] sm:$0xff]  ;;  %vm3171_vm11 = vcmask 670720  }
 0x5e7   : > { %3077 = vst.msk [vmem:[#allocation5 + $0xa8] sm:$0xf] %vm2878_vm6, %v3069_v53  ;;  %3074 = vst [vmem:[#allocation5 + $0xa0] ss:$-12 sps:$4 sm:$0xcf] %v3071_v26   ;;  %v4707_v62 = vpack.c.bf16 %v3275_v63, %v3273_v4  ;;  %v3257_v4 = vld [vmem:[%s7229_s4] sm:$0xff] }
 0x5e8   : > { %4706 = vmatprep.subr.bf16.mxu1 %v4705_v56 }
 0x5e9   : > { %v3085_v44 = vpop.permute.xlu1 %3084  ;;  %v3087_v27 = vpop.permute.xlu0 %3086  ;;  %4708 = vmatpush1.bf16.msra.mxu1 %v4707_v62  ;;  %v3278_v60 = vld [vmem:[#allocation5 + $0x88] sm:$0xff]  ;;  %v3260_v62 = vld [vmem:[%s7229_s4 + $0x18] sm:$0xff] }
 0x5ea   : > { %v3088_v36 = vsel %vm767_vm4, %v3085_v44, %v3087_v27  ;;  %3092 = vst.msk [vmem:[#allocation5 + $0xa8] sm:$0xf0] %vm2894_vm15, %v3087_v27  ;;  %v3277_v46 = vld [vmem:[#allocation5 + $0x80] sm:$0xff]  ;;  %vm3153_vm4 = vcmask 678912   ;;  %v3259_v44 = vld [vmem:[%s7229_s4 + $0x10] sm:$0xff] }
 0x5eb   : > { %3094 = vst.msk [vmem:[#allocation5 + $0xb8] sm:$0x3] %vm2897_vm13, %v3087_v27  ;;  %3091 = vst [vmem:[#allocation5 + $0xb0] ss:$-12 sps:$4 sm:$0xf3] %v3088_v36  }
 0x5ed   : > { %v3102_v47 = vpop.permute.xlu1 %3101  ;;  %v3104_v45 = vpop.permute.xlu0 %3103  ;;  %v3280_v50 = vld [vmem:[#allocation5 + $0x98] sm:$0xff] }
 0x5ee   : > { %v3106_v6 = vsel %vm3105_vm1, %v3102_v47, %v3104_v45  ;;  %3110 = vst.msk [vmem:[#allocation5 + $0xb8] sm:$0xfc] %vm2913_vm9, %v3104_v45  ;;  %v4709_v13 = vpack.c.bf16 %v3280_v50, %v3278_v60  ;;  %v3279_v8 = vld [vmem:[#allocation5 + $0x90] sm:$0xff]  ;;  %vm3201_vm1 = vcmask 580608  }
 0x5ef   : > { %3109 = vst [vmem:[#allocation5 + $0xb0] sm:$0xfc] %v3106_v6  ;;  %v4711_v57 = vpack.c.bf16 %v3279_v8, %v3277_v46 }
 0x5f0   : > { %4710 = vmatprep.subr.bf16.mxu1 %v4709_v13 }
 0x5f1   : > { %v3132_v61 = vpop.permute.xlu1 %3131  ;;  %v3134_v11 = vpop.permute.xlu0 %3133  ;;  %4712 = vmatpush1.bf16.msra.mxu1 %v4711_v57  ;;  %v3282_v32 = vld [vmem:[#allocation5 + $0xa8] sm:$0xff] }
 0x5f2   : > { %v3136_v1 = vsel %vm3135_vm2, %v3132_v61, %v3134_v11  ;;  %3140 = vst.msk [vmem:[#allocation5 + $0xc8] sm:$0xc0] %vm2875_vm5, %v3134_v11  ;;  %v3281_v58 = vld [vmem:[#allocation5 + $0xa0] sm:$0xff] }
 0x5f3   : > { %3142 = vst.msk [vmem:[#allocation5 + $0xd8] sm:$0xf] %vm2878_vm6, %v3134_v11  ;;  %3139 = vst [vmem:[#allocation5 + $0xd0] ss:$-12 sps:$4 sm:$0xcf] %v3136_v1  }
 0x5f5   : > { %v3150_v42 = vpop.permute.xlu1 %3149  ;;  %v3152_v59 = vpop.permute.xlu0 %3151  ;;  %v3284_v9 = vld [vmem:[#allocation5 + $0xb8] sm:$0xff] }
 0x5f6   : > { %v3154_v43 = vsel %vm3153_vm4, %v3150_v42, %v3152_v59  ;;  %3158 = vst.msk [vmem:[#allocation5 + $0xd8] sm:$0xf0] %vm2894_vm15, %v3152_v59  ;;  %v4713_v12 = vpack.c.bf16 %v3284_v9, %v3282_v32  ;;  %v3283_v28 = vld [vmem:[#allocation5 + $0xb0] sm:$0xff]  ;;  %vm3219_vm4 = vcmask 572416   ;;  %v3459_v32 = vld [vmem:[%s7231_s6] sm:$0xff] }
 0x5f7   : > { %3160 = vst.msk [vmem:[#allocation5 + $0xe8] sm:$0x3] %vm2897_vm13, %v3152_v59  ;;  %3157 = vst [vmem:[#allocation5 + $0xe0] ss:$-12 sps:$4 sm:$0xf3] %v3154_v43   ;;  %v4715_v21 = vpack.c.bf16 %v3283_v28, %v3281_v58  ;;  %v3460_v42 = vld [vmem:[%s7231_s6 + $0x8] sm:$0xff] }
 0x5f8   : > { %4714 = vmatprep.subr.bf16.mxu1 %v4713_v12  ;;  %v3464_v59 = vld [vmem:[%s7231_s6 + $0x28] sm:$0xff]  ;;  %v3463_v43 = vld [vmem:[%s7231_s6 + $0x20] sm:$0xff] }
 0x5f9   : > { %v3168_v33 = vpop.permute.xlu1 %3167  ;;  %v3170_v29 = vpop.permute.xlu0 %3169  ;;  %4716 = vmatpush1.bf16.msra.mxu1 %v4715_v21  ;;  %v3286_v51 = vld [vmem:[#allocation5 + $0xc8] sm:$0xff]  ;;  %v4729_v9 = vpack.c.bf16 %v3464_v59, %v3460_v42  ;;  %v3468_v12 = vld [vmem:[%s7231_s6 + $0x48] sm:$0xff]  ;;  %v4731_v28 = vpack.c.bf16 %v3463_v43, %v3459_v32  ;;  %v3461_v43 = vld [vmem:[%s7231_s6 + $0x10] sm:$0xff] }
 0x5fa   : > { %v3172_v23 = vsel %vm3171_vm11, %v3168_v33, %v3170_v29  ;;  %3176 = vst.msk [vmem:[#allocation5 + $0xe8] sm:$0xfc] %vm2913_vm9, %v3170_v29  ;;  %v3285_v38 = vld [vmem:[#allocation5 + $0xc0] sm:$0xff]  ;;  %vm3237_vm11 = vcmask 564224   ;;  %v3472_v58 = vld [vmem:[%s7231_s6 + $0x68] sm:$0xff]  ;;  %v3467_v33 = vld [vmem:[%s7231_s6 + $0x40] sm:$0xff] }
 0x5fb   : > { %3175 = vst [vmem:[#allocation5 + $0xe0] sm:$0xfc] %v3172_v23  ;;  %v4733_v21 = vpack.c.bf16 %v3472_v58, %v3468_v12  ;;  %v3471_v29 = vld [vmem:[%s7231_s6 + $0x60] sm:$0xff]  ;;  %v3476_v23 = vld [vmem:[%s7231_s6 + $0x88] sm:$0xff]  ;;  %v3465_v12 = vld [vmem:[%s7231_s6 + $0x30] sm:$0xff] }
 0x5fd   : > { %v3198_v41 = vpop.permute.xlu1 %3197  ;;  %v3200_v5 = vpop.permute.xlu0 %3199  ;;  %v3288_v52 = vld [vmem:[#allocation5 + $0xd8] sm:$0xff] }
 0x5fe   : > { %v3202_v37 = vsel %vm3201_vm1, %v3198_v41, %v3200_v5  ;;  %3206 = vst.msk [vmem:[#allocation5 + $0xf8] sm:$0xc0] %vm2875_vm5, %v3200_v5  ;;  %v4717_v31 = vpack.c.bf16 %v3288_v52, %v3286_v51  ;;  %v3287_v2 = vld [vmem:[#allocation5 + $0xd0] sm:$0xff]  ;;  %vm3251_vm5 = vcmask 556032  }
 0x5ff   : > { %3208 = vst.msk [vmem:[#allocation5 + $0x108] sm:$0xf] %vm2878_vm6, %v3200_v5  ;;  %3205 = vst [vmem:[#allocation5 + $0x100] ss:$-12 sps:$4 sm:$0xcf] %v3202_v37   ;;  %v4719_v40 = vpack.c.bf16 %v3287_v2, %v3285_v38  ;;  %vm3318_vm6 = vcmask 1045504   ;;  %v4735_v5 = vpack.c.bf16 %v3471_v29, %v3467_v33 }
 0x600   : > { %4718 = vmatprep.subr.bf16.mxu1 %v4717_v31  ;;  %v3480_v41 = vld [vmem:[%s7231_s6 + $0xa8] sm:$0xff]  ;;  %v3475_v37 = vld [vmem:[%s7231_s6 + $0x80] sm:$0xff] }
 0x601   : > { %v3216_v15 = vpop.permute.xlu1 %3215  ;;  %v3218_v55 = vpop.permute.xlu0 %3217  ;;  %4720 = vmatpush1.bf16.msra.mxu1 %v4719_v40  ;;  %v3290_v48 = vld [vmem:[#allocation5 + $0xe8] sm:$0xff]  ;;  %v4737_v52 = vpack.c.bf16 %v3480_v41, %v3476_v23  ;;  %v3484_v38 = vld [vmem:[%s7231_s6 + $0xc8] sm:$0xff]  ;;  %v4765_v41 = vpack.c.bf16 %v3465_v12, %v3461_v43  ;;  %v3761_v43 = vld [vmem:[%s7233_s8 + $0x98] sm:$0xff] }
 0x602   : > { %v3220_v7 = vsel %vm3219_vm4, %v3216_v15, %v3218_v55  ;;  %3224 = vst.msk [vmem:[#allocation5 + $0x108] sm:$0xf0] %vm2894_vm15, %v3218_v55  ;;  %v3289_v20 = vld [vmem:[#allocation5 + $0xe0] sm:$0xff]  ;;  %v3479_v31 = vld [vmem:[%s7231_s6 + $0xa0] sm:$0xff]  ;;  %v3488_v2 = vld [vmem:[%s7231_s6 + $0xe8] sm:$0xff] }
 0x603   : > { %3226 = vst.msk [vmem:[#allocation5 + $0x118] sm:$0x3] %vm2897_vm13, %v3218_v55  ;;  %3223 = vst [vmem:[#allocation5 + $0x110] ss:$-12 sps:$4 sm:$0xf3] %v3220_v7   ;;  %v4739_v40 = vpack.c.bf16 %v3479_v31, %v3475_v37  ;;  %v4741_v55 = vpack.c.bf16 %v3488_v2, %v3484_v38  ;;  %v3483_v7 = vld [vmem:[%s7231_s6 + $0xc0] sm:$0xff] }
 0x604   : > { %v3473_v37 = vld [vmem:[%s7231_s6 + $0x70] sm:$0xff]  ;;  %v3482_v38 = vld [vmem:[%s7231_s6 + $0xb8] sm:$0xff] }
 0x605   : > { %v3234_v49 = vpop.permute.xlu1 %3233  ;;  %v3236_v14 = vpop.permute.xlu0 %3235  ;;  %v3292_v54 = vld [vmem:[#allocation5 + $0xf8] sm:$0xff] }
 0x606   : > { %v3238_v35 = vsel %vm3237_vm11, %v3234_v49, %v3236_v14  ;;  %3242 = vst.msk [vmem:[#allocation5 + $0x118] sm:$0xfc] %vm2913_vm9, %v3236_v14  ;;  %v4721_v17 = vpack.c.bf16 %v3292_v54, %v3290_v48  ;;  %v3291_v18 = vld [vmem:[#allocation5 + $0xf0] sm:$0xff]  ;;  %v3487_v49 = vld [vmem:[%s7231_s6 + $0xe0] sm:$0xff] }
 0x607   : > { %3241 = vst [vmem:[#allocation5 + $0x110] sm:$0xfc] %v3238_v35  ;;  %v4723_v34 = vpack.c.bf16 %v3291_v18, %v3289_v20  ;;  %v3492_v14 = vld [vmem:[%s7231_s6 + $0x108] sm:$0xff]  ;;  %v4743_v54 = vpack.c.bf16 %v3487_v49, %v3483_v7  ;;  %v3495_v20 = vld [vmem:[%s7231_s6 + $0x120] sm:$0xff] }
 0x608   : > { %4722 = vmatprep.subr.bf16.mxu1 %v4721_v17  ;;  %v3496_v48 = vld [vmem:[%s7231_s6 + $0x128] sm:$0xff]  ;;  %v3491_v17 = vld [vmem:[%s7231_s6 + $0x100] sm:$0xff] }
 0x609   : > { %v3248_v22 = vpop.permute.xlu1 %3247  ;;  %v3250_v19 = vpop.permute.xlu0 %3249  ;;  %4724 = vmatpush1.bf16.msra.mxu1 %v4723_v34  ;;  %v3294_v24 = vld [vmem:[#allocation5 + $0x108] sm:$0xff]  ;;  %v4745_v35 = vpack.c.bf16 %v3496_v48, %v3492_v14  ;;  %v3500_v18 = vld [vmem:[%s7231_s6 + $0x148] sm:$0xff]  ;;  %v3477_v14 = vld [vmem:[%s7231_s6 + $0x90] sm:$0xff] }
 0x60a   : > { %v3252_v25 = vsel %vm3251_vm5, %v3248_v22, %v3250_v19  ;;  %3256 = vst.msk [vmem:[#allocation5 + $0x128] sm:$0x3f] %vm2859_vm8, %v3250_v19  ;;  %v3293_v30 = vld [vmem:[#allocation5 + $0x100] sm:$0xff]  ;;  %vm3407_vm8 = vcmask 97280   ;;  %v3504_v34 = vld [vmem:[%s7231_s6 + $0x168] sm:$0xff]  ;;  %v4747_v22 = vpack.c.bf16 %v3495_v20, %v3491_v17  ;;  %v3485_v20 = vld [vmem:[%s7231_s6 + $0xd0] sm:$0xff] }
 0x60b   : > { %3255 = vst [vmem:[#allocation5 + $0x120] sm:$0x3f] %v3252_v25  ;;  %v4749_v19 = vpack.c.bf16 %v3504_v34, %v3500_v18  ;;  %v3499_v25 = vld [vmem:[%s7231_s6 + $0x140] sm:$0xff]  ;;  %v3486_v48 = vld [vmem:[%s7231_s6 + $0xd8] sm:$0xff]  ;;  %v3489_v18 = vld [vmem:[%s7231_s6 + $0xf0] sm:$0xff] }
 0x60c   : > { %v3494_v34 = vld [vmem:[%s7231_s6 + $0x118] sm:$0xff] }
 0x60d   : > { %v3296_v10 = vld [vmem:[#allocation5 + $0x118] sm:$0xff] }
 0x60e   : > { %v4725_v53 = vpack.c.bf16 %v3296_v10, %v3294_v24  ;;  %v3295_v16 = vld [vmem:[#allocation5 + $0x110] sm:$0xff]  ;;  %v3503_v24 = vld [vmem:[%s7231_s6 + $0x160] sm:$0xff] }
 0x60f   : > { %v4727_v26 = vpack.c.bf16 %v3295_v16, %v3293_v30  ;;  %v3508_v10 = vld [vmem:[%s7231_s6 + $0x188] sm:$0xff]  ;;  %v4751_v30 = vpack.c.bf16 %v3503_v24, %v3499_v25  ;;  %v3493_v24 = vld [vmem:[%s7231_s6 + $0x110] sm:$0xff] }
 0x610   : > { %4726 = vmatprep.subr.bf16.mxu1 %v4725_v53  ;;  %v3512_v53 = vld [vmem:[%s7231_s6 + $0x1a8] sm:$0xff] }
 0x611   : > { %4728 = vmatpush1.bf16.msra.mxu1 %v4727_v26  ;;  %v3298_v56 = vld [vmem:[#allocation5 + $0x128] sm:$0x3f]  ;;  %v4753_v16 = vpack.c.bf16 %v3512_v53, %v3508_v10  ;;  %v3497_v10 = vld [vmem:[%s7231_s6 + $0x130] sm:$0xff]  ;;  %v3502_v53 = vld [vmem:[%s7231_s6 + $0x158] sm:$0xff] }
 0x612   : > { %4219 = vmatprep.subr.msk.mxu1 %vm3318_vm6, %v3298_v56  ;;  %v3297_v63 = vld [vmem:[#allocation5 + $0x120] sm:$0x3f]  ;;  %v3507_v26 = vld [vmem:[%s7231_s6 + $0x180] sm:$0xff] }
 0x613   : > { %v3511_v56 = vld [vmem:[%s7231_s6 + $0x1a0] sm:$0xff] }
 0x615   : > { %4220 = vmatpush1.msk.msra.mxu1 %vm3318_vm6, %v3297_v63  ;;  %v3520_v63 = vld [vmem:[%s7231_s6 + $0x1e8] sm:$0xf] }
 0x616   : > { %3390 = vmatmul.mubr.f32.vlgmr.msra.gmra.mrb[4].mxu1 %v3257_v4  ;;  %4730 = vmatprep.subr.bf16.mxu1 %v4729_v9  ;;  %v3516_v4 = vld [vmem:[%s7231_s6 + $0x1c8] sm:$0xff] }
 0x617   : > { %4222 = vmatprep.mubr.msk.f32.mxu1 %vm3311_vm7, %v3260_v62  ;;  %4732 = vmatpush1.bf16.msra.mxu1 %v4731_v28  ;;  %v4755_v62 = vpack.c.bf16 %v3511_v56, %v3507_v26  ;;  %v3470_v28 = vld [vmem:[%s7231_s6 + $0x58] sm:$0xff]  ;;  %v3501_v56 = vld [vmem:[%s7231_s6 + $0x150] sm:$0xff] }
 0x618   : > { %4734 = vmatprep.subr.bf16.mxu1 %v4733_v21  ;;  %v3474_v21 = vld [vmem:[%s7231_s6 + $0x78] sm:$0xff] }
 0x61a   : > { %3396 = vmatmul.mubr.f32.gmra.mrb[6].mxu1 %v3259_v44  ;;  %v3304_v27 = vpop.permute.xlu1 %3303  ;;  %v3309_v6 = vpop.permute.xlu0 %3308  ;;  %v4757_v44 = vpack.c.bf16 %v3520_v63, %v3516_v4  ;;  %v3505_v4 = vld [vmem:[%s7231_s6 + $0x170] sm:$0xff]  ;;  %v3510_v63 = vld [vmem:[%s7231_s6 + $0x198] sm:$0xff] }
 0x61b   : > { %3605 = vmatprep.mubr.f32.mxu1 %v5244_v0  ;;  %4736 = vmatpush1.bf16.msra.mxu1 %v4735_v5 }
 0x61c   : > { %4738 = vmatprep.subr.bf16.mxu1 %v4737_v52  ;;  %v3469_v52 = vld [vmem:[%s7231_s6 + $0x50] sm:$0xff] }
 0x61f   : > { %4740 = vmatpush1.bf16.msra.mxu1 %v4739_v40 }
 0x620   : > { %4742 = vmatprep.subr.bf16.mxu1 %v4741_v55  ;;  %v4769_v55 = vpack.c.bf16 %v3473_v37, %v3469_v52  ;;  %v3765_v37 = vld [vmem:[%s7233_s8 + $0xb8] sm:$0xff] }
 0x623   : > { %4744 = vmatpush1.bf16.msra.mxu1 %v4743_v54  ;;  %v3490_v54 = vld [vmem:[%s7231_s6 + $0xf8] sm:$0xff] }
 0x624   : > { %4746 = vmatprep.subr.bf16.mxu1 %v4745_v35  ;;  %v4775_v17 = vpack.c.bf16 %v3490_v54, %v3486_v48  ;;  %v3769_v48 = vld [vmem:[%s7233_s8 + $0xd8] sm:$0xff]  ;;  %v3752_v54 = vld [vmem:[%s7233_s8 + $0x50] sm:$0xff] }
 0x627   : > { %4748 = vmatpush1.bf16.msra.mxu1 %v4747_v22  ;;  %v3498_v22 = vld [vmem:[%s7231_s6 + $0x138] sm:$0xff] }
 0x628   : > { %4750 = vmatprep.subr.bf16.mxu1 %v4749_v19  ;;  %v4777_v19 = vpack.c.bf16 %v3489_v18, %v3485_v20  ;;  %v4779_v25 = vpack.c.bf16 %v3498_v22, %v3494_v34  ;;  %v3770_v20 = vld [vmem:[%s7233_s8 + $0xe0] sm:$0xff]  ;;  %v3771_v18 = vld [vmem:[%s7233_s8 + $0xe8] sm:$0xff] }
 0x629   : > { %v4821_v22 = vpack.c.bf16 %v3771_v18, %v3770_v20 }
 0x62b   : > { %4752 = vmatpush1.bf16.msra.mxu1 %v4751_v30  ;;  %v3506_v30 = vld [vmem:[%s7231_s6 + $0x178] sm:$0xff] }
 0x62c   : > { %4754 = vmatprep.subr.bf16.mxu1 %v4753_v16  ;;  %v4781_v16 = vpack.c.bf16 %v3497_v10, %v3493_v24  ;;  %v4783_v26 = vpack.c.bf16 %v3506_v30, %v3502_v53  ;;  %v3772_v24 = vld [vmem:[%s7233_s8 + $0xf0] sm:$0xff]  ;;  %v3773_v10 = vld [vmem:[%s7233_s8 + $0xf8] sm:$0xff] }
 0x62d   : > { %v4825_v30 = vpack.c.bf16 %v3773_v10, %v3772_v24 }
 0x62f   : > { %4756 = vmatpush1.bf16.msra.mxu1 %v4755_v62  ;;  %v3514_v62 = vld [vmem:[%s7231_s6 + $0x1b8] sm:$0xff] }
 0x630   : > { %4759 = vmatprep.subr.msk.bf16.mxu1 %vm6558_vm12, %v4757_v44  ;;  %v4785_v44 = vpack.c.bf16 %v3505_v4, %v3501_v56 }
 0x6e9   : > { %v3391_v36 = vpop.f32.mrb[4].mxu1 }
 0x6ea   : > { %v3392_v47 = vadd.f32 %v3391_v36, %v3304_v27  ;;  %v3393_v45 = vpop.f32.mrb[5].mxu1  ;;  %v3519_v36 = vld [vmem:[%s7231_s6 + $0x1e0] sm:$0xf] }
 0x6eb   : > { %v3394_v60 = vadd.f32 %v3393_v45, %v3304_v27  ;;  %v3515_v27 = vld [vmem:[%s7231_s6 + $0x1c0] sm:$0xff]  ;;  %v3462_v45 = vld [vmem:[%s7231_s6 + $0x18] sm:$0xff] }
 0x6ec   : > { %v6646_v50 = vmax.f32 %v3392_v47, 0.0  ;;  %v4760_v47 = vpack.c.bf16 %v3519_v36, %v3515_v27  ;;  %v4787_v27 = vpack.c.bf16 %v3514_v62, %v3510_v63  ;;  %v3509_v36 = vld [vmem:[%s7231_s6 + $0x190] sm:$0xff]  ;;  %v3695_v62 = vld [vmem:[%s7232_s7] sm:$0xff] }
 0x6ed   : > { %v3403_v13 = vmax.f32 %v3394_v60, 0.0  ;;  %v3397_v46 = vpop.f32.mrb[6].mxu1  ;;  %v3466_v60 = vld [vmem:[%s7231_s6 + $0x38] sm:$0xff] }
 0x6ee   : > { %v3398_v8 = vadd.f32 %v3397_v46, %v3309_v6  ;;  %v3399_v57 = vpop.f32.mrb[7].mxu1  ;;  %3415 = vrot.lane.b32.xlu1 %v6646_v50, %s7335_s16  ;;  %4762 = vmatpush1.bf16.msk.msra.mxu1 %vm6558_vm12, %v4760_v47  ;;  %v3513_v47 = vld [vmem:[%s7231_s6 + $0x1b0] sm:$0xff] }
 0x6ef   : > { %3408 = vst.msk [vmem:[#allocation6 + $0x8] sm:$0xff] %vm3407_vm8, %v3403_v13  ;;  %v3400_v61 = vadd.f32 %v3399_v57, %v3309_v6  ;;  %v4763_v6 = vpack.c.bf16 %v3466_v60, %v3462_v45  ;;  %v3518_v45 = vld [vmem:[%s7231_s6 + $0x1d8] sm:$0xff] }
 0x6f0   : > { %v6651_v11 = vmax.f32 %v3398_v8, 0.0  ;;  %v3522_v60 = vld [vmem:[%s7231_s6 + $0x1f8] sm:$0xf] }
 0x6f1   : > { %v3405_v1 = vmax.f32 %v3400_v61, 0.0  ;;  %4764 = vmatprep.subr.bf16.mxu1 %v4763_v6  ;;  %v4789_v6 = vpack.c.bf16 %v3513_v47, %v3509_v36  ;;  %v3700_v36 = vld [vmem:[%s7232_s7 + $0x28] sm:$0xff] }
 0x6f2   : > { %3417 = vrot.lane.b32.xlu1 %v6651_v11, %s7335_s16 }
 0x6f3   : > { %3410 = vst.msk [vmem:[#allocation6 + $0x18] sm:$0xff] %vm3407_vm8, %v3405_v1 }
 0x6f6   : > { %v3423_v51 = vld [vmem:[#allocation6 + $0x8] sm:$0xff] }
 0x6f7   : > { %3427 = vrot.lane.b32.xlu0 %v3423_v51, %s7335_s16 }
 0x6fa   : > { %v3424_v15 = vld [vmem:[#allocation6 + $0x18] sm:$0xff] }
 0x6fb   : > { %3429 = vrot.lane.b32.xlu0 %v3424_v15, %s7335_s16  ;;  %s7370_s16 = sld [smem:[#allocation23_spill]] }
 0x760   : > { %v3416_v13 = vpop.permute.xlu1 %3415 }
 0x761   : > { %v3421_v33 = vmax.f32 %v6646_v50, %v3416_v13 }
 0x764   : > { %v3418_v1 = vpop.permute.xlu1 %3417 }
 0x765   : > { %v3422_v2 = vmax.f32 %v6651_v11, %v3418_v1 }
 0x769   : > { %v3428_v46 = vpop.permute.xlu0 %3427 }
 0x76a   : > { %v3431_v8 = vsel %vm536_vm0, %v3416_v13, %v3428_v46  ;;  %v3438_v57 = vmax.f32 %v3423_v51, %v3428_v46  ;;  %v4767_v51 = vpack.c.bf16 %v3474_v21, %v3470_v28  ;;  %v4791_v13 = vpack.c.bf16 %v3522_v60, %v3518_v45  ;;  %v3517_v46 = vld [vmem:[%s7231_s6 + $0x1d0] sm:$0xff]  ;;  %v3745_v21 = vld [vmem:[%s7233_s8 + $0x18] sm:$0xff] }
 0x76b   : > { %v3437_v61 = vmax.f32 %v6646_v50, %v3431_v8  ;;  %v3478_v50 = vld [vmem:[%s7231_s6 + $0x98] sm:$0xff]  ;;  %v3521_v8 = vld [vmem:[%s7231_s6 + $0x1f0] sm:$0xf] }
 0x76c   : > { %3447 = vrot.lane.b32.xlu0 %v3438_v57, %s5253_s23  ;;  %v4771_v49 = vpack.c.bf16 %v3482_v38, %v3478_v50  ;;  %v3758_v57 = vld [vmem:[%s7233_s8 + $0x80] sm:$0xff]  ;;  %v3744_v28 = vld [vmem:[%s7233_s8 + $0x10] sm:$0xff]  ;;  %v3749_v38 = vld [vmem:[%s7233_s8 + $0x38] sm:$0xff] }
 0x76d   : > { %v3430_v42 = vpop.permute.xlu0 %3429  ;;  %3445 = vrot.lane.b32.xlu1 %v3437_v61, %s5253_s23  ;;  %v3759_v61 = vld [vmem:[%s7233_s8 + $0x88] sm:$0xff] }
 0x76e   : > { %v3432_v59 = vsel %vm536_vm0, %v3418_v1, %v3430_v42  ;;  %v3440_v32 = vmax.f32 %v3424_v15, %v3430_v42  ;;  %v4794_v1 = vpack.c.bf16 %v3521_v8, %v3517_v46  ;;  %v4797_v42 = vpack.c.bf16 %v3759_v61, %v3758_v57 }
 0x76f   : > { %v3439_v9 = vmax.f32 %v6651_v11, %v3432_v59  ;;  %v3481_v11 = vld [vmem:[%s7231_s6 + $0xb0] sm:$0xff]  ;;  %v3742_v59 = vld [vmem:[%s7233_s8] sm:$0xff]  ;;  %vm3732_vm0 = vcmask 130048  }
 0x770   : > { %3451 = vrot.lane.b32.xlu0 %v3440_v32, %s5253_s23  ;;  %v4773_v35 = vpack.c.bf16 %v3481_v11, %v3477_v14  ;;  %v3743_v32 = vld [vmem:[%s7233_s8 + $0x8] sm:$0xff]  ;;  %v3768_v14 = vld [vmem:[%s7233_s8 + $0xd0] sm:$0xff] }
 0x771   : > { %3449 = vrot.lane.b32.xlu1 %v3439_v9, %s5253_s23  ;;  %v3760_v9 = vld [vmem:[%s7233_s8 + $0x90] sm:$0xff]  ;;  %v4799_v12 = vpack.c.bf16 %v3743_v32, %v3742_v59 }
 0x7de   : > { %v3448_v58 = vpop.permute.xlu0 %3447 }
 0x7df   : > { %v3446_v29 = vpop.permute.xlu1 %3445 }
 0x7e0   : > { %v3453_v23 = vsel %vm2938_vm10, %v3446_v29, %v3448_v58  ;;  %v4801_v58 = vpack.c.bf16 %v3761_v43, %v3760_v9  ;;  %v4803_v29 = vpack.c.bf16 %v3745_v21, %v3744_v28  ;;  %v3774_v28 = vld [vmem:[%s7233_s8 + $0x100] sm:$0xff]  ;;  %v3775_v21 = vld [vmem:[%s7233_s8 + $0x108] sm:$0xff] }
 0x7e1   : > { %v6786_v5 = vmax.f32 %v3421_v33, %v3453_v23  ;;  %v3762_v33 = vld [vmem:[%s7233_s8 + $0xa0] sm:$0xff] }
 0x7e2   : > { %v3452_v31 = vpop.permute.xlu0 %3451  ;;  %v4805_v23 = vpack.c.bf16 %v3763_v3, %v3762_v33 }
 0x7e3   : > { %4225 = vmatmul.mubr.msk.f32.vlgmr.msra.gmra.mrb[8].mxu1 %vm709_vm3, %v6786_v5  ;;  %v3450_v40 = vpop.permute.xlu1 %3449 }
 0x7e4   : > { %4766 = vmatpush1.bf16.msra.mxu1 %v4765_v41  ;;  %v3454_v15 = vsel %vm2938_vm10, %v3450_v40, %v3452_v31  ;;  %3611 = vmatprep.mubr.f32.mxu1 %v5244_v0  ;;  %v3746_v41 = vld [vmem:[%s7233_s8 + $0x20] sm:$0xff]  ;;  %v3748_v31 = vld [vmem:[%s7233_s8 + $0x30] sm:$0xff] }
 0x7e5   : > { %v6805_v7 = vmax.f32 %v3422_v2, %v3454_v15  ;;  %4768 = vmatprep.subr.bf16.mxu1 %v4767_v51  ;;  %v3747_v51 = vld [vmem:[%s7233_s8 + $0x28] sm:$0xff]  ;;  %v4811_v2 = vpack.c.bf16 %v3749_v38, %v3748_v31  ;;  %v3766_v40 = vld [vmem:[%s7233_s8 + $0xc0] sm:$0xff]  ;;  %v3781_v38 = vld [vmem:[%s7233_s8 + $0x138] sm:$0xff] }
 0x7e6   : > { %v4807_v52 = vpack.c.bf16 %v3747_v51, %v3746_v41  ;;  %v3767_v15 = vld [vmem:[%s7233_s8 + $0xc8] sm:$0xff]  ;;  %v3776_v41 = vld [vmem:[%s7233_s8 + $0x110] sm:$0xff]  ;;  %v3777_v51 = vld [vmem:[%s7233_s8 + $0x118] sm:$0xff] }
 0x7e7   : > { %4226 = vmatmul.mubr.msk.f32.gmra.mrb[10].mxu1 %vm709_vm3, %v6805_v7 }
 0x7e8   : > { %4770 = vmatpush1.bf16.msra.mxu1 %v4769_v55  ;;  %3682 = vmatprep.mubr.f32.mxu1 %v5244_v0  ;;  %v4813_v55 = vpack.c.bf16 %v3767_v15, %v3766_v40 }
 0x7e9   : > { %4772 = vmatprep.subr.bf16.mxu1 %v4771_v49  ;;  %v3751_v49 = vld [vmem:[%s7233_s8 + $0x48] sm:$0xff] }
 0x7ec   : > { %4774 = vmatpush1.bf16.msra.mxu1 %v4773_v35  ;;  %v3753_v35 = vld [vmem:[%s7233_s8 + $0x58] sm:$0xff] }
 0x7ed   : > { %4776 = vmatprep.subr.bf16.mxu1 %v4775_v17  ;;  %v4817_v17 = vpack.c.bf16 %v3769_v48, %v3768_v14  ;;  %v4819_v34 = vpack.c.bf16 %v3753_v35, %v3752_v54  ;;  %v3697_v14 = vld [vmem:[%s7232_s7 + $0x10] sm:$0xff]  ;;  %v3702_v48 = vld [vmem:[%s7232_s7 + $0x38] sm:$0xff] }
 0x7f0   : > { %4778 = vmatpush1.bf16.msra.mxu1 %v4777_v19  ;;  %v3754_v19 = vld [vmem:[%s7233_s8 + $0x60] sm:$0xff] }
 0x7f1   : > { %4780 = vmatprep.subr.bf16.mxu1 %v4779_v25  ;;  %v3755_v25 = vld [vmem:[%s7233_s8 + $0x68] sm:$0xff] }
 0x7f2   : > { %v4823_v53 = vpack.c.bf16 %v3755_v25, %v3754_v19  ;;  %v3785_v19 = vld [vmem:[%s7233_s8 + $0x158] sm:$0xff] }
 0x7f4   : > { %4782 = vmatpush1.bf16.msra.mxu1 %v4781_v16  ;;  %v3756_v16 = vld [vmem:[%s7233_s8 + $0x70] sm:$0xff] }
 0x7f5   : > { %4784 = vmatprep.subr.bf16.mxu1 %v4783_v26  ;;  %v3757_v26 = vld [vmem:[%s7233_s8 + $0x78] sm:$0xff] }
 0x7f6   : > { %v4827_v56 = vpack.c.bf16 %v3757_v26, %v3756_v16 }
 0x7f8   : > { %4786 = vmatpush1.bf16.msra.mxu1 %v4785_v44  ;;  %v3699_v44 = vld [vmem:[%s7232_s7 + $0x20] sm:$0xff] }
 0x7f9   : > { %4788 = vmatprep.subr.bf16.mxu1 %v4787_v27  ;;  %v3696_v27 = vld [vmem:[%s7232_s7 + $0x8] sm:$0xff] }
 0x7fc   : > { %4790 = vmatpush1.bf16.msra.mxu1 %v4789_v6 }
 0x7fd   : > { %4793 = vmatprep.subr.msk.bf16.mxu1 %vm6558_vm12, %v4791_v13 }
 0x800   : > { %4796 = vmatpush1.bf16.msk.msra.mxu1 %vm6558_vm12, %v4794_v1  ;;  %vm3953_vm12 = vcmask 982016  }
 0x801   : > { %4798 = vmatprep.subr.bf16.mxu1 %v4797_v42 }
 0x803   : > { %4229 = vmatmul.mubr.msk.f32.vlgmr.msra.gmra.mrb[12].mxu1 %vm709_vm3, %v6786_v5  ;;  %v3764_v5 = vld [vmem:[%s7233_s8 + $0xb0] sm:$0xff] }
 0x804   : > { %3688 = vmatprep.mubr.f32.mxu1 %v5244_v0  ;;  %4800 = vmatpush3.bf16.msra.mxu1 %v4799_v12  ;;  %v4809_v50 = vpack.c.bf16 %v3765_v37, %v3764_v5  ;;  %v3778_v5 = vld [vmem:[%s7233_s8 + $0x120] sm:$0xff]  ;;  %v3779_v37 = vld [vmem:[%s7233_s8 + $0x128] sm:$0xff] }
 0x805   : > { %4802 = vmatprep.subr.bf16.mxu1 %v4801_v58  ;;  %v4836_v31 = vpack.c.bf16 %v3779_v37, %v3778_v5  ;;  %v3946_v5 = vld [vmem:[%s7235_s10 + $0x48] sm:$0xff] }
 0x807   : > { %4230 = vmatmul.mubr.msk.f32.gmra.mrb[14].mxu1 %vm709_vm3, %v6805_v7  ;;  %v3750_v7 = vld [vmem:[%s7233_s8 + $0x40] sm:$0xff]  ;;  %vm7367_vm3 = vmmov 0  }
 0x808   : > { %4804 = vmatpush3.bf16.msra.mxu1 %v4803_v29  ;;  %v4815_v11 = vpack.c.bf16 %v3751_v49, %v3750_v7  ;;  %v4830_v29 = vpack.c.bf16 %v3775_v21, %v3774_v28  ;;  %v3782_v7 = vld [vmem:[%s7233_s8 + $0x140] sm:$0xff]  ;;  %v3783_v49 = vld [vmem:[%s7233_s8 + $0x148] sm:$0xff]  ;;  %v3940_v28 = vld [vmem:[%s7235_s10 + $0x18] sm:$0xff] }
 0x809   : > { %4806 = vmatprep.subr.bf16.mxu1 %v4805_v23 }
 0x80c   : > { %4808 = vmatpush3.bf16.msra.mxu1 %v4807_v52  ;;  %v4833_v52 = vpack.c.bf16 %v3777_v51, %v3776_v41  ;;  %v3944_v41 = vld [vmem:[%s7235_s10 + $0x38] sm:$0xff] }
 0x80d   : > { %4810 = vmatprep.subr.bf16.mxu1 %v4809_v50  ;;  %v3780_v50 = vld [vmem:[%s7233_s8 + $0x130] sm:$0xff] }
 0x80e   : > { %v4839_v40 = vpack.c.bf16 %v3781_v38, %v3780_v50  ;;  %v3948_v50 = vld [vmem:[%s7235_s10 + $0x58] sm:$0xff] }
 0x810   : > { %4812 = vmatpush3.bf16.msra.mxu1 %v4811_v2 }
 0x811   : > { %4814 = vmatprep.subr.bf16.mxu1 %v4813_v55  ;;  %v3698_v55 = vld [vmem:[%s7232_s7 + $0x18] sm:$0xff] }
 0x814   : > { %4816 = vmatpush3.bf16.msra.mxu1 %v4815_v11  ;;  %v3701_v11 = vld [vmem:[%s7232_s7 + $0x30] sm:$0xff] }
 0x815   : > { %4818 = vmatprep.subr.bf16.mxu1 %v4817_v17  ;;  %v4842_v17 = vpack.c.bf16 %v3783_v49, %v3782_v7 }
 0x818   : > { %4820 = vmatpush3.bf16.msra.mxu1 %v4819_v34 }
 0x819   : > { %4822 = vmatprep.subr.bf16.mxu1 %v4821_v22  ;;  %v3784_v22 = vld [vmem:[%s7233_s8 + $0x150] sm:$0xff] }
 0x81c   : > { %4824 = vmatpush3.bf16.msra.mxu1 %v4823_v53 }
 0x81d   : > { %4826 = vmatprep.subr.bf16.mxu1 %v4825_v30  ;;  %v4845_v30 = vpack.c.bf16 %v3785_v19, %v3784_v22  ;;  %v4030_v19 = vld [vmem:[%s7237_s12 + $0x10] sm:$0xff] }
 0x820   : > { %4828 = vmatpush3.bf16.msra.mxu1 %v4827_v56  ;;  %v3786_v56 = vld [vmem:[%s7233_s8 + $0x160] sm:$0xff] }
 0x821   : > { %4829 = vmatprep.subr.bf16.mxu1 %v5247_v39 }
 0x8b6   : > { %v3607_v4 = vpop.f32.mrb[8].mxu1 }
 0x8b7   : > { %v3609_v63 = vpop.f32.mrb[9].mxu1  ;;  %v3703_v45 = vmul.f32 %v3695_v62, %v3607_v4  ;;  %v3787_v4 = vld [vmem:[%s7233_s8 + $0x168] sm:$0xff] }
 0x8b8   : > { %v3704_v13 = vmul.f32 %v3696_v27, %v3609_v63 }
 0x8ba   : > { %v3613_v47 = vpop.f32.mrb[10].mxu1 }
 0x8bb   : > { %v3707_v60 = vmul.f32 %v3699_v44, %v3613_v47  ;;  %v3615_v6 = vpop.f32.mrb[11].mxu1  ;;  %v4848_v44 = vpack.c.bf16 %v3787_v4, %v3786_v56  ;;  %v3788_v47 = vld [vmem:[%s7233_s8 + $0x170] sm:$0xff]  ;;  %v4036_v4 = vld [vmem:[%s7237_s12 + $0x40] sm:$0xff] }
 0x8bc   : > { %v3708_v46 = vmul.f32 %v3700_v36, %v3615_v6 }
 0x8bd   : > { %v3711_v8 = vadd.f32 %v3707_v60, %v3703_v45  ;;  %v3789_v45 = vld [vmem:[%s7233_s8 + $0x178] sm:$0xff] }
 0x8be   : > { %v3718_v57 = vadd.f32 %v3708_v46, %v3704_v13  ;;  %v4851_v6 = vpack.c.bf16 %v3789_v45, %v3788_v47 }
 0x8bf   : > { %v3712_v61 = vrot.slane %v3711_v8, 4 }
 0x8c0   : > { %v3719_v1 = vrot.slane %v3718_v57, 4 }
 0x8c1   : > { %v3713_v42 = vadd.f32 %v3712_v61, %v3711_v8  ;;  %v3790_v8 = vld [vmem:[%s7233_s8 + $0x180] sm:$0xff] }
 0x8c2   : > { %v3720_v59 = vadd.f32 %v3719_v1, %v3718_v57  ;;  %v3791_v57 = vld [vmem:[%s7233_s8 + $0x188] sm:$0xff] }
 0x8c3   : > { %v3714_v32 = vrot.slane %v3713_v42, 2  ;;  %v4854_v1 = vpack.c.bf16 %v3791_v57, %v3790_v8 }
 0x8c4   : > { %v3721_v9 = vrot.slane %v3720_v59, 2 }
 0x8c5   : > { %v3715_v43 = vadd.f32 %v3714_v32, %v3713_v42 }
 0x8c6   : > { %v3722_v12 = vadd.f32 %v3721_v9, %v3720_v59  ;;  %v3937_v9 = vld [vmem:[%s7235_s10] sm:$0xff] }
 0x8c7   : > { %v3716_v58 = vrot.slane %v3715_v43, 1 }
 0x8c8   : > { %v3723_v33 = vrot.slane %v3722_v12, 1 }
 0x8c9   : > { %v3717_v23 = vadd.f32 %v3716_v58, %v3715_v43  ;;  %v3938_v43 = vld [vmem:[%s7235_s10 + $0x8] sm:$0xff] }
 0x8ca   : > { %v3724_v3 = vadd.f32 %v3723_v33, %v3722_v12  ;;  %v3939_v12 = vld [vmem:[%s7235_s10 + $0x10] sm:$0xff]  ;;  %v4857_v58 = vpack.c.bf16 %v3938_v43, %v3937_v9  ;;  %v3941_v33 = vld [vmem:[%s7235_s10 + $0x20] sm:$0xff] }
 0x8cb   : > { %v4860_v21 = vpack.c.bf16 %v3940_v28, %v3939_v12 }
 0x8cc   : > { %3860 = vmatprep.mubr.f32.mxu1 %v3724_v3  ;;  %v3942_v3 = vld [vmem:[%s7235_s10 + $0x28] sm:$0xff] }
 0x8cd   : > { %3861 = vmatmul.mubr.f32.vlgmr.msra.gmra.mrb[16].mxu1 %v3717_v23  ;;  %v3943_v23 = vld [vmem:[%s7235_s10 + $0x30] sm:$0xff] }
 0x8ce   : > { %4831 = vmatpush1.bf16.msra.mxu1 %v4830_v29  ;;  %v4863_v29 = vpack.c.bf16 %v3942_v3, %v3941_v33  ;;  %v4866_v51 = vpack.c.bf16 %v3944_v41, %v3943_v23 }
 0x8cf   : > { %4832 = vmatprep.subr.bf16.mxu1 %v5247_v39 }
 0x8d2   : > { %4834 = vmatpush1.bf16.msra.mxu1 %v4833_v52  ;;  %v3945_v52 = vld [vmem:[%s7235_s10 + $0x40] sm:$0xff] }
 0x8d3   : > { %4835 = vmatprep.subr.bf16.mxu1 %v5247_v39  ;;  %v4869_v37 = vpack.c.bf16 %v3946_v5, %v3945_v52 }
 0x8d6   : > { %v3684_v2 = vpop.f32.mrb[12].mxu1  ;;  %4837 = vmatpush1.bf16.msra.mxu1 %v4836_v31  ;;  %v3947_v31 = vld [vmem:[%s7235_s10 + $0x50] sm:$0xff] }
 0x8d7   : > { %v3686_v15 = vpop.f32.mrb[13].mxu1  ;;  %4838 = vmatprep.subr.bf16.mxu1 %v5247_v39  ;;  %v3705_v20 = vmul.f32 %v3697_v14, %v3684_v2  ;;  %v4872_v38 = vpack.c.bf16 %v3948_v50, %v3947_v31  ;;  %v3949_v2 = vld [vmem:[%s7235_s10 + $0x60] sm:$0xff] }
 0x8d8   : > { %v3706_v54 = vmul.f32 %v3698_v55, %v3686_v15  ;;  %v3951_v55 = vld [vmem:[%s7235_s10 + $0x70] sm:$0xff] }
 0x8da   : > { %v3690_v35 = vpop.f32.mrb[14].mxu1  ;;  %4840 = vmatpush1.bf16.msra.mxu1 %v4839_v40  ;;  %v3733_v10 = vsel %vm3732_vm0, %v3706_v54, 0.0  ;;  %v3950_v40 = vld [vmem:[%s7235_s10 + $0x68] sm:$0xff]  ;;  %v4028_v54 = vld [vmem:[%s7237_s12] sm:$0xff] }
 0x8db   : > { %v3709_v18 = vmul.f32 %v3701_v11, %v3690_v35  ;;  %v3692_v34 = vpop.f32.mrb[15].mxu1  ;;  %4841 = vmatprep.subr.bf16.mxu1 %v5247_v39  ;;  %v4875_v15 = vpack.c.bf16 %v3950_v40, %v3949_v2  ;;  %v3792_v11 = vld [vmem:[%s7234_s9] sm:$0x1]  ;;  %v4029_v35 = vld [vmem:[%s7237_s12 + $0x8] sm:$0xff] }
 0x8dc   : > { %v3710_v25 = vmul.f32 %v3702_v48, %v3692_v34  ;;  %v4878_v34 = vpack.c.bf16 %v4029_v35, %v4028_v54 }
 0x8dd   : > { %v3725_v24 = vadd.f32 %v3709_v18, %v3705_v20 }
 0x8de   : > { %v3734_v53 = vsel %vm3732_vm0, %v3710_v25, 0.0  ;;  %4843 = vmatpush1.bf16.msra.mxu1 %v4842_v17  ;;  %v4031_v25 = vld [vmem:[%s7237_s12 + $0x18] sm:$0xff] }
 0x8df   : > { %v3726_v16 = vrot.slane %v3725_v24, 4  ;;  %v3735_v26 = vadd.f32 %v3734_v53, %v3733_v10  ;;  %4844 = vmatprep.subr.bf16.mxu1 %v5247_v39  ;;  %v4032_v10 = vld [vmem:[%s7237_s12 + $0x20] sm:$0xff]  ;;  %v4033_v53 = vld [vmem:[%s7237_s12 + $0x28] sm:$0xff] }
 0x8e1   : > { %v3727_v63 = vadd.f32 %v3726_v16, %v3725_v24  ;;  %v3736_v62 = vrot.slane %v3735_v26, 4  ;;  %v4881_v24 = vpack.c.bf16 %v4031_v25, %v4030_v19  ;;  %v4034_v16 = vld [vmem:[%s7237_s12 + $0x30] sm:$0xff] }
 0x8e2   : > { %4846 = vmatpush1.bf16.msra.mxu1 %v4845_v30  ;;  %v4884_v30 = vpack.c.bf16 %v4033_v53, %v4032_v10 }
 0x8e3   : > { %v3728_v27 = vrot.slane %v3727_v63, 2  ;;  %v3737_v36 = vadd.f32 %v3736_v62, %v3735_v26  ;;  %4847 = vmatprep.subr.bf16.mxu1 %v5247_v39  ;;  %v4035_v26 = vld [vmem:[%s7237_s12 + $0x38] sm:$0xff] }
 0x8e4   : > { %v4887_v56 = vpack.c.bf16 %v4035_v26, %v4034_v16 }
 0x8e5   : > { %v3738_v60 = vrot.slane %v3737_v36, 2  ;;  %v3729_v13 = vadd.f32 %v3728_v27, %v3727_v63  ;;  %v4037_v63 = vld [vmem:[%s7237_s12 + $0x48] sm:$0xff] }
 0x8e6   : > { %4849 = vmatpush1.bf16.msra.mxu1 %v4848_v44  ;;  %v4890_v62 = vpack.c.bf16 %v4037_v63, %v4036_v4  ;;  %v4038_v44 = vld [vmem:[%s7237_s12 + $0x50] sm:$0xf] }
 0x8e7   : > { %v3739_v46 = vadd.f32 %v3738_v60, %v3737_v36  ;;  %4850 = vmatprep.subr.bf16.mxu1 %v5247_v39  ;;  %v3730_v42 = vrot.slane %v3729_v13, 1 }
 0x8e9   : > { %v3740_v61 = vrot.slane %v3739_v46, 1  ;;  %v3731_v32 = vadd.f32 %v3730_v42, %v3729_v13 }
 0x8ea   : > { %4852 = vmatpush1.bf16.msra.mxu1 %v4851_v6 }
 0x8eb   : > { %4853 = vmatprep.subr.bf16.mxu1 %v5247_v39  ;;  %v3741_v59 = vadd.f32 %v3740_v61, %v3739_v46 }
 0x8ed   : > { %4231 = vmatprep.mubr.msk.f32.mxu1 %vm3732_vm0, %v3741_v59 }
 0x8ee   : > { %4855 = vmatpush1.bf16.msra.mxu1 %v4854_v1 }
 0x8ef   : > { %4856 = vmatprep.subr.bf16.mxu1 %v5247_v39 }
 0x8f1   : > { %3931 = vmatmul.mubr.f32.vlgmr.msra.gmra.mrb[18].mxu1 %v3731_v32 }
 0x8f2   : > { %4365 = vmatprep.mubr.msk.f32.mxu1 %vm7367_vm3, %v5244_v0  ;;  %4858 = vmatpush3.bf16.msra.mxu1 %v4857_v58 }
 0x8f3   : > { %4859 = vmatprep.subr.bf16.mxu1 %v5247_v39 }
 0x8f6   : > { %4861 = vmatpush3.bf16.msra.mxu1 %v4860_v21 }
 0x8f7   : > { %4862 = vmatprep.subr.bf16.mxu1 %v5247_v39 }
 0x8fa   : > { %4864 = vmatpush3.bf16.msra.mxu1 %v4863_v29 }
 0x8fb   : > { %4865 = vmatprep.subr.bf16.mxu1 %v5247_v39 }
 0x8fe   : > { %4867 = vmatpush3.bf16.msra.mxu1 %v4866_v51 }
 0x8ff   : > { %4868 = vmatprep.subr.bf16.mxu1 %v5247_v39 }
 0x902   : > { %4870 = vmatpush3.bf16.msra.mxu1 %v4869_v37 }
 0x903   : > { %4871 = vmatprep.subr.bf16.mxu1 %v5247_v39 }
 0x906   : > { %4873 = vmatpush3.bf16.msra.mxu1 %v4872_v38 }
 0x907   : > { %4874 = vmatprep.subr.bf16.mxu1 %v5247_v39 }
 0x90a   : > { %4876 = vmatpush3.bf16.msra.mxu1 %v4875_v15 }
 0x90b   : > { %4363 = vmatprep.subr.mxu1 %v5244_v0 }
 0x90e   : > { %4364 = vmatpush3.msra.mxu1 %v3951_v55 }
 0x90f   : > { %4877 = vmatprep.subr.bf16.mxu1 %v5247_v39 }
 0x9a0   : > { %v4281_v7 = vpop.f32.mrb[16].mxu1 }
 0x9a1   : > { %v4282_v49 = vpop.f32.mrb[17].mxu1 }
 0x9a2   : > { %v4283_v14 = vadd.f32 %v4282_v49, %v4281_v7 }
 0x9a4   : > { %v3863_v48 = vadd.f32 %v4283_v14, %v3792_v11 }
 0x9c4   : > { %v3932_v17 = vpop.f32.mrb[18].mxu1 }
 0x9c5   : > { %v3933_v20 = vadd.f32 %v3932_v17, %v3863_v48  ;;  %v3934_v18 = vpop.f32.mrb[19].mxu1 }
 0x9c7   : > { %v3936_v22 = vmax.f32 %v3933_v20, 0.0 }
 0x9c9   : > { %4366 = vmatmul.mubr.msk.f32.vlgmr.msra.gmra.mrb[20].mxu1 %vm3953_vm12, %v3936_v22 }
 0x9ca   : > { %4879 = vmatpush3.bf16.msra.mxu1 %v4878_v34  ;;  %4390 = vmatprep.mubr.msk.f32.mxu1 %vm7367_vm3, %v5244_v0 }
 0x9cb   : > { %4880 = vmatprep.subr.bf16.mxu1 %v5247_v39 }
 0x9ce   : > { %4882 = vmatpush3.bf16.msra.mxu1 %v4881_v24 }
 0x9cf   : > { %4883 = vmatprep.subr.bf16.mxu1 %v5247_v39 }
 0x9d2   : > { %4885 = vmatpush3.bf16.msra.mxu1 %v4884_v30 }
 0x9d3   : > { %4886 = vmatprep.subr.bf16.mxu1 %v5247_v39 }
 0x9d6   : > { %4888 = vmatpush3.bf16.msra.mxu1 %v4887_v56 }
 0x9d7   : > { %4889 = vmatprep.subr.bf16.mxu1 %v5247_v39  ;;  %v3952_v39 = vld [vmem:[%s7368_s0] sm:$0x1] }
 0x9da   : > { %4891 = vmatpush3.bf16.msra.mxu1 %v4890_v62 }
 0x9db   : > { %4388 = vmatprep.subr.mxu1 %v5244_v0  ;;  %v4039_v0 = vld [vmem:[%s7370_s16] sm:$0x1] }
 0x9de   : > { %4389 = vmatpush3.msk.msra.mxu1 %vm2563_vm14, %v4038_v44  ;;  %vm4116_vm14 = vcmask 73728  }
 0xa9c   : > { %v4023_v27 = vpop.f32.mrb[20].mxu1 }
 0xa9d   : > { %v4024_v36 = vadd.f32 %v4023_v27, %v3952_v39  ;;  %v4367_v47 = vpop.f32.mrb[21].mxu1 }
 0xa9f   : > { %v4027_v45 = vmax.f32 %v4024_v36, 0.0 }
 0xaa1   : > { %4391 = vmatmul.mubr.msk.f32.vlgmr.msra.gmra.mrb[22].mxu1 %vm3135_vm2, %v4027_v45 }
 0xb74   : > { %v4112_v60 = vpop.f32.mrb[22].mxu1 }
 0xb75   : > { %v4113_v6 = vadd.f32 %v4112_v60, %v4039_v0  ;;  %v4392_v13 = vpop.f32.mrb[23].mxu1 }
 0xb77   : > { %4117 = vst.msk [vmem:[%s474_s18] sm:$0x1] %vm4116_vm14, %v4113_v6 }
 0xb78   : > { %5167 = shalt.err (!%p5164_p7)
}
 0xb79   : > { %s5168_s11 = scalar_lea.hbm %s7183_s24, 16  ;;  %s5172_s29 = scalar_lea.hbm %s7371_s19, 32 }
 0xb7a   : > { %p5169_p8 = scmp.ne.s32.totalorder %s7183_s24, %s5168_s11  ;;  %p5173_p1 = scmp.lt.u32.totalorder %s7183_s24, %s7371_s19 }
 0xb7b   : > { %p5174_p0 = scmp.lt.u32.totalorder %s5172_s29, %s5168_s11  ;;  %p5176_p6 = scmp.lt.u32.totalorder %s5168_s11, %s7183_s24 }
 0xb7c   : > { %p5170_p11 = pnand %p5169_p8, %p7372_p9 }
 0xb7d   : > { %p5175_p5 = por %p5174_p0, %p5173_p1 }
 0xb7e   : > { %p5171_p13 = pneg %p5170_p11 }
 0xb7f   : > { %p5177_p10 = por %p5176_p6, %p5175_p5 }
 0xb81   : > { %p5178_p12 = pnand %p5177_p10, %p5171_p13 }
 0xb83   : > { %5181 = shalt.err (!%p5178_p12)
}
 0xb84   : > { %4903 = dma.vmem_to_hbm [thread:$0]  (%p7372_p9), %s7185_s14, 16, %s7183_s24, %s4119_s21  }
 0xb85 PF: > { %s7373_s16 = sld [smem:[#allocation15_spill]]  ;;  %s7374_s22 = sld [smem:[#allocation13_spill]] }
 0xb86   : > { %s7375_s18 = sld [smem:[#allocation19_spill]] }
 0xb8b   : > { %p4915_p2 = scmp.ge.s32.totalorder %s7373_s16, 2  ;;  %s4143_s13 = sand.u32 1, %s7374_s22  }
 0xb8c   : > { %p7376_p3 = scmp.ne.s32.totalorder %s7375_s18, 0  ;;  %s4144_s20 = scalar_lea.sflag [#allocation9], %s4143_s13 }
 0xb8e   : > { %p4910_p4 = pnand %p4915_p2, %p7376_p3 }
 0xb90   : > { %5203 = dma.done.wait (!%p4910_p4), %s4144_s20, 16  }
 0xb91   : > { %5205 = vsyncadd (!%p4910_p4), %s4144_s20, 4294967280  ;;  %s7377_s16 = sld [smem:[#allocation16_spill]]  ;;  %s7378_s28 = sld [smem:[#allocation14_spill]] }
 0xb92   : > { %s7379_s15 = sld [smem:[#allocation17_spill]]  ;;  %s7380_s29 = smov %s5212_s30 }
 0xb97   : > { %p25_p7 = scmp.ge.s32.totalorder %s7377_s16, 4   ;;  %s7381_s30 = smov %s7378_s28 }
 0xb99   :  { %27 = sbr.rel (!%p25_p7) target bundleno = 10 (0xa), region = 116 }
 0xba0   :  { %4148 = vsyncpa [#allocation8], 1 }
 0xba1   :  { %4150 = vsyncpa [#allocation8 + $0x1], 1 }
 0xba2   :  { %4151 = vsyncpa [#allocation9], 1 }
 0xba3   :  { %4153 = vsyncpa [#allocation9 + $0x1], 1 }

</bundles_post_ra>
